<compile_context>
chip_gen: v6e
topology: v6e:2x2x1
jax: 0.10.0
libtpu: 0.0.40
codegen_flags: <defaults>
</compile_context>

<pallas_src>
import functools

import numpy as np
import jax
import jax.numpy as jnp
from jax import lax
from jax.experimental import pallas as pl
from jax.experimental.pallas import tpu as pltpu


# ----------------------------------------------------------------------------
# Fused backbone kernel: TB images per grid step.
# Activations are (C, H*W): spatial axis on the 128 lanes, channels on sublanes.
# ----------------------------------------------------------------------------
def _fused_backbone_kernel(x_ref, w1_ref, w2_ref, m_ref,
                           conv1_ref, relu1_ref, conv2_ref,
                           xpad_ref, p1_ref, p2_ref, *, width):
    """
    x_ref : (TB, Cin, HW)   raw input images (no channel padding)
    w1_ref: (C1, K1p)       conv1 weights, tap-major cols + bias col + zero pad
    w2_ref: (C2, K2p)       conv2 weights, same layout
    m_ref : (9, HW)         0/1 border masks, one row per 3x3 tap
    outs  : conv1 (TB,C1,HW), relu1 (TB,C1,HW), conv2 (TB,C2,HW)
    scratch: xpad (cin_pad,HW), p1 (K1p,HW), p2 (K2p,HW)
    """
    tb, cin, hw = x_ref.shape
    cin_pad = xpad_ref.shape[0]
    n_c1 = conv1_ref.shape[1]
    k1 = 9 * cin_pad
    k2 = 9 * n_c1

    # Per-step init (cheap, a few KB of vector stores): zero the channel-pad rows of
    # the input scratch and write the constant ones/zero "bias" tail rows of the
    # im2col scratches.  Done every step so it is megacore-safe.
    xpad_ref[...] = jnp.zeros_like(xpad_ref)

    def _init_bias_rows(p_ref, k):
        rows = p_ref.shape[0] - k                     # >= 1, multiple-of-8 block
        tail = (lax.broadcasted_iota(jnp.int32, (rows, hw), 0) == 0)
        p_ref[pl.ds(k, rows), :] = tail.astype(jnp.float32)   # row k = ones, rest 0

    _init_bias_rows(p1_ref, k1)
    _init_bias_rows(p2_ref, k2)

    taps = [(dy, dx) for dy in (-1, 0, 1) for dx in (-1, 0, 1)]

    def im2col_into(p_ref, act, nch):
        # act: (nch, HW) value.  Row tap*nch + c of p_ref gets act shifted by the
        # tap's spatial offset, zeroed outside the image (SAME-padding semantics).
        # Each chunk is exactly `nch` (a multiple of 8) sublanes -> aligned stores.
        for tap, (dy, dx) in enumerate(taps):
            shift = dy * width + dx
            rolled = act if shift == 0 else jnp.roll(act, -shift, axis=1)
            if dy == 0 and dx == 0:                  # center tap: mask is all ones
                chunk = rolled
            else:
                chunk = rolled * m_ref[tap:tap + 1, :]
            p_ref[pl.ds(tap * nch, nch), :] = chunk

    # Statically unrolled per-image loop (TB is a compile-time constant, so every
    # ref index below is static).
    for t in range(tb):
        # Stage image t into the zero-padded channel scratch (rows cin..cin_pad
        # stay zero from the init above).
        xpad_ref[0:cin, :] = x_ref[t].astype(jnp.float32)

        # conv1 (+ folded bias) as a single MXU matmul; ReLU stays in registers.
        im2col_into(p1_ref, xpad_ref[...], cin_pad)
        c1 = jnp.dot(w1_ref[...], p1_ref[...], preferred_element_type=jnp.float32)
        r1 = jnp.maximum(c1, 0.0)                     # (C1, HW)

        # conv2 (+ folded bias) straight from the in-register relu1.
        im2col_into(p2_ref, r1, n_c1)
        c2 = jnp.dot(w2_ref[...], p2_ref[...], preferred_element_type=jnp.float32)

        conv1_ref[t] = c1.astype(conv1_ref.dtype)
        relu1_ref[t] = r1.astype(relu1_ref.dtype)
        conv2_ref[t] = c2.astype(conv2_ref.dtype)


@functools.lru_cache(maxsize=None)
def _tap_masks(H, W):
    """0/1 validity mask per 3x3 tap for SAME padding, over the flat H*W index."""
    p = np.arange(H * W)
    y, x = p // W, p % W
    rows = []
    for dy in (-1, 0, 1):
        for dx in (-1, 0, 1):
            ok = (y + dy >= 0) & (y + dy < H) & (x + dx >= 0) & (x + dx < W)
            rows.append(ok.astype(np.float32))
    return np.stack(rows, axis=0)                     # (9, H*W)


def _pick_tb(batch, max_tb=8):
    """Largest divisor of `batch` that is <= max_tb and keeps >= 2 grid steps
    (so v7x can still shard across its two TensorCores)."""
    cands = [t for t in range(1, min(max_tb, batch) + 1)
             if batch % t == 0 and batch // t >= 2]
    return max(cands) if cands else 1


# ----------------------------------------------------------------------------
# FeatureExtractor forward: returns {layer_name: output} with PyTorch NCHW shapes.
# ----------------------------------------------------------------------------
def init_params(key):
    k1, k2, k3, k4 = jax.random.split(key, 4)
    cin, c1, c2 = 4, 8, 16
    return {
        "conv1_w": (jax.random.normal(k1, (3, 3, cin, c1), jnp.float32)
                    * (1.0 / jnp.sqrt(9.0 * cin))),
        "conv1_b": jax.random.normal(k2, (c1,), jnp.float32) * 0.01,
        "conv2_w": (jax.random.normal(k3, (3, 3, c1, c2), jnp.float32)
                    * (1.0 / jnp.sqrt(9.0 * c1))),
        "conv2_b": jax.random.normal(k4, (c2,), jnp.float32) * 0.01,
    }


def feature_extractor_forward(params, x_nchw):
    B, Cin, H, W = x_nchw.shape
    HW = H * W
    C1 = params["conv1_b"].shape[0]
    C2 = params["conv2_b"].shape[0]

    cin_pad = ((Cin + 7) // 8) * 8
    K1 = 9 * cin_pad
    K1p = ((K1 + 1 + 7) // 8) * 8                     # + bias row, round up to 8
    K2 = 9 * C1
    K2p = ((K2 + 1 + 7) // 8) * 8

    # Channels-first flat layout; NCHW reshape is free.  NO input channel padding
    # here — the kernel zero-fills a VMEM scratch instead.
    xr = x_nchw.reshape(B, Cin, HW)

    # HWIO weights -> matmul form (Cout, K): rows tap-major then channel, with the
    # bias folded in as an extra "ones"-row column and zero padding up to Kp.
    w1 = params["conv1_w"].astype(jnp.float32)
    if cin_pad != Cin:
        w1 = jnp.pad(w1, ((0, 0), (0, 0), (0, cin_pad - Cin), (0, 0)))
    w1m = w1.reshape(K1, C1).T                        # (C1, K1)
    w1m = jnp.concatenate(
        [w1m, params["conv1_b"].reshape(C1, 1).astype(jnp.float32),
         jnp.zeros((C1, K1p - K1 - 1), jnp.float32)], axis=1)      # (C1, K1p)

    w2m = params["conv2_w"].astype(jnp.float32).reshape(K2, C2).T  # (C2, K2)
    w2m = jnp.concatenate(
        [w2m, params["conv2_b"].reshape(C2, 1).astype(jnp.float32),
         jnp.zeros((C2, K2p - K2 - 1), jnp.float32)], axis=1)      # (C2, K2p)

    masks = jnp.asarray(_tap_masks(H, W))             # (9, HW)

    TB = _pick_tb(B)
    grid = B // TB

    flops = 2 * B * HW * (C1 * K1p + C2 * K2p)
    bytes_accessed = 4 * (B * Cin * HW + C1 * K1p + C2 * K2p + 9 * HW
                          + B * HW * (2 * C1 + C2))

    kernel = functools.partial(_fused_backbone_kernel, width=W)
    conv1, relu1, conv2 = pl.pallas_call(
        kernel,
        out_shape=(
            jax.ShapeDtypeStruct((B, C1, HW), jnp.float32),
            jax.ShapeDtypeStruct((B, C1, HW), jnp.float32),
            jax.ShapeDtypeStruct((B, C2, HW), jnp.float32),
        ),
        grid=(grid,),
        in_specs=[
            pl.BlockSpec((TB, Cin, HW), lambda g: (g, 0, 0)),
            pl.BlockSpec((C1, K1p), lambda g: (0, 0)),
            pl.BlockSpec((C2, K2p), lambda g: (0, 0)),
            pl.BlockSpec((9, HW), lambda g: (0, 0)),
        ],
        out_specs=(
            pl.BlockSpec((TB, C1, HW), lambda g: (g, 0, 0)),
            pl.BlockSpec((TB, C1, HW), lambda g: (g, 0, 0)),
            pl.BlockSpec((TB, C2, HW), lambda g: (g, 0, 0)),
        ),
        scratch_shapes=[
            pltpu.VMEM((cin_pad, HW), jnp.float32),   # zero-padded input channels
            pltpu.VMEM((K1p, HW), jnp.float32),       # im2col (+bias row) for conv1
            pltpu.VMEM((K2p, HW), jnp.float32),       # im2col (+bias row) for conv2
        ],
        compiler_params=pltpu.CompilerParams(
            dimension_semantics=("parallel",)),
        cost_estimate=pl.CostEstimate(
            flops=flops, transcendentals=0, bytes_accessed=bytes_accessed),
    )(xr, w1m, w2m, masks)

    # AdaptiveAvgPool2d(1): tiny reduction over the conv2 feature we return anyway;
    # XLA fuses it (no lane-width-1 output stream in the kernel).
    pool = jnp.mean(conv2, axis=2, keepdims=True)

    # Kernel already emits channel-major data: only free reshapes, no transposes.
    return {
        "conv1": conv1.reshape(B, C1, H, W),
        "relu1": relu1.reshape(B, C1, H, W),
        "conv2": conv2.reshape(B, C2, H, W),
        "pool": pool.reshape(B, C2, 1, 1),
    }


if __name__ == "__main__":
    key = jax.random.PRNGKey(0)
    kp, kx = jax.random.split(key)
    params = init_params(kp)

    # Small deterministic input, NCHW like the PyTorch module expects.
    # B=8 exercises the TB sub-batching (TB=4, grid=2 -> both v7x TensorCores busy).
    B, Cin, H, W = 8, 4, 16, 16
    x = jax.random.normal(kx, (B, Cin, H, W), jnp.float32)

    feats = jax.jit(feature_extractor_forward)(params, x)
    feats = jax.block_until_ready(feats)

    # Pure-JAX reference of the same backbone.
    def ref_conv(xn, w, b):
        xh = jnp.transpose(xn, (0, 2, 3, 1))
        y = jax.lax.conv_general_dilated(
            xh, w, window_strides=(1, 1), padding="SAME",
            dimension_numbers=("NHWC", "HWIO", "NHWC"))
        return jnp.transpose(y + b, (0, 3, 1, 2))

    c1_ref = ref_conv(x, params["conv1_w"], params["conv1_b"])
    r1_ref = jnp.maximum(c1_ref, 0.0)
    c2_ref = ref_conv(r1_ref, params["conv2_w"], params["conv2_b"])
    p_ref = jnp.mean(c2_ref, axis=(2, 3), keepdims=True)

    assert feats["conv1"].shape == (B, 8, H, W)
    assert feats["relu1"].shape == (B, 8, H, W)
    assert feats["conv2"].shape == (B, 16, H, W)
    assert feats["pool"].shape == (B, 16, 1, 1)
    assert jnp.allclose(feats["conv1"], c1_ref, atol=1e-3)
    assert jnp.allclose(feats["relu1"], r1_ref, atol=1e-3)
    assert jnp.allclose(feats["conv2"], c2_ref, atol=1e-3)
    assert jnp.allclose(feats["pool"], p_ref, atol=1e-3)

    print("KERNEL_OK")
</pallas_src>

<mosaic_0001>
module attributes {stable_mosaic.version = 11 : i64} {
  func.func @_fused_backbone_kernel(%arg0: i32, %arg1: memref<4x4x256xf32, #tpu.memory_space<vmem>>, %arg2: memref<8x80xf32, #tpu.memory_space<vmem>>, %arg3: memref<16x80xf32, #tpu.memory_space<vmem>>, %arg4: memref<9x256xf32, #tpu.memory_space<vmem>>, %arg5: memref<4x8x256xf32, #tpu.memory_space<vmem>>, %arg6: memref<4x8x256xf32, #tpu.memory_space<vmem>>, %arg7: memref<4x16x256xf32, #tpu.memory_space<vmem>>, %arg8: memref<8x256xf32, #tpu.memory_space<vmem>>, %arg9: memref<80x256xf32, #tpu.memory_space<vmem>>, %arg10: memref<80x256xf32, #tpu.memory_space<vmem>>) attributes {dimension_semantics = [#tpu.dimension_semantics<parallel>], iteration_bounds = array<i64: 2>, scalar_prefetch = 0 : i64, scratch_operands = 3 : i64, tpu.core_type = #tpu.core_type<tc>, window_params = [{transform_indices = @transform_0, window_bounds = array<i64: 4, 4, 256>}, {pipeline_mode = #tpu.pipeline_mode<synchronous>, transform_indices = @transform_1, window_bounds = array<i64: 8, 80>}, {pipeline_mode = #tpu.pipeline_mode<synchronous>, transform_indices = @transform_2, window_bounds = array<i64: 16, 80>}, {pipeline_mode = #tpu.pipeline_mode<synchronous>, transform_indices = @transform_3, window_bounds = array<i64: 9, 256>}, {transform_indices = @transform_4, window_bounds = array<i64: 4, 8, 256>}, {transform_indices = @transform_5, window_bounds = array<i64: 4, 8, 256>}, {transform_indices = @transform_6, window_bounds = array<i64: 4, 16, 256>}]} {
    %cst = arith.constant 0.000000e+00 : f32
    %0 = vector.broadcast %cst : f32 to vector<8x256xf32>
    %c0 = arith.constant 0 : index
    %c0_0 = arith.constant 0 : index
    %1 = vector.load %arg8[%c0, %c0_0] : memref<8x256xf32, #tpu.memory_space<vmem>>, vector<8x256xf32>
    tpu.vector_store %arg8[%c0, %c0_0], %0 {strides = array<i32>} : memref<8x256xf32, #tpu.memory_space<vmem>>, vector<8x256xf32>,
    %2 = tpu.iota {dimensions = array<i32: 0>} : vector<8x256xi32>
    %c0_i32 = arith.constant 0 : i32
    %3 = vector.broadcast %c0_i32 : i32 to vector<8x256xi32>
    %4 = arith.cmpi eq, %2, %3 : vector<8x256xi32>
    %5 = arith.extui %4 : vector<8x256xi1> to vector<8x256xi32>
    %6 = arith.sitofp %5 : vector<8x256xi32> to vector<8x256xf32>
    %c72 = arith.constant 72 : index
    %c0_1 = arith.constant 0 : index
    %7 = vector.load %arg9[%c72, %c0_1] : memref<80x256xf32, #tpu.memory_space<vmem>>, vector<8x256xf32>
    tpu.vector_store %arg9[%c72, %c0_1], %6 {strides = array<i32>} : memref<80x256xf32, #tpu.memory_space<vmem>>, vector<8x256xf32>,
    %8 = tpu.iota {dimensions = array<i32: 0>} : vector<8x256xi32>
    %c0_i32_2 = arith.constant 0 : i32
    %9 = vector.broadcast %c0_i32_2 : i32 to vector<8x256xi32>
    %10 = arith.cmpi eq, %8, %9 : vector<8x256xi32>
    %11 = arith.extui %10 : vector<8x256xi1> to vector<8x256xi32>
    %12 = arith.sitofp %11 : vector<8x256xi32> to vector<8x256xf32>
    %c72_3 = arith.constant 72 : index
    %c0_4 = arith.constant 0 : index
    %13 = vector.load %arg10[%c72_3, %c0_4] : memref<80x256xf32, #tpu.memory_space<vmem>>, vector<8x256xf32>
    tpu.vector_store %arg10[%c72_3, %c0_4], %12 {strides = array<i32>} : memref<80x256xf32, #tpu.memory_space<vmem>>, vector<8x256xf32>,
    %c0_5 = arith.constant 0 : index
    %c0_6 = arith.constant 0 : index
    %c0_7 = arith.constant 0 : index
    %14 = vector.load %arg1[%c0_5, %c0_6, %c0_7] : memref<4x4x256xf32, #tpu.memory_space<vmem>>, vector<1x4x256xf32>
    %15 = vector.shape_cast %14 : vector<1x4x256xf32> to vector<4x256xf32>
    %c0_8 = arith.constant 0 : index
    %c0_9 = arith.constant 0 : index
    %16 = vector.load %arg8[%c0_8, %c0_9] : memref<8x256xf32, #tpu.memory_space<vmem>>, vector<4x256xf32>
    tpu.vector_store %arg8[%c0_8, %c0_9], %15 {strides = array<i32>} : memref<8x256xf32, #tpu.memory_space<vmem>>, vector<4x256xf32>,
    %c0_10 = arith.constant 0 : index
    %c0_11 = arith.constant 0 : index
    %17 = vector.load %arg8[%c0_10, %c0_11] : memref<8x256xf32, #tpu.memory_space<vmem>>, vector<8x256xf32>
    %18 = vector.extract_strided_slice %17 {offsets = [0, 239], sizes = [8, 17], strides = [1, 1]} : vector<8x256xf32> to vector<8x17xf32>
    %19 = vector.extract_strided_slice %17 {offsets = [0, 0], sizes = [8, 239], strides = [1, 1]} : vector<8x256xf32> to vector<8x239xf32>
    %20 = tpu.concatenate %18, %19 in 1 : vector<8x17xf32>, vector<8x239xf32> -> vector<8x256xf32>
    %c0_12 = arith.constant 0 : index
    %c0_13 = arith.constant 0 : index
    %21 = vector.load %arg4[%c0_12, %c0_13] : memref<9x256xf32, #tpu.memory_space<vmem>>, vector<1x256xf32>
    %22 = vector.broadcast %21 : vector<1x256xf32> to vector<8x256xf32>
    %23 = arith.mulf %20, %22 : vector<8x256xf32>
    %c0_14 = arith.constant 0 : index
    %c0_15 = arith.constant 0 : index
    %24 = vector.load %arg9[%c0_14, %c0_15] : memref<80x256xf32, #tpu.memory_space<vmem>>, vector<8x256xf32>
    tpu.vector_store %arg9[%c0_14, %c0_15], %23 {strides = array<i32>} : memref<80x256xf32, #tpu.memory_space<vmem>>, vector<8x256xf32>,
    %25 = vector.extract_strided_slice %17 {offsets = [0, 240], sizes = [8, 16], strides = [1, 1]} : vector<8x256xf32> to vector<8x16xf32>
    %26 = vector.extract_strided_slice %17 {offsets = [0, 0], sizes = [8, 240], strides = [1, 1]} : vector<8x256xf32> to vector<8x240xf32>
    %27 = tpu.concatenate %25, %26 in 1 : vector<8x16xf32>, vector<8x240xf32> -> vector<8x256xf32>
    %c1 = arith.constant 1 : index
    %c0_16 = arith.constant 0 : index
    %28 = vector.load %arg4[%c1, %c0_16] : memref<9x256xf32, #tpu.memory_space<vmem>>, vector<1x256xf32>
    %29 = vector.broadcast %28 : vector<1x256xf32> to vector<8x256xf32>
    %30 = arith.mulf %27, %29 : vector<8x256xf32>
    %c8 = arith.constant 8 : index
    %c0_17 = arith.constant 0 : index
    %31 = vector.load %arg9[%c8, %c0_17] : memref<80x256xf32, #tpu.memory_space<vmem>>, vector<8x256xf32>
    tpu.vector_store %arg9[%c8, %c0_17], %30 {strides = array<i32>} : memref<80x256xf32, #tpu.memory_space<vmem>>, vector<8x256xf32>,
    %32 = vector.extract_strided_slice %17 {offsets = [0, 241], sizes = [8, 15], strides = [1, 1]} : vector<8x256xf32> to vector<8x15xf32>
    %33 = vector.extract_strided_slice %17 {offsets = [0, 0], sizes = [8, 241], strides = [1, 1]} : vector<8x256xf32> to vector<8x241xf32>
    %34 = tpu.concatenate %32, %33 in 1 : vector<8x15xf32>, vector<8x241xf32> -> vector<8x256xf32>
    %c2 = arith.constant 2 : index
    %c0_18 = arith.constant 0 : index
    %35 = vector.load %arg4[%c2, %c0_18] : memref<9x256xf32, #tpu.memory_space<vmem>>, vector<1x256xf32>
    %36 = vector.broadcast %35 : vector<1x256xf32> to vector<8x256xf32>
    %37 = arith.mulf %34, %36 : vector<8x256xf32>
    %c16 = arith.constant 16 : index
    %c0_19 = arith.constant 0 : index
    %38 = vector.load %arg9[%c16, %c0_19] : memref<80x256xf32, #tpu.memory_space<vmem>>, vector<8x256xf32>
    tpu.vector_store %arg9[%c16, %c0_19], %37 {strides = array<i32>} : memref<80x256xf32, #tpu.memory_space<vmem>>, vector<8x256xf32>,
    %39 = vector.extract_strided_slice %17 {offsets = [0, 255], sizes = [8, 1], strides = [1, 1]} : vector<8x256xf32> to vector<8x1xf32>
    %40 = vector.extract_strided_slice %17 {offsets = [0, 0], sizes = [8, 255], strides = [1, 1]} : vector<8x256xf32> to vector<8x255xf32>
    %41 = tpu.concatenate %39, %40 in 1 : vector<8x1xf32>, vector<8x255xf32> -> vector<8x256xf32>
    %c3 = arith.constant 3 : index
    %c0_20 = arith.constant 0 : index
    %42 = vector.load %arg4[%c3, %c0_20] : memref<9x256xf32, #tpu.memory_space<vmem>>, vector<1x256xf32>
    %43 = vector.broadcast %42 : vector<1x256xf32> to vector<8x256xf32>
    %44 = arith.mulf %41, %43 : vector<8x256xf32>
    %c24 = arith.constant 24 : index
    %c0_21 = arith.constant 0 : index
    %45 = vector.load %arg9[%c24, %c0_21] : memref<80x256xf32, #tpu.memory_space<vmem>>, vector<8x256xf32>
    tpu.vector_store %arg9[%c24, %c0_21], %44 {strides = array<i32>} : memref<80x256xf32, #tpu.memory_space<vmem>>, vector<8x256xf32>,
    %c32 = arith.constant 32 : index
    %c0_22 = arith.constant 0 : index
    %46 = vector.load %arg9[%c32, %c0_22] : memref<80x256xf32, #tpu.memory_space<vmem>>, vector<8x256xf32>
    tpu.vector_store %arg9[%c32, %c0_22], %17 {strides = array<i32>} : memref<80x256xf32, #tpu.memory_space<vmem>>, vector<8x256xf32>,
    %47 = vector.extract_strided_slice %17 {offsets = [0, 1], sizes = [8, 255], strides = [1, 1]} : vector<8x256xf32> to vector<8x255xf32>
    %48 = vector.extract_strided_slice %17 {offsets = [0, 0], sizes = [8, 1], strides = [1, 1]} : vector<8x256xf32> to vector<8x1xf32>
    %49 = tpu.concatenate %47, %48 in 1 : vector<8x255xf32>, vector<8x1xf32> -> vector<8x256xf32>
    %c5 = arith.constant 5 : index
    %c0_23 = arith.constant 0 : index
    %50 = vector.load %arg4[%c5, %c0_23] : memref<9x256xf32, #tpu.memory_space<vmem>>, vector<1x256xf32>
    %51 = vector.broadcast %50 : vector<1x256xf32> to vector<8x256xf32>
    %52 = arith.mulf %49, %51 : vector<8x256xf32>
    %c40 = arith.constant 40 : index
    %c0_24 = arith.constant 0 : index
    %53 = vector.load %arg9[%c40, %c0_24] : memref<80x256xf32, #tpu.memory_space<vmem>>, vector<8x256xf32>
    tpu.vector_store %arg9[%c40, %c0_24], %52 {strides = array<i32>} : memref<80x256xf32, #tpu.memory_space<vmem>>, vector<8x256xf32>,
    %54 = vector.extract_strided_slice %17 {offsets = [0, 15], sizes = [8, 241], strides = [1, 1]} : vector<8x256xf32> to vector<8x241xf32>
    %55 = vector.extract_strided_slice %17 {offsets = [0, 0], sizes = [8, 15], strides = [1, 1]} : vector<8x256xf32> to vector<8x15xf32>
    %56 = tpu.concatenate %54, %55 in 1 : vector<8x241xf32>, vector<8x15xf32> -> vector<8x256xf32>
    %c6 = arith.constant 6 : index
    %c0_25 = arith.constant 0 : index
    %57 = vector.load %arg4[%c6, %c0_25] : memref<9x256xf32, #tpu.memory_space<vmem>>, vector<1x256xf32>
    %58 = vector.broadcast %57 : vector<1x256xf32> to vector<8x256xf32>
    %59 = arith.mulf %56, %58 : vector<8x256xf32>
    %c48 = arith.constant 48 : index
    %c0_26 = arith.constant 0 : index
    %60 = vector.load %arg9[%c48, %c0_26] : memref<80x256xf32, #tpu.memory_space<vmem>>, vector<8x256xf32>
    tpu.vector_store %arg9[%c48, %c0_26], %59 {strides = array<i32>} : memref<80x256xf32, #tpu.memory_space<vmem>>, vector<8x256xf32>,
    %61 = vector.extract_strided_slice %17 {offsets = [0, 16], sizes = [8, 240], strides = [1, 1]} : vector<8x256xf32> to vector<8x240xf32>
    %62 = vector.extract_strided_slice %17 {offsets = [0, 0], sizes = [8, 16], strides = [1, 1]} : vector<8x256xf32> to vector<8x16xf32>
    %63 = tpu.concatenate %61, %62 in 1 : vector<8x240xf32>, vector<8x16xf32> -> vector<8x256xf32>
    %c7 = arith.constant 7 : index
    %c0_27 = arith.constant 0 : index
    %64 = vector.load %arg4[%c7, %c0_27] : memref<9x256xf32, #tpu.memory_space<vmem>>, vector<1x256xf32>
    %65 = vector.broadcast %64 : vector<1x256xf32> to vector<8x256xf32>
    %66 = arith.mulf %63, %65 : vector<8x256xf32>
    %c56 = arith.constant 56 : index
    %c0_28 = arith.constant 0 : index
    %67 = vector.load %arg9[%c56, %c0_28] : memref<80x256xf32, #tpu.memory_space<vmem>>, vector<8x256xf32>
    tpu.vector_store %arg9[%c56, %c0_28], %66 {strides = array<i32>} : memref<80x256xf32, #tpu.memory_space<vmem>>, vector<8x256xf32>,
    %68 = vector.extract_strided_slice %17 {offsets = [0, 17], sizes = [8, 239], strides = [1, 1]} : vector<8x256xf32> to vector<8x239xf32>
    %69 = vector.extract_strided_slice %17 {offsets = [0, 0], sizes = [8, 17], strides = [1, 1]} : vector<8x256xf32> to vector<8x17xf32>
    %70 = tpu.concatenate %68, %69 in 1 : vector<8x239xf32>, vector<8x17xf32> -> vector<8x256xf32>
    %c8_29 = arith.constant 8 : index
    %c0_30 = arith.constant 0 : index
    %71 = vector.load %arg4[%c8_29, %c0_30] : memref<9x256xf32, #tpu.memory_space<vmem>>, vector<1x256xf32>
    %72 = vector.broadcast %71 : vector<1x256xf32> to vector<8x256xf32>
    %73 = arith.mulf %70, %72 : vector<8x256xf32>
    %c64 = arith.constant 64 : index
    %c0_31 = arith.constant 0 : index
    %74 = vector.load %arg9[%c64, %c0_31] : memref<80x256xf32, #tpu.memory_space<vmem>>, vector<8x256xf32>
    tpu.vector_store %arg9[%c64, %c0_31], %73 {strides = array<i32>} : memref<80x256xf32, #tpu.memory_space<vmem>>, vector<8x256xf32>,
    %c0_32 = arith.constant 0 : index
    %c0_33 = arith.constant 0 : index
    %75 = vector.load %arg2[%c0_32, %c0_33] : memref<8x80xf32, #tpu.memory_space<vmem>>, vector<8x80xf32>
    %c0_34 = arith.constant 0 : index
    %c0_35 = arith.constant 0 : index
    %76 = vector.load %arg9[%c0_34, %c0_35] : memref<80x256xf32, #tpu.memory_space<vmem>>, vector<80x256xf32>
    %cst_36 = arith.constant dense<0.000000e+00> : vector<8x256xf32>
    %77 = tpu.matmul %75, %76, %cst_36 {dimension_numbers = #tpu.dot_dimension_numbers<[1], [0], [0], [1], [0, 0, 1, 1], [], []>} : vector<8x80xf32>, vector<80x256xf32>, vector<8x256xf32> -> vector<8x256xf32>
    %cst_37 = arith.constant 0.000000e+00 : f32
    %78 = vector.broadcast %cst_37 : f32 to vector<8x256xf32>
    %79 = arith.maximumf %77, %78 : vector<8x256xf32>
    %80 = vector.extract_strided_slice %79 {offsets = [0, 239], sizes = [8, 17], strides = [1, 1]} : vector<8x256xf32> to vector<8x17xf32>
    %81 = vector.extract_strided_slice %79 {offsets = [0, 0], sizes = [8, 239], strides = [1, 1]} : vector<8x256xf32> to vector<8x239xf32>
    %82 = tpu.concatenate %80, %81 in 1 : vector<8x17xf32>, vector<8x239xf32> -> vector<8x256xf32>
    %c0_38 = arith.constant 0 : index
    %c0_39 = arith.constant 0 : index
    %83 = vector.load %arg4[%c0_38, %c0_39] : memref<9x256xf32, #tpu.memory_space<vmem>>, vector<1x256xf32>
    %84 = vector.broadcast %83 : vector<1x256xf32> to vector<8x256xf32>
    %85 = arith.mulf %82, %84 : vector<8x256xf32>
    %c0_40 = arith.constant 0 : index
    %c0_41 = arith.constant 0 : index
    %86 = vector.load %arg10[%c0_40, %c0_41] : memref<80x256xf32, #tpu.memory_space<vmem>>, vector<8x256xf32>
    tpu.vector_store %arg10[%c0_40, %c0_41], %85 {strides = array<i32>} : memref<80x256xf32, #tpu.memory_space<vmem>>, vector<8x256xf32>,
    %87 = vector.extract_strided_slice %79 {offsets = [0, 240], sizes = [8, 16], strides = [1, 1]} : vector<8x256xf32> to vector<8x16xf32>
    %88 = vector.extract_strided_slice %79 {offsets = [0, 0], sizes = [8, 240], strides = [1, 1]} : vector<8x256xf32> to vector<8x240xf32>
    %89 = tpu.concatenate %87, %88 in 1 : vector<8x16xf32>, vector<8x240xf32> -> vector<8x256xf32>
    %c1_42 = arith.constant 1 : index
    %c0_43 = arith.constant 0 : index
    %90 = vector.load %arg4[%c1_42, %c0_43] : memref<9x256xf32, #tpu.memory_space<vmem>>, vector<1x256xf32>
    %91 = vector.broadcast %90 : vector<1x256xf32> to vector<8x256xf32>
    %92 = arith.mulf %89, %91 : vector<8x256xf32>
    %c8_44 = arith.constant 8 : index
    %c0_45 = arith.constant 0 : index
    %93 = vector.load %arg10[%c8_44, %c0_45] : memref<80x256xf32, #tpu.memory_space<vmem>>, vector<8x256xf32>
    tpu.vector_store %arg10[%c8_44, %c0_45], %92 {strides = array<i32>} : memref<80x256xf32, #tpu.memory_space<vmem>>, vector<8x256xf32>,
    %94 = vector.extract_strided_slice %79 {offsets = [0, 241], sizes = [8, 15], strides = [1, 1]} : vector<8x256xf32> to vector<8x15xf32>
    %95 = vector.extract_strided_slice %79 {offsets = [0, 0], sizes = [8, 241], strides = [1, 1]} : vector<8x256xf32> to vector<8x241xf32>
    %96 = tpu.concatenate %94, %95 in 1 : vector<8x15xf32>, vector<8x241xf32> -> vector<8x256xf32>
    %c2_46 = arith.constant 2 : index
    %c0_47 = arith.constant 0 : index
    %97 = vector.load %arg4[%c2_46, %c0_47] : memref<9x256xf32, #tpu.memory_space<vmem>>, vector<1x256xf32>
    %98 = vector.broadcast %97 : vector<1x256xf32> to vector<8x256xf32>
    %99 = arith.mulf %96, %98 : vector<8x256xf32>
    %c16_48 = arith.constant 16 : index
    %c0_49 = arith.constant 0 : index
    %100 = vector.load %arg10[%c16_48, %c0_49] : memref<80x256xf32, #tpu.memory_space<vmem>>, vector<8x256xf32>
    tpu.vector_store %arg10[%c16_48, %c0_49], %99 {strides = array<i32>} : memref<80x256xf32, #tpu.memory_space<vmem>>, vector<8x256xf32>,
    %101 = vector.extract_strided_slice %79 {offsets = [0, 255], sizes = [8, 1], strides = [1, 1]} : vector<8x256xf32> to vector<8x1xf32>
    %102 = vector.extract_strided_slice %79 {offsets = [0, 0], sizes = [8, 255], strides = [1, 1]} : vector<8x256xf32> to vector<8x255xf32>
    %103 = tpu.concatenate %101, %102 in 1 : vector<8x1xf32>, vector<8x255xf32> -> vector<8x256xf32>
    %c3_50 = arith.constant 3 : index
    %c0_51 = arith.constant 0 : index
    %104 = vector.load %arg4[%c3_50, %c0_51] : memref<9x256xf32, #tpu.memory_space<vmem>>, vector<1x256xf32>
    %105 = vector.broadcast %104 : vector<1x256xf32> to vector<8x256xf32>
    %106 = arith.mulf %103, %105 : vector<8x256xf32>
    %c24_52 = arith.constant 24 : index
    %c0_53 = arith.constant 0 : index
    %107 = vector.load %arg10[%c24_52, %c0_53] : memref<80x256xf32, #tpu.memory_space<vmem>>, vector<8x256xf32>
    tpu.vector_store %arg10[%c24_52, %c0_53], %106 {strides = array<i32>} : memref<80x256xf32, #tpu.memory_space<vmem>>, vector<8x256xf32>,
    %c32_54 = arith.constant 32 : index
    %c0_55 = arith.constant 0 : index
    %108 = vector.load %arg10[%c32_54, %c0_55] : memref<80x256xf32, #tpu.memory_space<vmem>>, vector<8x256xf32>
    tpu.vector_store %arg10[%c32_54, %c0_55], %79 {strides = array<i32>} : memref<80x256xf32, #tpu.memory_space<vmem>>, vector<8x256xf32>,
    %109 = vector.extract_strided_slice %79 {offsets = [0, 1], sizes = [8, 255], strides = [1, 1]} : vector<8x256xf32> to vector<8x255xf32>
    %110 = vector.extract_strided_slice %79 {offsets = [0, 0], sizes = [8, 1], strides = [1, 1]} : vector<8x256xf32> to vector<8x1xf32>
    %111 = tpu.concatenate %109, %110 in 1 : vector<8x255xf32>, vector<8x1xf32> -> vector<8x256xf32>
    %c5_56 = arith.constant 5 : index
    %c0_57 = arith.constant 0 : index
    %112 = vector.load %arg4[%c5_56, %c0_57] : memref<9x256xf32, #tpu.memory_space<vmem>>, vector<1x256xf32>
    %113 = vector.broadcast %112 : vector<1x256xf32> to vector<8x256xf32>
    %114 = arith.mulf %111, %113 : vector<8x256xf32>
    %c40_58 = arith.constant 40 : index
    %c0_59 = arith.constant 0 : index
    %115 = vector.load %arg10[%c40_58, %c0_59] : memref<80x256xf32, #tpu.memory_space<vmem>>, vector<8x256xf32>
    tpu.vector_store %arg10[%c40_58, %c0_59], %114 {strides = array<i32>} : memref<80x256xf32, #tpu.memory_space<vmem>>, vector<8x256xf32>,
    %116 = vector.extract_strided_slice %79 {offsets = [0, 15], sizes = [8, 241], strides = [1, 1]} : vector<8x256xf32> to vector<8x241xf32>
    %117 = vector.extract_strided_slice %79 {offsets = [0, 0], sizes = [8, 15], strides = [1, 1]} : vector<8x256xf32> to vector<8x15xf32>
    %118 = tpu.concatenate %116, %117 in 1 : vector<8x241xf32>, vector<8x15xf32> -> vector<8x256xf32>
    %c6_60 = arith.constant 6 : index
    %c0_61 = arith.constant 0 : index
    %119 = vector.load %arg4[%c6_60, %c0_61] : memref<9x256xf32, #tpu.memory_space<vmem>>, vector<1x256xf32>
    %120 = vector.broadcast %119 : vector<1x256xf32> to vector<8x256xf32>
    %121 = arith.mulf %118, %120 : vector<8x256xf32>
    %c48_62 = arith.constant 48 : index
    %c0_63 = arith.constant 0 : index
    %122 = vector.load %arg10[%c48_62, %c0_63] : memref<80x256xf32, #tpu.memory_space<vmem>>, vector<8x256xf32>
    tpu.vector_store %arg10[%c48_62, %c0_63], %121 {strides = array<i32>} : memref<80x256xf32, #tpu.memory_space<vmem>>, vector<8x256xf32>,
    %123 = vector.extract_strided_slice %79 {offsets = [0, 16], sizes = [8, 240], strides = [1, 1]} : vector<8x256xf32> to vector<8x240xf32>
    %124 = vector.extract_strided_slice %79 {offsets = [0, 0], sizes = [8, 16], strides = [1, 1]} : vector<8x256xf32> to vector<8x16xf32>
    %125 = tpu.concatenate %123, %124 in 1 : vector<8x240xf32>, vector<8x16xf32> -> vector<8x256xf32>
    %c7_64 = arith.constant 7 : index
    %c0_65 = arith.constant 0 : index
    %126 = vector.load %arg4[%c7_64, %c0_65] : memref<9x256xf32, #tpu.memory_space<vmem>>, vector<1x256xf32>
    %127 = vector.broadcast %126 : vector<1x256xf32> to vector<8x256xf32>
    %128 = arith.mulf %125, %127 : vector<8x256xf32>
    %c56_66 = arith.constant 56 : index
    %c0_67 = arith.constant 0 : index
    %129 = vector.load %arg10[%c56_66, %c0_67] : memref<80x256xf32, #tpu.memory_space<vmem>>, vector<8x256xf32>
    tpu.vector_store %arg10[%c56_66, %c0_67], %128 {strides = array<i32>} : memref<80x256xf32, #tpu.memory_space<vmem>>, vector<8x256xf32>,
    %130 = vector.extract_strided_slice %79 {offsets = [0, 17], sizes = [8, 239], strides = [1, 1]} : vector<8x256xf32> to vector<8x239xf32>
    %131 = vector.extract_strided_slice %79 {offsets = [0, 0], sizes = [8, 17], strides = [1, 1]} : vector<8x256xf32> to vector<8x17xf32>
    %132 = tpu.concatenate %130, %131 in 1 : vector<8x239xf32>, vector<8x17xf32> -> vector<8x256xf32>
    %c8_68 = arith.constant 8 : index
    %c0_69 = arith.constant 0 : index
    %133 = vector.load %arg4[%c8_68, %c0_69] : memref<9x256xf32, #tpu.memory_space<vmem>>, vector<1x256xf32>
    %134 = vector.broadcast %133 : vector<1x256xf32> to vector<8x256xf32>
    %135 = arith.mulf %132, %134 : vector<8x256xf32>
    %c64_70 = arith.constant 64 : index
    %c0_71 = arith.constant 0 : index
    %136 = vector.load %arg10[%c64_70, %c0_71] : memref<80x256xf32, #tpu.memory_space<vmem>>, vector<8x256xf32>
    tpu.vector_store %arg10[%c64_70, %c0_71], %135 {strides = array<i32>} : memref<80x256xf32, #tpu.memory_space<vmem>>, vector<8x256xf32>,
    %c0_72 = arith.constant 0 : index
    %c0_73 = arith.constant 0 : index
    %137 = vector.load %arg3[%c0_72, %c0_73] : memref<16x80xf32, #tpu.memory_space<vmem>>, vector<16x80xf32>
    %c0_74 = arith.constant 0 : index
    %c0_75 = arith.constant 0 : index
    %138 = vector.load %arg10[%c0_74, %c0_75] : memref<80x256xf32, #tpu.memory_space<vmem>>, vector<80x256xf32>
    %cst_76 = arith.constant dense<0.000000e+00> : vector<16x256xf32>
    %139 = tpu.matmul %137, %138, %cst_76 {dimension_numbers = #tpu.dot_dimension_numbers<[1], [0], [0], [1], [0, 0, 1, 1], [], []>} : vector<16x80xf32>, vector<80x256xf32>, vector<16x256xf32> -> vector<16x256xf32>
    %c0_77 = arith.constant 0 : index
    %c0_78 = arith.constant 0 : index
    %c0_79 = arith.constant 0 : index
    %140 = vector.load %arg5[%c0_77, %c0_78, %c0_79] : memref<4x8x256xf32, #tpu.memory_space<vmem>>, vector<1x8x256xf32>
    %141 = vector.shape_cast %140 : vector<1x8x256xf32> to vector<8x256xf32>
    %142 = vector.shape_cast %77 : vector<8x256xf32> to vector<1x8x256xf32>
    tpu.vector_store %arg5[%c0_77, %c0_78, %c0_79], %142 {strides = array<i32>} : memref<4x8x256xf32, #tpu.memory_space<vmem>>, vector<1x8x256xf32>,
    %c0_80 = arith.constant 0 : index
    %c0_81 = arith.constant 0 : index
    %c0_82 = arith.constant 0 : index
    %143 = vector.load %arg6[%c0_80, %c0_81, %c0_82] : memref<4x8x256xf32, #tpu.memory_space<vmem>>, vector<1x8x256xf32>
    %144 = vector.shape_cast %143 : vector<1x8x256xf32> to vector<8x256xf32>
    %145 = vector.shape_cast %79 : vector<8x256xf32> to vector<1x8x256xf32>
    tpu.vector_store %arg6[%c0_80, %c0_81, %c0_82], %145 {strides = array<i32>} : memref<4x8x256xf32, #tpu.memory_space<vmem>>, vector<1x8x256xf32>,
    %c0_83 = arith.constant 0 : index
    %c0_84 = arith.constant 0 : index
    %c0_85 = arith.constant 0 : index
    %146 = vector.load %arg7[%c0_83, %c0_84, %c0_85] : memref<4x16x256xf32, #tpu.memory_space<vmem>>, vector<1x16x256xf32>
    %147 = vector.shape_cast %146 : vector<1x16x256xf32> to vector<16x256xf32>
    %148 = vector.shape_cast %139 : vector<16x256xf32> to vector<1x16x256xf32>
    tpu.vector_store %arg7[%c0_83, %c0_84, %c0_85], %148 {strides = array<i32>} : memref<4x16x256xf32, #tpu.memory_space<vmem>>, vector<1x16x256xf32>,
    %c1_86 = arith.constant 1 : index
    %c0_87 = arith.constant 0 : index
    %c0_88 = arith.constant 0 : index
    %149 = vector.load %arg1[%c1_86, %c0_87, %c0_88] : memref<4x4x256xf32, #tpu.memory_space<vmem>>, vector<1x4x256xf32>
    %150 = vector.shape_cast %149 : vector<1x4x256xf32> to vector<4x256xf32>
    %c0_89 = arith.constant 0 : index
    %c0_90 = arith.constant 0 : index
    %151 = vector.load %arg8[%c0_89, %c0_90] : memref<8x256xf32, #tpu.memory_space<vmem>>, vector<4x256xf32>
    tpu.vector_store %arg8[%c0_89, %c0_90], %150 {strides = array<i32>} : memref<8x256xf32, #tpu.memory_space<vmem>>, vector<4x256xf32>,
    %c0_91 = arith.constant 0 : index
    %c0_92 = arith.constant 0 : index
    %152 = vector.load %arg8[%c0_91, %c0_92] : memref<8x256xf32, #tpu.memory_space<vmem>>, vector<8x256xf32>
    %153 = vector.extract_strided_slice %152 {offsets = [0, 239], sizes = [8, 17], strides = [1, 1]} : vector<8x256xf32> to vector<8x17xf32>
    %154 = vector.extract_strided_slice %152 {offsets = [0, 0], sizes = [8, 239], strides = [1, 1]} : vector<8x256xf32> to vector<8x239xf32>
    %155 = tpu.concatenate %153, %154 in 1 : vector<8x17xf32>, vector<8x239xf32> -> vector<8x256xf32>
    %c0_93 = arith.constant 0 : index
    %c0_94 = arith.constant 0 : index
    %156 = vector.load %arg4[%c0_93, %c0_94] : memref<9x256xf32, #tpu.memory_space<vmem>>, vector<1x256xf32>
    %157 = vector.broadcast %156 : vector<1x256xf32> to vector<8x256xf32>
    %158 = arith.mulf %155, %157 : vector<8x256xf32>
    %c0_95 = arith.constant 0 : index
    %c0_96 = arith.constant 0 : index
    %159 = vector.load %arg9[%c0_95, %c0_96] : memref<80x256xf32, #tpu.memory_space<vmem>>, vector<8x256xf32>
    tpu.vector_store %arg9[%c0_95, %c0_96], %158 {strides = array<i32>} : memref<80x256xf32, #tpu.memory_space<vmem>>, vector<8x256xf32>,
    %160 = vector.extract_strided_slice %152 {offsets = [0, 240], sizes = [8, 16], strides = [1, 1]} : vector<8x256xf32> to vector<8x16xf32>
    %161 = vector.extract_strided_slice %152 {offsets = [0, 0], sizes = [8, 240], strides = [1, 1]} : vector<8x256xf32> to vector<8x240xf32>
    %162 = tpu.concatenate %160, %161 in 1 : vector<8x16xf32>, vector<8x240xf32> -> vector<8x256xf32>
    %c1_97 = arith.constant 1 : index
    %c0_98 = arith.constant 0 : index
    %163 = vector.load %arg4[%c1_97, %c0_98] : memref<9x256xf32, #tpu.memory_space<vmem>>, vector<1x256xf32>
    %164 = vector.broadcast %163 : vector<1x256xf32> to vector<8x256xf32>
    %165 = arith.mulf %162, %164 : vector<8x256xf32>
    %c8_99 = arith.constant 8 : index
    %c0_100 = arith.constant 0 : index
    %166 = vector.load %arg9[%c8_99, %c0_100] : memref<80x256xf32, #tpu.memory_space<vmem>>, vector<8x256xf32>
    tpu.vector_store %arg9[%c8_99, %c0_100], %165 {strides = array<i32>} : memref<80x256xf32, #tpu.memory_space<vmem>>, vector<8x256xf32>,
    %167 = vector.extract_strided_slice %152 {offsets = [0, 241], sizes = [8, 15], strides = [1, 1]} : vector<8x256xf32> to vector<8x15xf32>
    %168 = vector.extract_strided_slice %152 {offsets = [0, 0], sizes = [8, 241], strides = [1, 1]} : vector<8x256xf32> to vector<8x241xf32>
    %169 = tpu.concatenate %167, %168 in 1 : vector<8x15xf32>, vector<8x241xf32> -> vector<8x256xf32>
    %c2_101 = arith.constant 2 : index
    %c0_102 = arith.constant 0 : index
    %170 = vector.load %arg4[%c2_101, %c0_102] : memref<9x256xf32, #tpu.memory_space<vmem>>, vector<1x256xf32>
    %171 = vector.broadcast %170 : vector<1x256xf32> to vector<8x256xf32>
    %172 = arith.mulf %169, %171 : vector<8x256xf32>
    %c16_103 = arith.constant 16 : index
    %c0_104 = arith.constant 0 : index
    %173 = vector.load %arg9[%c16_103, %c0_104] : memref<80x256xf32, #tpu.memory_space<vmem>>, vector<8x256xf32>
    tpu.vector_store %arg9[%c16_103, %c0_104], %172 {strides = array<i32>} : memref<80x256xf32, #tpu.memory_space<vmem>>, vector<8x256xf32>,
    %174 = vector.extract_strided_slice %152 {offsets = [0, 255], sizes = [8, 1], strides = [1, 1]} : vector<8x256xf32> to vector<8x1xf32>
    %175 = vector.extract_strided_slice %152 {offsets = [0, 0], sizes = [8, 255], strides = [1, 1]} : vector<8x256xf32> to vector<8x255xf32>
    %176 = tpu.concatenate %174, %175 in 1 : vector<8x1xf32>, vector<8x255xf32> -> vector<8x256xf32>
    %c3_105 = arith.constant 3 : index
    %c0_106 = arith.constant 0 : index
    %177 = vector.load %arg4[%c3_105, %c0_106] : memref<9x256xf32, #tpu.memory_space<vmem>>, vector<1x256xf32>
    %178 = vector.broadcast %177 : vector<1x256xf32> to vector<8x256xf32>
    %179 = arith.mulf %176, %178 : vector<8x256xf32>
    %c24_107 = arith.constant 24 : index
    %c0_108 = arith.constant 0 : index
    %180 = vector.load %arg9[%c24_107, %c0_108] : memref<80x256xf32, #tpu.memory_space<vmem>>, vector<8x256xf32>
    tpu.vector_store %arg9[%c24_107, %c0_108], %179 {strides = array<i32>} : memref<80x256xf32, #tpu.memory_space<vmem>>, vector<8x256xf32>,
    %c32_109 = arith.constant 32 : index
    %c0_110 = arith.constant 0 : index
    %181 = vector.load %arg9[%c32_109, %c0_110] : memref<80x256xf32, #tpu.memory_space<vmem>>, vector<8x256xf32>
    tpu.vector_store %arg9[%c32_109, %c0_110], %152 {strides = array<i32>} : memref<80x256xf32, #tpu.memory_space<vmem>>, vector<8x256xf32>,
    %182 = vector.extract_strided_slice %152 {offsets = [0, 1], sizes = [8, 255], strides = [1, 1]} : vector<8x256xf32> to vector<8x255xf32>
    %183 = vector.extract_strided_slice %152 {offsets = [0, 0], sizes = [8, 1], strides = [1, 1]} : vector<8x256xf32> to vector<8x1xf32>
    %184 = tpu.concatenate %182, %183 in 1 : vector<8x255xf32>, vector<8x1xf32> -> vector<8x256xf32>
    %c5_111 = arith.constant 5 : index
    %c0_112 = arith.constant 0 : index
    %185 = vector.load %arg4[%c5_111, %c0_112] : memref<9x256xf32, #tpu.memory_space<vmem>>, vector<1x256xf32>
    %186 = vector.broadcast %185 : vector<1x256xf32> to vector<8x256xf32>
    %187 = arith.mulf %184, %186 : vector<8x256xf32>
    %c40_113 = arith.constant 40 : index
    %c0_114 = arith.constant 0 : index
    %188 = vector.load %arg9[%c40_113, %c0_114] : memref<80x256xf32, #tpu.memory_space<vmem>>, vector<8x256xf32>
    tpu.vector_store %arg9[%c40_113, %c0_114], %187 {strides = array<i32>} : memref<80x256xf32, #tpu.memory_space<vmem>>, vector<8x256xf32>,
    %189 = vector.extract_strided_slice %152 {offsets = [0, 15], sizes = [8, 241], strides = [1, 1]} : vector<8x256xf32> to vector<8x241xf32>
    %190 = vector.extract_strided_slice %152 {offsets = [0, 0], sizes = [8, 15], strides = [1, 1]} : vector<8x256xf32> to vector<8x15xf32>
    %191 = tpu.concatenate %189, %190 in 1 : vector<8x241xf32>, vector<8x15xf32> -> vector<8x256xf32>
    %c6_115 = arith.constant 6 : index
    %c0_116 = arith.constant 0 : index
    %192 = vector.load %arg4[%c6_115, %c0_116] : memref<9x256xf32, #tpu.memory_space<vmem>>, vector<1x256xf32>
    %193 = vector.broadcast %192 : vector<1x256xf32> to vector<8x256xf32>
    %194 = arith.mulf %191, %193 : vector<8x256xf32>
    %c48_117 = arith.constant 48 : index
    %c0_118 = arith.constant 0 : index
    %195 = vector.load %arg9[%c48_117, %c0_118] : memref<80x256xf32, #tpu.memory_space<vmem>>, vector<8x256xf32>
    tpu.vector_store %arg9[%c48_117, %c0_118], %194 {strides = array<i32>} : memref<80x256xf32, #tpu.memory_space<vmem>>, vector<8x256xf32>,
    %196 = vector.extract_strided_slice %152 {offsets = [0, 16], sizes = [8, 240], strides = [1, 1]} : vector<8x256xf32> to vector<8x240xf32>
    %197 = vector.extract_strided_slice %152 {offsets = [0, 0], sizes = [8, 16], strides = [1, 1]} : vector<8x256xf32> to vector<8x16xf32>
    %198 = tpu.concatenate %196, %197 in 1 : vector<8x240xf32>, vector<8x16xf32> -> vector<8x256xf32>
    %c7_119 = arith.constant 7 : index
    %c0_120 = arith.constant 0 : index
    %199 = vector.load %arg4[%c7_119, %c0_120] : memref<9x256xf32, #tpu.memory_space<vmem>>, vector<1x256xf32>
    %200 = vector.broadcast %199 : vector<1x256xf32> to vector<8x256xf32>
    %201 = arith.mulf %198, %200 : vector<8x256xf32>
    %c56_121 = arith.constant 56 : index
    %c0_122 = arith.constant 0 : index
    %202 = vector.load %arg9[%c56_121, %c0_122] : memref<80x256xf32, #tpu.memory_space<vmem>>, vector<8x256xf32>
    tpu.vector_store %arg9[%c56_121, %c0_122], %201 {strides = array<i32>} : memref<80x256xf32, #tpu.memory_space<vmem>>, vector<8x256xf32>,
    %203 = vector.extract_strided_slice %152 {offsets = [0, 17], sizes = [8, 239], strides = [1, 1]} : vector<8x256xf32> to vector<8x239xf32>
    %204 = vector.extract_strided_slice %152 {offsets = [0, 0], sizes = [8, 17], strides = [1, 1]} : vector<8x256xf32> to vector<8x17xf32>
    %205 = tpu.concatenate %203, %204 in 1 : vector<8x239xf32>, vector<8x17xf32> -> vector<8x256xf32>
    %c8_123 = arith.constant 8 : index
    %c0_124 = arith.constant 0 : index
    %206 = vector.load %arg4[%c8_123, %c0_124] : memref<9x256xf32, #tpu.memory_space<vmem>>, vector<1x256xf32>
    %207 = vector.broadcast %206 : vector<1x256xf32> to vector<8x256xf32>
    %208 = arith.mulf %205, %207 : vector<8x256xf32>
    %c64_125 = arith.constant 64 : index
    %c0_126 = arith.constant 0 : index
    %209 = vector.load %arg9[%c64_125, %c0_126] : memref<80x256xf32, #tpu.memory_space<vmem>>, vector<8x256xf32>
    tpu.vector_store %arg9[%c64_125, %c0_126], %208 {strides = array<i32>} : memref<80x256xf32, #tpu.memory_space<vmem>>, vector<8x256xf32>,
    %c0_127 = arith.constant 0 : index
    %c0_128 = arith.constant 0 : index
    %210 = vector.load %arg2[%c0_127, %c0_128] : memref<8x80xf32, #tpu.memory_space<vmem>>, vector<8x80xf32>
    %c0_129 = arith.constant 0 : index
    %c0_130 = arith.constant 0 : index
    %211 = vector.load %arg9[%c0_129, %c0_130] : memref<80x256xf32, #tpu.memory_space<vmem>>, vector<80x256xf32>
    %cst_131 = arith.constant dense<0.000000e+00> : vector<8x256xf32>
    %212 = tpu.matmul %210, %211, %cst_131 {dimension_numbers = #tpu.dot_dimension_numbers<[1], [0], [0], [1], [0, 0, 1, 1], [], []>} : vector<8x80xf32>, vector<80x256xf32>, vector<8x256xf32> -> vector<8x256xf32>
    %cst_132 = arith.constant 0.000000e+00 : f32
    %213 = vector.broadcast %cst_132 : f32 to vector<8x256xf32>
    %214 = arith.maximumf %212, %213 : vector<8x256xf32>
    %215 = vector.extract_strided_slice %214 {offsets = [0, 239], sizes = [8, 17], strides = [1, 1]} : vector<8x256xf32> to vector<8x17xf32>
    %216 = vector.extract_strided_slice %214 {offsets = [0, 0], sizes = [8, 239], strides = [1, 1]} : vector<8x256xf32> to vector<8x239xf32>
    %217 = tpu.concatenate %215, %216 in 1 : vector<8x17xf32>, vector<8x239xf32> -> vector<8x256xf32>
    %c0_133 = arith.constant 0 : index
    %c0_134 = arith.constant 0 : index
    %218 = vector.load %arg4[%c0_133, %c0_134] : memref<9x256xf32, #tpu.memory_space<vmem>>, vector<1x256xf32>
    %219 = vector.broadcast %218 : vector<1x256xf32> to vector<8x256xf32>
    %220 = arith.mulf %217, %219 : vector<8x256xf32>
    %c0_135 = arith.constant 0 : index
    %c0_136 = arith.constant 0 : index
    %221 = vector.load %arg10[%c0_135, %c0_136] : memref<80x256xf32, #tpu.memory_space<vmem>>, vector<8x256xf32>
    tpu.vector_store %arg10[%c0_135, %c0_136], %220 {strides = array<i32>} : memref<80x256xf32, #tpu.memory_space<vmem>>, vector<8x256xf32>,
    %222 = vector.extract_strided_slice %214 {offsets = [0, 240], sizes = [8, 16], strides = [1, 1]} : vector<8x256xf32> to vector<8x16xf32>
    %223 = vector.extract_strided_slice %214 {offsets = [0, 0], sizes = [8, 240], strides = [1, 1]} : vector<8x256xf32> to vector<8x240xf32>
    %224 = tpu.concatenate %222, %223 in 1 : vector<8x16xf32>, vector<8x240xf32> -> vector<8x256xf32>
    %c1_137 = arith.constant 1 : index
    %c0_138 = arith.constant 0 : index
    %225 = vector.load %arg4[%c1_137, %c0_138] : memref<9x256xf32, #tpu.memory_space<vmem>>, vector<1x256xf32>
    %226 = vector.broadcast %225 : vector<1x256xf32> to vector<8x256xf32>
    %227 = arith.mulf %224, %226 : vector<8x256xf32>
    %c8_139 = arith.constant 8 : index
    %c0_140 = arith.constant 0 : index
    %228 = vector.load %arg10[%c8_139, %c0_140] : memref<80x256xf32, #tpu.memory_space<vmem>>, vector<8x256xf32>
    tpu.vector_store %arg10[%c8_139, %c0_140], %227 {strides = array<i32>} : memref<80x256xf32, #tpu.memory_space<vmem>>, vector<8x256xf32>,
    %229 = vector.extract_strided_slice %214 {offsets = [0, 241], sizes = [8, 15], strides = [1, 1]} : vector<8x256xf32> to vector<8x15xf32>
    %230 = vector.extract_strided_slice %214 {offsets = [0, 0], sizes = [8, 241], strides = [1, 1]} : vector<8x256xf32> to vector<8x241xf32>
    %231 = tpu.concatenate %229, %230 in 1 : vector<8x15xf32>, vector<8x241xf32> -> vector<8x256xf32>
    %c2_141 = arith.constant 2 : index
    %c0_142 = arith.constant 0 : index
    %232 = vector.load %arg4[%c2_141, %c0_142] : memref<9x256xf32, #tpu.memory_space<vmem>>, vector<1x256xf32>
    %233 = vector.broadcast %232 : vector<1x256xf32> to vector<8x256xf32>
    %234 = arith.mulf %231, %233 : vector<8x256xf32>
    %c16_143 = arith.constant 16 : index
    %c0_144 = arith.constant 0 : index
    %235 = vector.load %arg10[%c16_143, %c0_144] : memref<80x256xf32, #tpu.memory_space<vmem>>, vector<8x256xf32>
    tpu.vector_store %arg10[%c16_143, %c0_144], %234 {strides = array<i32>} : memref<80x256xf32, #tpu.memory_space<vmem>>, vector<8x256xf32>,
    %236 = vector.extract_strided_slice %214 {offsets = [0, 255], sizes = [8, 1], strides = [1, 1]} : vector<8x256xf32> to vector<8x1xf32>
    %237 = vector.extract_strided_slice %214 {offsets = [0, 0], sizes = [8, 255], strides = [1, 1]} : vector<8x256xf32> to vector<8x255xf32>
    %238 = tpu.concatenate %236, %237 in 1 : vector<8x1xf32>, vector<8x255xf32> -> vector<8x256xf32>
    %c3_145 = arith.constant 3 : index
    %c0_146 = arith.constant 0 : index
    %239 = vector.load %arg4[%c3_145, %c0_146] : memref<9x256xf32, #tpu.memory_space<vmem>>, vector<1x256xf32>
    %240 = vector.broadcast %239 : vector<1x256xf32> to vector<8x256xf32>
    %241 = arith.mulf %238, %240 : vector<8x256xf32>
    %c24_147 = arith.constant 24 : index
    %c0_148 = arith.constant 0 : index
    %242 = vector.load %arg10[%c24_147, %c0_148] : memref<80x256xf32, #tpu.memory_space<vmem>>, vector<8x256xf32>
    tpu.vector_store %arg10[%c24_147, %c0_148], %241 {strides = array<i32>} : memref<80x256xf32, #tpu.memory_space<vmem>>, vector<8x256xf32>,
    %c32_149 = arith.constant 32 : index
    %c0_150 = arith.constant 0 : index
    %243 = vector.load %arg10[%c32_149, %c0_150] : memref<80x256xf32, #tpu.memory_space<vmem>>, vector<8x256xf32>
    tpu.vector_store %arg10[%c32_149, %c0_150], %214 {strides = array<i32>} : memref<80x256xf32, #tpu.memory_space<vmem>>, vector<8x256xf32>,
    %244 = vector.extract_strided_slice %214 {offsets = [0, 1], sizes = [8, 255], strides = [1, 1]} : vector<8x256xf32> to vector<8x255xf32>
    %245 = vector.extract_strided_slice %214 {offsets = [0, 0], sizes = [8, 1], strides = [1, 1]} : vector<8x256xf32> to vector<8x1xf32>
    %246 = tpu.concatenate %244, %245 in 1 : vector<8x255xf32>, vector<8x1xf32> -> vector<8x256xf32>
    %c5_151 = arith.constant 5 : index
    %c0_152 = arith.constant 0 : index
    %247 = vector.load %arg4[%c5_151, %c0_152] : memref<9x256xf32, #tpu.memory_space<vmem>>, vector<1x256xf32>
    %248 = vector.broadcast %247 : vector<1x256xf32> to vector<8x256xf32>
    %249 = arith.mulf %246, %248 : vector<8x256xf32>
    %c40_153 = arith.constant 40 : index
    %c0_154 = arith.constant 0 : index
    %250 = vector.load %arg10[%c40_153, %c0_154] : memref<80x256xf32, #tpu.memory_space<vmem>>, vector<8x256xf32>
    tpu.vector_store %arg10[%c40_153, %c0_154], %249 {strides = array<i32>} : memref<80x256xf32, #tpu.memory_space<vmem>>, vector<8x256xf32>,
    %251 = vector.extract_strided_slice %214 {offsets = [0, 15], sizes = [8, 241], strides = [1, 1]} : vector<8x256xf32> to vector<8x241xf32>
    %252 = vector.extract_strided_slice %214 {offsets = [0, 0], sizes = [8, 15], strides = [1, 1]} : vector<8x256xf32> to vector<8x15xf32>
    %253 = tpu.concatenate %251, %252 in 1 : vector<8x241xf32>, vector<8x15xf32> -> vector<8x256xf32>
    %c6_155 = arith.constant 6 : index
    %c0_156 = arith.constant 0 : index
    %254 = vector.load %arg4[%c6_155, %c0_156] : memref<9x256xf32, #tpu.memory_space<vmem>>, vector<1x256xf32>
    %255 = vector.broadcast %254 : vector<1x256xf32> to vector<8x256xf32>
    %256 = arith.mulf %253, %255 : vector<8x256xf32>
    %c48_157 = arith.constant 48 : index
    %c0_158 = arith.constant 0 : index
    %257 = vector.load %arg10[%c48_157, %c0_158] : memref<80x256xf32, #tpu.memory_space<vmem>>, vector<8x256xf32>
    tpu.vector_store %arg10[%c48_157, %c0_158], %256 {strides = array<i32>} : memref<80x256xf32, #tpu.memory_space<vmem>>, vector<8x256xf32>,
    %258 = vector.extract_strided_slice %214 {offsets = [0, 16], sizes = [8, 240], strides = [1, 1]} : vector<8x256xf32> to vector<8x240xf32>
    %259 = vector.extract_strided_slice %214 {offsets = [0, 0], sizes = [8, 16], strides = [1, 1]} : vector<8x256xf32> to vector<8x16xf32>
    %260 = tpu.concatenate %258, %259 in 1 : vector<8x240xf32>, vector<8x16xf32> -> vector<8x256xf32>
    %c7_159 = arith.constant 7 : index
    %c0_160 = arith.constant 0 : index
    %261 = vector.load %arg4[%c7_159, %c0_160] : memref<9x256xf32, #tpu.memory_space<vmem>>, vector<1x256xf32>
    %262 = vector.broadcast %261 : vector<1x256xf32> to vector<8x256xf32>
    %263 = arith.mulf %260, %262 : vector<8x256xf32>
    %c56_161 = arith.constant 56 : index
    %c0_162 = arith.constant 0 : index
    %264 = vector.load %arg10[%c56_161, %c0_162] : memref<80x256xf32, #tpu.memory_space<vmem>>, vector<8x256xf32>
    tpu.vector_store %arg10[%c56_161, %c0_162], %263 {strides = array<i32>} : memref<80x256xf32, #tpu.memory_space<vmem>>, vector<8x256xf32>,
    %265 = vector.extract_strided_slice %214 {offsets = [0, 17], sizes = [8, 239], strides = [1, 1]} : vector<8x256xf32> to vector<8x239xf32>
    %266 = vector.extract_strided_slice %214 {offsets = [0, 0], sizes = [8, 17], strides = [1, 1]} : vector<8x256xf32> to vector<8x17xf32>
    %267 = tpu.concatenate %265, %266 in 1 : vector<8x239xf32>, vector<8x17xf32> -> vector<8x256xf32>
    %c8_163 = arith.constant 8 : index
    %c0_164 = arith.constant 0 : index
    %268 = vector.load %arg4[%c8_163, %c0_164] : memref<9x256xf32, #tpu.memory_space<vmem>>, vector<1x256xf32>
    %269 = vector.broadcast %268 : vector<1x256xf32> to vector<8x256xf32>
    %270 = arith.mulf %267, %269 : vector<8x256xf32>
    %c64_165 = arith.constant 64 : index
    %c0_166 = arith.constant 0 : index
    %271 = vector.load %arg10[%c64_165, %c0_166] : memref<80x256xf32, #tpu.memory_space<vmem>>, vector<8x256xf32>
    tpu.vector_store %arg10[%c64_165, %c0_166], %270 {strides = array<i32>} : memref<80x256xf32, #tpu.memory_space<vmem>>, vector<8x256xf32>,
    %c0_167 = arith.constant 0 : index
    %c0_168 = arith.constant 0 : index
    %272 = vector.load %arg3[%c0_167, %c0_168] : memref<16x80xf32, #tpu.memory_space<vmem>>, vector<16x80xf32>
    %c0_169 = arith.constant 0 : index
    %c0_170 = arith.constant 0 : index
    %273 = vector.load %arg10[%c0_169, %c0_170] : memref<80x256xf32, #tpu.memory_space<vmem>>, vector<80x256xf32>
    %cst_171 = arith.constant dense<0.000000e+00> : vector<16x256xf32>
    %274 = tpu.matmul %272, %273, %cst_171 {dimension_numbers = #tpu.dot_dimension_numbers<[1], [0], [0], [1], [0, 0, 1, 1], [], []>} : vector<16x80xf32>, vector<80x256xf32>, vector<16x256xf32> -> vector<16x256xf32>
    %c1_172 = arith.constant 1 : index
    %c0_173 = arith.constant 0 : index
    %c0_174 = arith.constant 0 : index
    %275 = vector.load %arg5[%c1_172, %c0_173, %c0_174] : memref<4x8x256xf32, #tpu.memory_space<vmem>>, vector<1x8x256xf32>
    %276 = vector.shape_cast %275 : vector<1x8x256xf32> to vector<8x256xf32>
    %277 = vector.shape_cast %212 : vector<8x256xf32> to vector<1x8x256xf32>
    tpu.vector_store %arg5[%c1_172, %c0_173, %c0_174], %277 {strides = array<i32>} : memref<4x8x256xf32, #tpu.memory_space<vmem>>, vector<1x8x256xf32>,
    %c1_175 = arith.constant 1 : index
    %c0_176 = arith.constant 0 : index
    %c0_177 = arith.constant 0 : index
    %278 = vector.load %arg6[%c1_175, %c0_176, %c0_177] : memref<4x8x256xf32, #tpu.memory_space<vmem>>, vector<1x8x256xf32>
    %279 = vector.shape_cast %278 : vector<1x8x256xf32> to vector<8x256xf32>
    %280 = vector.shape_cast %214 : vector<8x256xf32> to vector<1x8x256xf32>
    tpu.vector_store %arg6[%c1_175, %c0_176, %c0_177], %280 {strides = array<i32>} : memref<4x8x256xf32, #tpu.memory_space<vmem>>, vector<1x8x256xf32>,
    %c1_178 = arith.constant 1 : index
    %c0_179 = arith.constant 0 : index
    %c0_180 = arith.constant 0 : index
    %281 = vector.load %arg7[%c1_178, %c0_179, %c0_180] : memref<4x16x256xf32, #tpu.memory_space<vmem>>, vector<1x16x256xf32>
    %282 = vector.shape_cast %281 : vector<1x16x256xf32> to vector<16x256xf32>
    %283 = vector.shape_cast %274 : vector<16x256xf32> to vector<1x16x256xf32>
    tpu.vector_store %arg7[%c1_178, %c0_179, %c0_180], %283 {strides = array<i32>} : memref<4x16x256xf32, #tpu.memory_space<vmem>>, vector<1x16x256xf32>,
    %c2_181 = arith.constant 2 : index
    %c0_182 = arith.constant 0 : index
    %c0_183 = arith.constant 0 : index
    %284 = vector.load %arg1[%c2_181, %c0_182, %c0_183] : memref<4x4x256xf32, #tpu.memory_space<vmem>>, vector<1x4x256xf32>
    %285 = vector.shape_cast %284 : vector<1x4x256xf32> to vector<4x256xf32>
    %c0_184 = arith.constant 0 : index
    %c0_185 = arith.constant 0 : index
    %286 = vector.load %arg8[%c0_184, %c0_185] : memref<8x256xf32, #tpu.memory_space<vmem>>, vector<4x256xf32>
    tpu.vector_store %arg8[%c0_184, %c0_185], %285 {strides = array<i32>} : memref<8x256xf32, #tpu.memory_space<vmem>>, vector<4x256xf32>,
    %c0_186 = arith.constant 0 : index
    %c0_187 = arith.constant 0 : index
    %287 = vector.load %arg8[%c0_186, %c0_187] : memref<8x256xf32, #tpu.memory_space<vmem>>, vector<8x256xf32>
    %288 = vector.extract_strided_slice %287 {offsets = [0, 239], sizes = [8, 17], strides = [1, 1]} : vector<8x256xf32> to vector<8x17xf32>
    %289 = vector.extract_strided_slice %287 {offsets = [0, 0], sizes = [8, 239], strides = [1, 1]} : vector<8x256xf32> to vector<8x239xf32>
    %290 = tpu.concatenate %288, %289 in 1 : vector<8x17xf32>, vector<8x239xf32> -> vector<8x256xf32>
    %c0_188 = arith.constant 0 : index
    %c0_189 = arith.constant 0 : index
    %291 = vector.load %arg4[%c0_188, %c0_189] : memref<9x256xf32, #tpu.memory_space<vmem>>, vector<1x256xf32>
    %292 = vector.broadcast %291 : vector<1x256xf32> to vector<8x256xf32>
    %293 = arith.mulf %290, %292 : vector<8x256xf32>
    %c0_190 = arith.constant 0 : index
    %c0_191 = arith.constant 0 : index
    %294 = vector.load %arg9[%c0_190, %c0_191] : memref<80x256xf32, #tpu.memory_space<vmem>>, vector<8x256xf32>
    tpu.vector_store %arg9[%c0_190, %c0_191], %293 {strides = array<i32>} : memref<80x256xf32, #tpu.memory_space<vmem>>, vector<8x256xf32>,
    %295 = vector.extract_strided_slice %287 {offsets = [0, 240], sizes = [8, 16], strides = [1, 1]} : vector<8x256xf32> to vector<8x16xf32>
    %296 = vector.extract_strided_slice %287 {offsets = [0, 0], sizes = [8, 240], strides = [1, 1]} : vector<8x256xf32> to vector<8x240xf32>
    %297 = tpu.concatenate %295, %296 in 1 : vector<8x16xf32>, vector<8x240xf32> -> vector<8x256xf32>
    %c1_192 = arith.constant 1 : index
    %c0_193 = arith.constant 0 : index
    %298 = vector.load %arg4[%c1_192, %c0_193] : memref<9x256xf32, #tpu.memory_space<vmem>>, vector<1x256xf32>
    %299 = vector.broadcast %298 : vector<1x256xf32> to vector<8x256xf32>
    %300 = arith.mulf %297, %299 : vector<8x256xf32>
    %c8_194 = arith.constant 8 : index
    %c0_195 = arith.constant 0 : index
    %301 = vector.load %arg9[%c8_194, %c0_195] : memref<80x256xf32, #tpu.memory_space<vmem>>, vector<8x256xf32>
    tpu.vector_store %arg9[%c8_194, %c0_195], %300 {strides = array<i32>} : memref<80x256xf32, #tpu.memory_space<vmem>>, vector<8x256xf32>,
    %302 = vector.extract_strided_slice %287 {offsets = [0, 241], sizes = [8, 15], strides = [1, 1]} : vector<8x256xf32> to vector<8x15xf32>
    %303 = vector.extract_strided_slice %287 {offsets = [0, 0], sizes = [8, 241], strides = [1, 1]} : vector<8x256xf32> to vector<8x241xf32>
    %304 = tpu.concatenate %302, %303 in 1 : vector<8x15xf32>, vector<8x241xf32> -> vector<8x256xf32>
    %c2_196 = arith.constant 2 : index
    %c0_197 = arith.constant 0 : index
    %305 = vector.load %arg4[%c2_196, %c0_197] : memref<9x256xf32, #tpu.memory_space<vmem>>, vector<1x256xf32>
    %306 = vector.broadcast %305 : vector<1x256xf32> to vector<8x256xf32>
    %307 = arith.mulf %304, %306 : vector<8x256xf32>
    %c16_198 = arith.constant 16 : index
    %c0_199 = arith.constant 0 : index
    %308 = vector.load %arg9[%c16_198, %c0_199] : memref<80x256xf32, #tpu.memory_space<vmem>>, vector<8x256xf32>
    tpu.vector_store %arg9[%c16_198, %c0_199], %307 {strides = array<i32>} : memref<80x256xf32, #tpu.memory_space<vmem>>, vector<8x256xf32>,
    %309 = vector.extract_strided_slice %287 {offsets = [0, 255], sizes = [8, 1], strides = [1, 1]} : vector<8x256xf32> to vector<8x1xf32>
    %310 = vector.extract_strided_slice %287 {offsets = [0, 0], sizes = [8, 255], strides = [1, 1]} : vector<8x256xf32> to vector<8x255xf32>
    %311 = tpu.concatenate %309, %310 in 1 : vector<8x1xf32>, vector<8x255xf32> -> vector<8x256xf32>
    %c3_200 = arith.constant 3 : index
    %c0_201 = arith.constant 0 : index
    %312 = vector.load %arg4[%c3_200, %c0_201] : memref<9x256xf32, #tpu.memory_space<vmem>>, vector<1x256xf32>
    %313 = vector.broadcast %312 : vector<1x256xf32> to vector<8x256xf32>
    %314 = arith.mulf %311, %313 : vector<8x256xf32>
    %c24_202 = arith.constant 24 : index
    %c0_203 = arith.constant 0 : index
    %315 = vector.load %arg9[%c24_202, %c0_203] : memref<80x256xf32, #tpu.memory_space<vmem>>, vector<8x256xf32>
    tpu.vector_store %arg9[%c24_202, %c0_203], %314 {strides = array<i32>} : memref<80x256xf32, #tpu.memory_space<vmem>>, vector<8x256xf32>,
    %c32_204 = arith.constant 32 : index
    %c0_205 = arith.constant 0 : index
    %316 = vector.load %arg9[%c32_204, %c0_205] : memref<80x256xf32, #tpu.memory_space<vmem>>, vector<8x256xf32>
    tpu.vector_store %arg9[%c32_204, %c0_205], %287 {strides = array<i32>} : memref<80x256xf32, #tpu.memory_space<vmem>>, vector<8x256xf32>,
    %317 = vector.extract_strided_slice %287 {offsets = [0, 1], sizes = [8, 255], strides = [1, 1]} : vector<8x256xf32> to vector<8x255xf32>
    %318 = vector.extract_strided_slice %287 {offsets = [0, 0], sizes = [8, 1], strides = [1, 1]} : vector<8x256xf32> to vector<8x1xf32>
    %319 = tpu.concatenate %317, %318 in 1 : vector<8x255xf32>, vector<8x1xf32> -> vector<8x256xf32>
    %c5_206 = arith.constant 5 : index
    %c0_207 = arith.constant 0 : index
    %320 = vector.load %arg4[%c5_206, %c0_207] : memref<9x256xf32, #tpu.memory_space<vmem>>, vector<1x256xf32>
    %321 = vector.broadcast %320 : vector<1x256xf32> to vector<8x256xf32>
    %322 = arith.mulf %319, %321 : vector<8x256xf32>
    %c40_208 = arith.constant 40 : index
    %c0_209 = arith.constant 0 : index
    %323 = vector.load %arg9[%c40_208, %c0_209] : memref<80x256xf32, #tpu.memory_space<vmem>>, vector<8x256xf32>
    tpu.vector_store %arg9[%c40_208, %c0_209], %322 {strides = array<i32>} : memref<80x256xf32, #tpu.memory_space<vmem>>, vector<8x256xf32>,
    %324 = vector.extract_strided_slice %287 {offsets = [0, 15], sizes = [8, 241], strides = [1, 1]} : vector<8x256xf32> to vector<8x241xf32>
    %325 = vector.extract_strided_slice %287 {offsets = [0, 0], sizes = [8, 15], strides = [1, 1]} : vector<8x256xf32> to vector<8x15xf32>
    %326 = tpu.concatenate %324, %325 in 1 : vector<8x241xf32>, vector<8x15xf32> -> vector<8x256xf32>
    %c6_210 = arith.constant 6 : index
    %c0_211 = arith.constant 0 : index
    %327 = vector.load %arg4[%c6_210, %c0_211] : memref<9x256xf32, #tpu.memory_space<vmem>>, vector<1x256xf32>
    %328 = vector.broadcast %327 : vector<1x256xf32> to vector<8x256xf32>
    %329 = arith.mulf %326, %328 : vector<8x256xf32>
    %c48_212 = arith.constant 48 : index
    %c0_213 = arith.constant 0 : index
    %330 = vector.load %arg9[%c48_212, %c0_213] : memref<80x256xf32, #tpu.memory_space<vmem>>, vector<8x256xf32>
    tpu.vector_store %arg9[%c48_212, %c0_213], %329 {strides = array<i32>} : memref<80x256xf32, #tpu.memory_space<vmem>>, vector<8x256xf32>,
    %331 = vector.extract_strided_slice %287 {offsets = [0, 16], sizes = [8, 240], strides = [1, 1]} : vector<8x256xf32> to vector<8x240xf32>
    %332 = vector.extract_strided_slice %287 {offsets = [0, 0], sizes = [8, 16], strides = [1, 1]} : vector<8x256xf32> to vector<8x16xf32>
    %333 = tpu.concatenate %331, %332 in 1 : vector<8x240xf32>, vector<8x16xf32> -> vector<8x256xf32>
    %c7_214 = arith.constant 7 : index
    %c0_215 = arith.constant 0 : index
    %334 = vector.load %arg4[%c7_214, %c0_215] : memref<9x256xf32, #tpu.memory_space<vmem>>, vector<1x256xf32>
    %335 = vector.broadcast %334 : vector<1x256xf32> to vector<8x256xf32>
    %336 = arith.mulf %333, %335 : vector<8x256xf32>
    %c56_216 = arith.constant 56 : index
    %c0_217 = arith.constant 0 : index
    %337 = vector.load %arg9[%c56_216, %c0_217] : memref<80x256xf32, #tpu.memory_space<vmem>>, vector<8x256xf32>
    tpu.vector_store %arg9[%c56_216, %c0_217], %336 {strides = array<i32>} : memref<80x256xf32, #tpu.memory_space<vmem>>, vector<8x256xf32>,
    %338 = vector.extract_strided_slice %287 {offsets = [0, 17], sizes = [8, 239], strides = [1, 1]} : vector<8x256xf32> to vector<8x239xf32>
    %339 = vector.extract_strided_slice %287 {offsets = [0, 0], sizes = [8, 17], strides = [1, 1]} : vector<8x256xf32> to vector<8x17xf32>
    %340 = tpu.concatenate %338, %339 in 1 : vector<8x239xf32>, vector<8x17xf32> -> vector<8x256xf32>
    %c8_218 = arith.constant 8 : index
    %c0_219 = arith.constant 0 : index
    %341 = vector.load %arg4[%c8_218, %c0_219] : memref<9x256xf32, #tpu.memory_space<vmem>>, vector<1x256xf32>
    %342 = vector.broadcast %341 : vector<1x256xf32> to vector<8x256xf32>
    %343 = arith.mulf %340, %342 : vector<8x256xf32>
    %c64_220 = arith.constant 64 : index
    %c0_221 = arith.constant 0 : index
    %344 = vector.load %arg9[%c64_220, %c0_221] : memref<80x256xf32, #tpu.memory_space<vmem>>, vector<8x256xf32>
    tpu.vector_store %arg9[%c64_220, %c0_221], %343 {strides = array<i32>} : memref<80x256xf32, #tpu.memory_space<vmem>>, vector<8x256xf32>,
    %c0_222 = arith.constant 0 : index
    %c0_223 = arith.constant 0 : index
    %345 = vector.load %arg2[%c0_222, %c0_223] : memref<8x80xf32, #tpu.memory_space<vmem>>, vector<8x80xf32>
    %c0_224 = arith.constant 0 : index
    %c0_225 = arith.constant 0 : index
    %346 = vector.load %arg9[%c0_224, %c0_225] : memref<80x256xf32, #tpu.memory_space<vmem>>, vector<80x256xf32>
    %cst_226 = arith.constant dense<0.000000e+00> : vector<8x256xf32>
    %347 = tpu.matmul %345, %346, %cst_226 {dimension_numbers = #tpu.dot_dimension_numbers<[1], [0], [0], [1], [0, 0, 1, 1], [], []>} : vector<8x80xf32>, vector<80x256xf32>, vector<8x256xf32> -> vector<8x256xf32>
    %cst_227 = arith.constant 0.000000e+00 : f32
    %348 = vector.broadcast %cst_227 : f32 to vector<8x256xf32>
    %349 = arith.maximumf %347, %348 : vector<8x256xf32>
    %350 = vector.extract_strided_slice %349 {offsets = [0, 239], sizes = [8, 17], strides = [1, 1]} : vector<8x256xf32> to vector<8x17xf32>
    %351 = vector.extract_strided_slice %349 {offsets = [0, 0], sizes = [8, 239], strides = [1, 1]} : vector<8x256xf32> to vector<8x239xf32>
    %352 = tpu.concatenate %350, %351 in 1 : vector<8x17xf32>, vector<8x239xf32> -> vector<8x256xf32>
    %c0_228 = arith.constant 0 : index
    %c0_229 = arith.constant 0 : index
    %353 = vector.load %arg4[%c0_228, %c0_229] : memref<9x256xf32, #tpu.memory_space<vmem>>, vector<1x256xf32>
    %354 = vector.broadcast %353 : vector<1x256xf32> to vector<8x256xf32>
    %355 = arith.mulf %352, %354 : vector<8x256xf32>
    %c0_230 = arith.constant 0 : index
    %c0_231 = arith.constant 0 : index
    %356 = vector.load %arg10[%c0_230, %c0_231] : memref<80x256xf32, #tpu.memory_space<vmem>>, vector<8x256xf32>
    tpu.vector_store %arg10[%c0_230, %c0_231], %355 {strides = array<i32>} : memref<80x256xf32, #tpu.memory_space<vmem>>, vector<8x256xf32>,
    %357 = vector.extract_strided_slice %349 {offsets = [0, 240], sizes = [8, 16], strides = [1, 1]} : vector<8x256xf32> to vector<8x16xf32>
    %358 = vector.extract_strided_slice %349 {offsets = [0, 0], sizes = [8, 240], strides = [1, 1]} : vector<8x256xf32> to vector<8x240xf32>
    %359 = tpu.concatenate %357, %358 in 1 : vector<8x16xf32>, vector<8x240xf32> -> vector<8x256xf32>
    %c1_232 = arith.constant 1 : index
    %c0_233 = arith.constant 0 : index
    %360 = vector.load %arg4[%c1_232, %c0_233] : memref<9x256xf32, #tpu.memory_space<vmem>>, vector<1x256xf32>
    %361 = vector.broadcast %360 : vector<1x256xf32> to vector<8x256xf32>
    %362 = arith.mulf %359, %361 : vector<8x256xf32>
    %c8_234 = arith.constant 8 : index
    %c0_235 = arith.constant 0 : index
    %363 = vector.load %arg10[%c8_234, %c0_235] : memref<80x256xf32, #tpu.memory_space<vmem>>, vector<8x256xf32>
    tpu.vector_store %arg10[%c8_234, %c0_235], %362 {strides = array<i32>} : memref<80x256xf32, #tpu.memory_space<vmem>>, vector<8x256xf32>,
    %364 = vector.extract_strided_slice %349 {offsets = [0, 241], sizes = [8, 15], strides = [1, 1]} : vector<8x256xf32> to vector<8x15xf32>
    %365 = vector.extract_strided_slice %349 {offsets = [0, 0], sizes = [8, 241], strides = [1, 1]} : vector<8x256xf32> to vector<8x241xf32>
    %366 = tpu.concatenate %364, %365 in 1 : vector<8x15xf32>, vector<8x241xf32> -> vector<8x256xf32>
    %c2_236 = arith.constant 2 : index
    %c0_237 = arith.constant 0 : index
    %367 = vector.load %arg4[%c2_236, %c0_237] : memref<9x256xf32, #tpu.memory_space<vmem>>, vector<1x256xf32>
    %368 = vector.broadcast %367 : vector<1x256xf32> to vector<8x256xf32>
    %369 = arith.mulf %366, %368 : vector<8x256xf32>
    %c16_238 = arith.constant 16 : index
    %c0_239 = arith.constant 0 : index
    %370 = vector.load %arg10[%c16_238, %c0_239] : memref<80x256xf32, #tpu.memory_space<vmem>>, vector<8x256xf32>
    tpu.vector_store %arg10[%c16_238, %c0_239], %369 {strides = array<i32>} : memref<80x256xf32, #tpu.memory_space<vmem>>, vector<8x256xf32>,
    %371 = vector.extract_strided_slice %349 {offsets = [0, 255], sizes = [8, 1], strides = [1, 1]} : vector<8x256xf32> to vector<8x1xf32>
    %372 = vector.extract_strided_slice %349 {offsets = [0, 0], sizes = [8, 255], strides = [1, 1]} : vector<8x256xf32> to vector<8x255xf32>
    %373 = tpu.concatenate %371, %372 in 1 : vector<8x1xf32>, vector<8x255xf32> -> vector<8x256xf32>
    %c3_240 = arith.constant 3 : index
    %c0_241 = arith.constant 0 : index
    %374 = vector.load %arg4[%c3_240, %c0_241] : memref<9x256xf32, #tpu.memory_space<vmem>>, vector<1x256xf32>
    %375 = vector.broadcast %374 : vector<1x256xf32> to vector<8x256xf32>
    %376 = arith.mulf %373, %375 : vector<8x256xf32>
    %c24_242 = arith.constant 24 : index
    %c0_243 = arith.constant 0 : index
    %377 = vector.load %arg10[%c24_242, %c0_243] : memref<80x256xf32, #tpu.memory_space<vmem>>, vector<8x256xf32>
    tpu.vector_store %arg10[%c24_242, %c0_243], %376 {strides = array<i32>} : memref<80x256xf32, #tpu.memory_space<vmem>>, vector<8x256xf32>,
    %c32_244 = arith.constant 32 : index
    %c0_245 = arith.constant 0 : index
    %378 = vector.load %arg10[%c32_244, %c0_245] : memref<80x256xf32, #tpu.memory_space<vmem>>, vector<8x256xf32>
    tpu.vector_store %arg10[%c32_244, %c0_245], %349 {strides = array<i32>} : memref<80x256xf32, #tpu.memory_space<vmem>>, vector<8x256xf32>,
    %379 = vector.extract_strided_slice %349 {offsets = [0, 1], sizes = [8, 255], strides = [1, 1]} : vector<8x256xf32> to vector<8x255xf32>
    %380 = vector.extract_strided_slice %349 {offsets = [0, 0], sizes = [8, 1], strides = [1, 1]} : vector<8x256xf32> to vector<8x1xf32>
    %381 = tpu.concatenate %379, %380 in 1 : vector<8x255xf32>, vector<8x1xf32> -> vector<8x256xf32>
    %c5_246 = arith.constant 5 : index
    %c0_247 = arith.constant 0 : index
    %382 = vector.load %arg4[%c5_246, %c0_247] : memref<9x256xf32, #tpu.memory_space<vmem>>, vector<1x256xf32>
    %383 = vector.broadcast %382 : vector<1x256xf32> to vector<8x256xf32>
    %384 = arith.mulf %381, %383 : vector<8x256xf32>
    %c40_248 = arith.constant 40 : index
    %c0_249 = arith.constant 0 : index
    %385 = vector.load %arg10[%c40_248, %c0_249] : memref<80x256xf32, #tpu.memory_space<vmem>>, vector<8x256xf32>
    tpu.vector_store %arg10[%c40_248, %c0_249], %384 {strides = array<i32>} : memref<80x256xf32, #tpu.memory_space<vmem>>, vector<8x256xf32>,
    %386 = vector.extract_strided_slice %349 {offsets = [0, 15], sizes = [8, 241], strides = [1, 1]} : vector<8x256xf32> to vector<8x241xf32>
    %387 = vector.extract_strided_slice %349 {offsets = [0, 0], sizes = [8, 15], strides = [1, 1]} : vector<8x256xf32> to vector<8x15xf32>
    %388 = tpu.concatenate %386, %387 in 1 : vector<8x241xf32>, vector<8x15xf32> -> vector<8x256xf32>
    %c6_250 = arith.constant 6 : index
    %c0_251 = arith.constant 0 : index
    %389 = vector.load %arg4[%c6_250, %c0_251] : memref<9x256xf32, #tpu.memory_space<vmem>>, vector<1x256xf32>
    %390 = vector.broadcast %389 : vector<1x256xf32> to vector<8x256xf32>
    %391 = arith.mulf %388, %390 : vector<8x256xf32>
    %c48_252 = arith.constant 48 : index
    %c0_253 = arith.constant 0 : index
    %392 = vector.load %arg10[%c48_252, %c0_253] : memref<80x256xf32, #tpu.memory_space<vmem>>, vector<8x256xf32>
    tpu.vector_store %arg10[%c48_252, %c0_253], %391 {strides = array<i32>} : memref<80x256xf32, #tpu.memory_space<vmem>>, vector<8x256xf32>,
    %393 = vector.extract_strided_slice %349 {offsets = [0, 16], sizes = [8, 240], strides = [1, 1]} : vector<8x256xf32> to vector<8x240xf32>
    %394 = vector.extract_strided_slice %349 {offsets = [0, 0], sizes = [8, 16], strides = [1, 1]} : vector<8x256xf32> to vector<8x16xf32>
    %395 = tpu.concatenate %393, %394 in 1 : vector<8x240xf32>, vector<8x16xf32> -> vector<8x256xf32>
    %c7_254 = arith.constant 7 : index
    %c0_255 = arith.constant 0 : index
    %396 = vector.load %arg4[%c7_254, %c0_255] : memref<9x256xf32, #tpu.memory_space<vmem>>, vector<1x256xf32>
    %397 = vector.broadcast %396 : vector<1x256xf32> to vector<8x256xf32>
    %398 = arith.mulf %395, %397 : vector<8x256xf32>
    %c56_256 = arith.constant 56 : index
    %c0_257 = arith.constant 0 : index
    %399 = vector.load %arg10[%c56_256, %c0_257] : memref<80x256xf32, #tpu.memory_space<vmem>>, vector<8x256xf32>
    tpu.vector_store %arg10[%c56_256, %c0_257], %398 {strides = array<i32>} : memref<80x256xf32, #tpu.memory_space<vmem>>, vector<8x256xf32>,
    %400 = vector.extract_strided_slice %349 {offsets = [0, 17], sizes = [8, 239], strides = [1, 1]} : vector<8x256xf32> to vector<8x239xf32>
    %401 = vector.extract_strided_slice %349 {offsets = [0, 0], sizes = [8, 17], strides = [1, 1]} : vector<8x256xf32> to vector<8x17xf32>
    %402 = tpu.concatenate %400, %401 in 1 : vector<8x239xf32>, vector<8x17xf32> -> vector<8x256xf32>
    %c8_258 = arith.constant 8 : index
    %c0_259 = arith.constant 0 : index
    %403 = vector.load %arg4[%c8_258, %c0_259] : memref<9x256xf32, #tpu.memory_space<vmem>>, vector<1x256xf32>
    %404 = vector.broadcast %403 : vector<1x256xf32> to vector<8x256xf32>
    %405 = arith.mulf %402, %404 : vector<8x256xf32>
    %c64_260 = arith.constant 64 : index
    %c0_261 = arith.constant 0 : index
    %406 = vector.load %arg10[%c64_260, %c0_261] : memref<80x256xf32, #tpu.memory_space<vmem>>, vector<8x256xf32>
    tpu.vector_store %arg10[%c64_260, %c0_261], %405 {strides = array<i32>} : memref<80x256xf32, #tpu.memory_space<vmem>>, vector<8x256xf32>,
    %c0_262 = arith.constant 0 : index
    %c0_263 = arith.constant 0 : index
    %407 = vector.load %arg3[%c0_262, %c0_263] : memref<16x80xf32, #tpu.memory_space<vmem>>, vector<16x80xf32>
    %c0_264 = arith.constant 0 : index
    %c0_265 = arith.constant 0 : index
    %408 = vector.load %arg10[%c0_264, %c0_265] : memref<80x256xf32, #tpu.memory_space<vmem>>, vector<80x256xf32>
    %cst_266 = arith.constant dense<0.000000e+00> : vector<16x256xf32>
    %409 = tpu.matmul %407, %408, %cst_266 {dimension_numbers = #tpu.dot_dimension_numbers<[1], [0], [0], [1], [0, 0, 1, 1], [], []>} : vector<16x80xf32>, vector<80x256xf32>, vector<16x256xf32> -> vector<16x256xf32>
    %c2_267 = arith.constant 2 : index
    %c0_268 = arith.constant 0 : index
    %c0_269 = arith.constant 0 : index
    %410 = vector.load %arg5[%c2_267, %c0_268, %c0_269] : memref<4x8x256xf32, #tpu.memory_space<vmem>>, vector<1x8x256xf32>
    %411 = vector.shape_cast %410 : vector<1x8x256xf32> to vector<8x256xf32>
    %412 = vector.shape_cast %347 : vector<8x256xf32> to vector<1x8x256xf32>
    tpu.vector_store %arg5[%c2_267, %c0_268, %c0_269], %412 {strides = array<i32>} : memref<4x8x256xf32, #tpu.memory_space<vmem>>, vector<1x8x256xf32>,
    %c2_270 = arith.constant 2 : index
    %c0_271 = arith.constant 0 : index
    %c0_272 = arith.constant 0 : index
    %413 = vector.load %arg6[%c2_270, %c0_271, %c0_272] : memref<4x8x256xf32, #tpu.memory_space<vmem>>, vector<1x8x256xf32>
    %414 = vector.shape_cast %413 : vector<1x8x256xf32> to vector<8x256xf32>
    %415 = vector.shape_cast %349 : vector<8x256xf32> to vector<1x8x256xf32>
    tpu.vector_store %arg6[%c2_270, %c0_271, %c0_272], %415 {strides = array<i32>} : memref<4x8x256xf32, #tpu.memory_space<vmem>>, vector<1x8x256xf32>,
    %c2_273 = arith.constant 2 : index
    %c0_274 = arith.constant 0 : index
    %c0_275 = arith.constant 0 : index
    %416 = vector.load %arg7[%c2_273, %c0_274, %c0_275] : memref<4x16x256xf32, #tpu.memory_space<vmem>>, vector<1x16x256xf32>
    %417 = vector.shape_cast %416 : vector<1x16x256xf32> to vector<16x256xf32>
    %418 = vector.shape_cast %409 : vector<16x256xf32> to vector<1x16x256xf32>
    tpu.vector_store %arg7[%c2_273, %c0_274, %c0_275], %418 {strides = array<i32>} : memref<4x16x256xf32, #tpu.memory_space<vmem>>, vector<1x16x256xf32>,
    %c3_276 = arith.constant 3 : index
    %c0_277 = arith.constant 0 : index
    %c0_278 = arith.constant 0 : index
    %419 = vector.load %arg1[%c3_276, %c0_277, %c0_278] : memref<4x4x256xf32, #tpu.memory_space<vmem>>, vector<1x4x256xf32>
    %420 = vector.shape_cast %419 : vector<1x4x256xf32> to vector<4x256xf32>
    %c0_279 = arith.constant 0 : index
    %c0_280 = arith.constant 0 : index
    %421 = vector.load %arg8[%c0_279, %c0_280] : memref<8x256xf32, #tpu.memory_space<vmem>>, vector<4x256xf32>
    tpu.vector_store %arg8[%c0_279, %c0_280], %420 {strides = array<i32>} : memref<8x256xf32, #tpu.memory_space<vmem>>, vector<4x256xf32>,
    %c0_281 = arith.constant 0 : index
    %c0_282 = arith.constant 0 : index
    %422 = vector.load %arg8[%c0_281, %c0_282] : memref<8x256xf32, #tpu.memory_space<vmem>>, vector<8x256xf32>
    %423 = vector.extract_strided_slice %422 {offsets = [0, 239], sizes = [8, 17], strides = [1, 1]} : vector<8x256xf32> to vector<8x17xf32>
    %424 = vector.extract_strided_slice %422 {offsets = [0, 0], sizes = [8, 239], strides = [1, 1]} : vector<8x256xf32> to vector<8x239xf32>
    %425 = tpu.concatenate %423, %424 in 1 : vector<8x17xf32>, vector<8x239xf32> -> vector<8x256xf32>
    %c0_283 = arith.constant 0 : index
    %c0_284 = arith.constant 0 : index
    %426 = vector.load %arg4[%c0_283, %c0_284] : memref<9x256xf32, #tpu.memory_space<vmem>>, vector<1x256xf32>
    %427 = vector.broadcast %426 : vector<1x256xf32> to vector<8x256xf32>
    %428 = arith.mulf %425, %427 : vector<8x256xf32>
    %c0_285 = arith.constant 0 : index
    %c0_286 = arith.constant 0 : index
    %429 = vector.load %arg9[%c0_285, %c0_286] : memref<80x256xf32, #tpu.memory_space<vmem>>, vector<8x256xf32>
    tpu.vector_store %arg9[%c0_285, %c0_286], %428 {strides = array<i32>} : memref<80x256xf32, #tpu.memory_space<vmem>>, vector<8x256xf32>,
    %430 = vector.extract_strided_slice %422 {offsets = [0, 240], sizes = [8, 16], strides = [1, 1]} : vector<8x256xf32> to vector<8x16xf32>
    %431 = vector.extract_strided_slice %422 {offsets = [0, 0], sizes = [8, 240], strides = [1, 1]} : vector<8x256xf32> to vector<8x240xf32>
    %432 = tpu.concatenate %430, %431 in 1 : vector<8x16xf32>, vector<8x240xf32> -> vector<8x256xf32>
    %c1_287 = arith.constant 1 : index
    %c0_288 = arith.constant 0 : index
    %433 = vector.load %arg4[%c1_287, %c0_288] : memref<9x256xf32, #tpu.memory_space<vmem>>, vector<1x256xf32>
    %434 = vector.broadcast %433 : vector<1x256xf32> to vector<8x256xf32>
    %435 = arith.mulf %432, %434 : vector<8x256xf32>
    %c8_289 = arith.constant 8 : index
    %c0_290 = arith.constant 0 : index
    %436 = vector.load %arg9[%c8_289, %c0_290] : memref<80x256xf32, #tpu.memory_space<vmem>>, vector<8x256xf32>
    tpu.vector_store %arg9[%c8_289, %c0_290], %435 {strides = array<i32>} : memref<80x256xf32, #tpu.memory_space<vmem>>, vector<8x256xf32>,
    %437 = vector.extract_strided_slice %422 {offsets = [0, 241], sizes = [8, 15], strides = [1, 1]} : vector<8x256xf32> to vector<8x15xf32>
    %438 = vector.extract_strided_slice %422 {offsets = [0, 0], sizes = [8, 241], strides = [1, 1]} : vector<8x256xf32> to vector<8x241xf32>
    %439 = tpu.concatenate %437, %438 in 1 : vector<8x15xf32>, vector<8x241xf32> -> vector<8x256xf32>
    %c2_291 = arith.constant 2 : index
    %c0_292 = arith.constant 0 : index
    %440 = vector.load %arg4[%c2_291, %c0_292] : memref<9x256xf32, #tpu.memory_space<vmem>>, vector<1x256xf32>
    %441 = vector.broadcast %440 : vector<1x256xf32> to vector<8x256xf32>
    %442 = arith.mulf %439, %441 : vector<8x256xf32>
    %c16_293 = arith.constant 16 : index
    %c0_294 = arith.constant 0 : index
    %443 = vector.load %arg9[%c16_293, %c0_294] : memref<80x256xf32, #tpu.memory_space<vmem>>, vector<8x256xf32>
    tpu.vector_store %arg9[%c16_293, %c0_294], %442 {strides = array<i32>} : memref<80x256xf32, #tpu.memory_space<vmem>>, vector<8x256xf32>,
    %444 = vector.extract_strided_slice %422 {offsets = [0, 255], sizes = [8, 1], strides = [1, 1]} : vector<8x256xf32> to vector<8x1xf32>
    %445 = vector.extract_strided_slice %422 {offsets = [0, 0], sizes = [8, 255], strides = [1, 1]} : vector<8x256xf32> to vector<8x255xf32>
    %446 = tpu.concatenate %444, %445 in 1 : vector<8x1xf32>, vector<8x255xf32> -> vector<8x256xf32>
    %c3_295 = arith.constant 3 : index
    %c0_296 = arith.constant 0 : index
    %447 = vector.load %arg4[%c3_295, %c0_296] : memref<9x256xf32, #tpu.memory_space<vmem>>, vector<1x256xf32>
    %448 = vector.broadcast %447 : vector<1x256xf32> to vector<8x256xf32>
    %449 = arith.mulf %446, %448 : vector<8x256xf32>
    %c24_297 = arith.constant 24 : index
    %c0_298 = arith.constant 0 : index
    %450 = vector.load %arg9[%c24_297, %c0_298] : memref<80x256xf32, #tpu.memory_space<vmem>>, vector<8x256xf32>
    tpu.vector_store %arg9[%c24_297, %c0_298], %449 {strides = array<i32>} : memref<80x256xf32, #tpu.memory_space<vmem>>, vector<8x256xf32>,
    %c32_299 = arith.constant 32 : index
    %c0_300 = arith.constant 0 : index
    %451 = vector.load %arg9[%c32_299, %c0_300] : memref<80x256xf32, #tpu.memory_space<vmem>>, vector<8x256xf32>
    tpu.vector_store %arg9[%c32_299, %c0_300], %422 {strides = array<i32>} : memref<80x256xf32, #tpu.memory_space<vmem>>, vector<8x256xf32>,
    %452 = vector.extract_strided_slice %422 {offsets = [0, 1], sizes = [8, 255], strides = [1, 1]} : vector<8x256xf32> to vector<8x255xf32>
    %453 = vector.extract_strided_slice %422 {offsets = [0, 0], sizes = [8, 1], strides = [1, 1]} : vector<8x256xf32> to vector<8x1xf32>
    %454 = tpu.concatenate %452, %453 in 1 : vector<8x255xf32>, vector<8x1xf32> -> vector<8x256xf32>
    %c5_301 = arith.constant 5 : index
    %c0_302 = arith.constant 0 : index
    %455 = vector.load %arg4[%c5_301, %c0_302] : memref<9x256xf32, #tpu.memory_space<vmem>>, vector<1x256xf32>
    %456 = vector.broadcast %455 : vector<1x256xf32> to vector<8x256xf32>
    %457 = arith.mulf %454, %456 : vector<8x256xf32>
    %c40_303 = arith.constant 40 : index
    %c0_304 = arith.constant 0 : index
    %458 = vector.load %arg9[%c40_303, %c0_304] : memref<80x256xf32, #tpu.memory_space<vmem>>, vector<8x256xf32>
    tpu.vector_store %arg9[%c40_303, %c0_304], %457 {strides = array<i32>} : memref<80x256xf32, #tpu.memory_space<vmem>>, vector<8x256xf32>,
    %459 = vector.extract_strided_slice %422 {offsets = [0, 15], sizes = [8, 241], strides = [1, 1]} : vector<8x256xf32> to vector<8x241xf32>
    %460 = vector.extract_strided_slice %422 {offsets = [0, 0], sizes = [8, 15], strides = [1, 1]} : vector<8x256xf32> to vector<8x15xf32>
    %461 = tpu.concatenate %459, %460 in 1 : vector<8x241xf32>, vector<8x15xf32> -> vector<8x256xf32>
    %c6_305 = arith.constant 6 : index
    %c0_306 = arith.constant 0 : index
    %462 = vector.load %arg4[%c6_305, %c0_306] : memref<9x256xf32, #tpu.memory_space<vmem>>, vector<1x256xf32>
    %463 = vector.broadcast %462 : vector<1x256xf32> to vector<8x256xf32>
    %464 = arith.mulf %461, %463 : vector<8x256xf32>
    %c48_307 = arith.constant 48 : index
    %c0_308 = arith.constant 0 : index
    %465 = vector.load %arg9[%c48_307, %c0_308] : memref<80x256xf32, #tpu.memory_space<vmem>>, vector<8x256xf32>
    tpu.vector_store %arg9[%c48_307, %c0_308], %464 {strides = array<i32>} : memref<80x256xf32, #tpu.memory_space<vmem>>, vector<8x256xf32>,
    %466 = vector.extract_strided_slice %422 {offsets = [0, 16], sizes = [8, 240], strides = [1, 1]} : vector<8x256xf32> to vector<8x240xf32>
    %467 = vector.extract_strided_slice %422 {offsets = [0, 0], sizes = [8, 16], strides = [1, 1]} : vector<8x256xf32> to vector<8x16xf32>
    %468 = tpu.concatenate %466, %467 in 1 : vector<8x240xf32>, vector<8x16xf32> -> vector<8x256xf32>
    %c7_309 = arith.constant 7 : index
    %c0_310 = arith.constant 0 : index
    %469 = vector.load %arg4[%c7_309, %c0_310] : memref<9x256xf32, #tpu.memory_space<vmem>>, vector<1x256xf32>
    %470 = vector.broadcast %469 : vector<1x256xf32> to vector<8x256xf32>
    %471 = arith.mulf %468, %470 : vector<8x256xf32>
    %c56_311 = arith.constant 56 : index
    %c0_312 = arith.constant 0 : index
    %472 = vector.load %arg9[%c56_311, %c0_312] : memref<80x256xf32, #tpu.memory_space<vmem>>, vector<8x256xf32>
    tpu.vector_store %arg9[%c56_311, %c0_312], %471 {strides = array<i32>} : memref<80x256xf32, #tpu.memory_space<vmem>>, vector<8x256xf32>,
    %473 = vector.extract_strided_slice %422 {offsets = [0, 17], sizes = [8, 239], strides = [1, 1]} : vector<8x256xf32> to vector<8x239xf32>
    %474 = vector.extract_strided_slice %422 {offsets = [0, 0], sizes = [8, 17], strides = [1, 1]} : vector<8x256xf32> to vector<8x17xf32>
    %475 = tpu.concatenate %473, %474 in 1 : vector<8x239xf32>, vector<8x17xf32> -> vector<8x256xf32>
    %c8_313 = arith.constant 8 : index
    %c0_314 = arith.constant 0 : index
    %476 = vector.load %arg4[%c8_313, %c0_314] : memref<9x256xf32, #tpu.memory_space<vmem>>, vector<1x256xf32>
    %477 = vector.broadcast %476 : vector<1x256xf32> to vector<8x256xf32>
    %478 = arith.mulf %475, %477 : vector<8x256xf32>
    %c64_315 = arith.constant 64 : index
    %c0_316 = arith.constant 0 : index
    %479 = vector.load %arg9[%c64_315, %c0_316] : memref<80x256xf32, #tpu.memory_space<vmem>>, vector<8x256xf32>
    tpu.vector_store %arg9[%c64_315, %c0_316], %478 {strides = array<i32>} : memref<80x256xf32, #tpu.memory_space<vmem>>, vector<8x256xf32>,
    %c0_317 = arith.constant 0 : index
    %c0_318 = arith.constant 0 : index
    %480 = vector.load %arg2[%c0_317, %c0_318] : memref<8x80xf32, #tpu.memory_space<vmem>>, vector<8x80xf32>
    %c0_319 = arith.constant 0 : index
    %c0_320 = arith.constant 0 : index
    %481 = vector.load %arg9[%c0_319, %c0_320] : memref<80x256xf32, #tpu.memory_space<vmem>>, vector<80x256xf32>
    %cst_321 = arith.constant dense<0.000000e+00> : vector<8x256xf32>
    %482 = tpu.matmul %480, %481, %cst_321 {dimension_numbers = #tpu.dot_dimension_numbers<[1], [0], [0], [1], [0, 0, 1, 1], [], []>} : vector<8x80xf32>, vector<80x256xf32>, vector<8x256xf32> -> vector<8x256xf32>
    %cst_322 = arith.constant 0.000000e+00 : f32
    %483 = vector.broadcast %cst_322 : f32 to vector<8x256xf32>
    %484 = arith.maximumf %482, %483 : vector<8x256xf32>
    %485 = vector.extract_strided_slice %484 {offsets = [0, 239], sizes = [8, 17], strides = [1, 1]} : vector<8x256xf32> to vector<8x17xf32>
    %486 = vector.extract_strided_slice %484 {offsets = [0, 0], sizes = [8, 239], strides = [1, 1]} : vector<8x256xf32> to vector<8x239xf32>
    %487 = tpu.concatenate %485, %486 in 1 : vector<8x17xf32>, vector<8x239xf32> -> vector<8x256xf32>
    %c0_323 = arith.constant 0 : index
    %c0_324 = arith.constant 0 : index
    %488 = vector.load %arg4[%c0_323, %c0_324] : memref<9x256xf32, #tpu.memory_space<vmem>>, vector<1x256xf32>
    %489 = vector.broadcast %488 : vector<1x256xf32> to vector<8x256xf32>
    %490 = arith.mulf %487, %489 : vector<8x256xf32>
    %c0_325 = arith.constant 0 : index
    %c0_326 = arith.constant 0 : index
    %491 = vector.load %arg10[%c0_325, %c0_326] : memref<80x256xf32, #tpu.memory_space<vmem>>, vector<8x256xf32>
    tpu.vector_store %arg10[%c0_325, %c0_326], %490 {strides = array<i32>} : memref<80x256xf32, #tpu.memory_space<vmem>>, vector<8x256xf32>,
    %492 = vector.extract_strided_slice %484 {offsets = [0, 240], sizes = [8, 16], strides = [1, 1]} : vector<8x256xf32> to vector<8x16xf32>
    %493 = vector.extract_strided_slice %484 {offsets = [0, 0], sizes = [8, 240], strides = [1, 1]} : vector<8x256xf32> to vector<8x240xf32>
    %494 = tpu.concatenate %492, %493 in 1 : vector<8x16xf32>, vector<8x240xf32> -> vector<8x256xf32>
    %c1_327 = arith.constant 1 : index
    %c0_328 = arith.constant 0 : index
    %495 = vector.load %arg4[%c1_327, %c0_328] : memref<9x256xf32, #tpu.memory_space<vmem>>, vector<1x256xf32>
    %496 = vector.broadcast %495 : vector<1x256xf32> to vector<8x256xf32>
    %497 = arith.mulf %494, %496 : vector<8x256xf32>
    %c8_329 = arith.constant 8 : index
    %c0_330 = arith.constant 0 : index
    %498 = vector.load %arg10[%c8_329, %c0_330] : memref<80x256xf32, #tpu.memory_space<vmem>>, vector<8x256xf32>
    tpu.vector_store %arg10[%c8_329, %c0_330], %497 {strides = array<i32>} : memref<80x256xf32, #tpu.memory_space<vmem>>, vector<8x256xf32>,
    %499 = vector.extract_strided_slice %484 {offsets = [0, 241], sizes = [8, 15], strides = [1, 1]} : vector<8x256xf32> to vector<8x15xf32>
    %500 = vector.extract_strided_slice %484 {offsets = [0, 0], sizes = [8, 241], strides = [1, 1]} : vector<8x256xf32> to vector<8x241xf32>
    %501 = tpu.concatenate %499, %500 in 1 : vector<8x15xf32>, vector<8x241xf32> -> vector<8x256xf32>
    %c2_331 = arith.constant 2 : index
    %c0_332 = arith.constant 0 : index
    %502 = vector.load %arg4[%c2_331, %c0_332] : memref<9x256xf32, #tpu.memory_space<vmem>>, vector<1x256xf32>
    %503 = vector.broadcast %502 : vector<1x256xf32> to vector<8x256xf32>
    %504 = arith.mulf %501, %503 : vector<8x256xf32>
    %c16_333 = arith.constant 16 : index
    %c0_334 = arith.constant 0 : index
    %505 = vector.load %arg10[%c16_333, %c0_334] : memref<80x256xf32, #tpu.memory_space<vmem>>, vector<8x256xf32>
    tpu.vector_store %arg10[%c16_333, %c0_334], %504 {strides = array<i32>} : memref<80x256xf32, #tpu.memory_space<vmem>>, vector<8x256xf32>,
    %506 = vector.extract_strided_slice %484 {offsets = [0, 255], sizes = [8, 1], strides = [1, 1]} : vector<8x256xf32> to vector<8x1xf32>
    %507 = vector.extract_strided_slice %484 {offsets = [0, 0], sizes = [8, 255], strides = [1, 1]} : vector<8x256xf32> to vector<8x255xf32>
    %508 = tpu.concatenate %506, %507 in 1 : vector<8x1xf32>, vector<8x255xf32> -> vector<8x256xf32>
    %c3_335 = arith.constant 3 : index
    %c0_336 = arith.constant 0 : index
    %509 = vector.load %arg4[%c3_335, %c0_336] : memref<9x256xf32, #tpu.memory_space<vmem>>, vector<1x256xf32>
    %510 = vector.broadcast %509 : vector<1x256xf32> to vector<8x256xf32>
    %511 = arith.mulf %508, %510 : vector<8x256xf32>
    %c24_337 = arith.constant 24 : index
    %c0_338 = arith.constant 0 : index
    %512 = vector.load %arg10[%c24_337, %c0_338] : memref<80x256xf32, #tpu.memory_space<vmem>>, vector<8x256xf32>
    tpu.vector_store %arg10[%c24_337, %c0_338], %511 {strides = array<i32>} : memref<80x256xf32, #tpu.memory_space<vmem>>, vector<8x256xf32>,
    %c32_339 = arith.constant 32 : index
    %c0_340 = arith.constant 0 : index
    %513 = vector.load %arg10[%c32_339, %c0_340] : memref<80x256xf32, #tpu.memory_space<vmem>>, vector<8x256xf32>
    tpu.vector_store %arg10[%c32_339, %c0_340], %484 {strides = array<i32>} : memref<80x256xf32, #tpu.memory_space<vmem>>, vector<8x256xf32>,
    %514 = vector.extract_strided_slice %484 {offsets = [0, 1], sizes = [8, 255], strides = [1, 1]} : vector<8x256xf32> to vector<8x255xf32>
    %515 = vector.extract_strided_slice %484 {offsets = [0, 0], sizes = [8, 1], strides = [1, 1]} : vector<8x256xf32> to vector<8x1xf32>
    %516 = tpu.concatenate %514, %515 in 1 : vector<8x255xf32>, vector<8x1xf32> -> vector<8x256xf32>
    %c5_341 = arith.constant 5 : index
    %c0_342 = arith.constant 0 : index
    %517 = vector.load %arg4[%c5_341, %c0_342] : memref<9x256xf32, #tpu.memory_space<vmem>>, vector<1x256xf32>
    %518 = vector.broadcast %517 : vector<1x256xf32> to vector<8x256xf32>
    %519 = arith.mulf %516, %518 : vector<8x256xf32>
    %c40_343 = arith.constant 40 : index
    %c0_344 = arith.constant 0 : index
    %520 = vector.load %arg10[%c40_343, %c0_344] : memref<80x256xf32, #tpu.memory_space<vmem>>, vector<8x256xf32>
    tpu.vector_store %arg10[%c40_343, %c0_344], %519 {strides = array<i32>} : memref<80x256xf32, #tpu.memory_space<vmem>>, vector<8x256xf32>,
    %521 = vector.extract_strided_slice %484 {offsets = [0, 15], sizes = [8, 241], strides = [1, 1]} : vector<8x256xf32> to vector<8x241xf32>
    %522 = vector.extract_strided_slice %484 {offsets = [0, 0], sizes = [8, 15], strides = [1, 1]} : vector<8x256xf32> to vector<8x15xf32>
    %523 = tpu.concatenate %521, %522 in 1 : vector<8x241xf32>, vector<8x15xf32> -> vector<8x256xf32>
    %c6_345 = arith.constant 6 : index
    %c0_346 = arith.constant 0 : index
    %524 = vector.load %arg4[%c6_345, %c0_346] : memref<9x256xf32, #tpu.memory_space<vmem>>, vector<1x256xf32>
    %525 = vector.broadcast %524 : vector<1x256xf32> to vector<8x256xf32>
    %526 = arith.mulf %523, %525 : vector<8x256xf32>
    %c48_347 = arith.constant 48 : index
    %c0_348 = arith.constant 0 : index
    %527 = vector.load %arg10[%c48_347, %c0_348] : memref<80x256xf32, #tpu.memory_space<vmem>>, vector<8x256xf32>
    tpu.vector_store %arg10[%c48_347, %c0_348], %526 {strides = array<i32>} : memref<80x256xf32, #tpu.memory_space<vmem>>, vector<8x256xf32>,
    %528 = vector.extract_strided_slice %484 {offsets = [0, 16], sizes = [8, 240], strides = [1, 1]} : vector<8x256xf32> to vector<8x240xf32>
    %529 = vector.extract_strided_slice %484 {offsets = [0, 0], sizes = [8, 16], strides = [1, 1]} : vector<8x256xf32> to vector<8x16xf32>
    %530 = tpu.concatenate %528, %529 in 1 : vector<8x240xf32>, vector<8x16xf32> -> vector<8x256xf32>
    %c7_349 = arith.constant 7 : index
    %c0_350 = arith.constant 0 : index
    %531 = vector.load %arg4[%c7_349, %c0_350] : memref<9x256xf32, #tpu.memory_space<vmem>>, vector<1x256xf32>
    %532 = vector.broadcast %531 : vector<1x256xf32> to vector<8x256xf32>
    %533 = arith.mulf %530, %532 : vector<8x256xf32>
    %c56_351 = arith.constant 56 : index
    %c0_352 = arith.constant 0 : index
    %534 = vector.load %arg10[%c56_351, %c0_352] : memref<80x256xf32, #tpu.memory_space<vmem>>, vector<8x256xf32>
    tpu.vector_store %arg10[%c56_351, %c0_352], %533 {strides = array<i32>} : memref<80x256xf32, #tpu.memory_space<vmem>>, vector<8x256xf32>,
    %535 = vector.extract_strided_slice %484 {offsets = [0, 17], sizes = [8, 239], strides = [1, 1]} : vector<8x256xf32> to vector<8x239xf32>
    %536 = vector.extract_strided_slice %484 {offsets = [0, 0], sizes = [8, 17], strides = [1, 1]} : vector<8x256xf32> to vector<8x17xf32>
    %537 = tpu.concatenate %535, %536 in 1 : vector<8x239xf32>, vector<8x17xf32> -> vector<8x256xf32>
    %c8_353 = arith.constant 8 : index
    %c0_354 = arith.constant 0 : index
    %538 = vector.load %arg4[%c8_353, %c0_354] : memref<9x256xf32, #tpu.memory_space<vmem>>, vector<1x256xf32>
    %539 = vector.broadcast %538 : vector<1x256xf32> to vector<8x256xf32>
    %540 = arith.mulf %537, %539 : vector<8x256xf32>
    %c64_355 = arith.constant 64 : index
    %c0_356 = arith.constant 0 : index
    %541 = vector.load %arg10[%c64_355, %c0_356] : memref<80x256xf32, #tpu.memory_space<vmem>>, vector<8x256xf32>
    tpu.vector_store %arg10[%c64_355, %c0_356], %540 {strides = array<i32>} : memref<80x256xf32, #tpu.memory_space<vmem>>, vector<8x256xf32>,
    %c0_357 = arith.constant 0 : index
    %c0_358 = arith.constant 0 : index
    %542 = vector.load %arg3[%c0_357, %c0_358] : memref<16x80xf32, #tpu.memory_space<vmem>>, vector<16x80xf32>
    %c0_359 = arith.constant 0 : index
    %c0_360 = arith.constant 0 : index
    %543 = vector.load %arg10[%c0_359, %c0_360] : memref<80x256xf32, #tpu.memory_space<vmem>>, vector<80x256xf32>
    %cst_361 = arith.constant dense<0.000000e+00> : vector<16x256xf32>
    %544 = tpu.matmul %542, %543, %cst_361 {dimension_numbers = #tpu.dot_dimension_numbers<[1], [0], [0], [1], [0, 0, 1, 1], [], []>} : vector<16x80xf32>, vector<80x256xf32>, vector<16x256xf32> -> vector<16x256xf32>
    %c3_362 = arith.constant 3 : index
    %c0_363 = arith.constant 0 : index
    %c0_364 = arith.constant 0 : index
    %545 = vector.load %arg5[%c3_362, %c0_363, %c0_364] : memref<4x8x256xf32, #tpu.memory_space<vmem>>, vector<1x8x256xf32>
    %546 = vector.shape_cast %545 : vector<1x8x256xf32> to vector<8x256xf32>
    %547 = vector.shape_cast %482 : vector<8x256xf32> to vector<1x8x256xf32>
    tpu.vector_store %arg5[%c3_362, %c0_363, %c0_364], %547 {strides = array<i32>} : memref<4x8x256xf32, #tpu.memory_space<vmem>>, vector<1x8x256xf32>,
    %c3_365 = arith.constant 3 : index
    %c0_366 = arith.constant 0 : index
    %c0_367 = arith.constant 0 : index
    %548 = vector.load %arg6[%c3_365, %c0_366, %c0_367] : memref<4x8x256xf32, #tpu.memory_space<vmem>>, vector<1x8x256xf32>
    %549 = vector.shape_cast %548 : vector<1x8x256xf32> to vector<8x256xf32>
    %550 = vector.shape_cast %484 : vector<8x256xf32> to vector<1x8x256xf32>
    tpu.vector_store %arg6[%c3_365, %c0_366, %c0_367], %550 {strides = array<i32>} : memref<4x8x256xf32, #tpu.memory_space<vmem>>, vector<1x8x256xf32>,
    %c3_368 = arith.constant 3 : index
    %c0_369 = arith.constant 0 : index
    %c0_370 = arith.constant 0 : index
    %551 = vector.load %arg7[%c3_368, %c0_369, %c0_370] : memref<4x16x256xf32, #tpu.memory_space<vmem>>, vector<1x16x256xf32>
    %552 = vector.shape_cast %551 : vector<1x16x256xf32> to vector<16x256xf32>
    %553 = vector.shape_cast %544 : vector<16x256xf32> to vector<1x16x256xf32>
    tpu.vector_store %arg7[%c3_368, %c0_369, %c0_370], %553 {strides = array<i32>} : memref<4x16x256xf32, #tpu.memory_space<vmem>>, vector<1x16x256xf32>,
    return
  }
  func.func @transform_0(%arg0: i32) -> (i32, i32, i32) {
    %c0_i32 = arith.constant 0 : i32
    %c0_i32_0 = arith.constant 0 : i32
    %c0_i32_1 = arith.constant 0 : i32
    return %arg0, %c0_i32, %c0_i32_0 : i32, i32, i32
  }
  func.func @transform_1(%arg0: i32) -> (i32, i32) {
    %c0_i32 = arith.constant 0 : i32
    %c0_i32_0 = arith.constant 0 : i32
    %c0_i32_1 = arith.constant 0 : i32
    return %c0_i32, %c0_i32_0 : i32, i32
  }
  func.func @transform_2(%arg0: i32) -> (i32, i32) {
    %c0_i32 = arith.constant 0 : i32
    %c0_i32_0 = arith.constant 0 : i32
    %c0_i32_1 = arith.constant 0 : i32
    return %c0_i32, %c0_i32_0 : i32, i32
  }
  func.func @transform_3(%arg0: i32) -> (i32, i32) {
    %c0_i32 = arith.constant 0 : i32
    %c0_i32_0 = arith.constant 0 : i32
    %c0_i32_1 = arith.constant 0 : i32
    return %c0_i32, %c0_i32_0 : i32, i32
  }
  func.func @transform_4(%arg0: i32) -> (i32, i32, i32) {
    %c0_i32 = arith.constant 0 : i32
    %c0_i32_0 = arith.constant 0 : i32
    %c0_i32_1 = arith.constant 0 : i32
    return %arg0, %c0_i32, %c0_i32_0 : i32, i32, i32
  }
  func.func @transform_5(%arg0: i32) -> (i32, i32, i32) {
    %c0_i32 = arith.constant 0 : i32
    %c0_i32_0 = arith.constant 0 : i32
    %c0_i32_1 = arith.constant 0 : i32
    return %arg0, %c0_i32, %c0_i32_0 : i32, i32, i32
  }
  func.func @transform_6(%arg0: i32) -> (i32, i32, i32) {
    %c0_i32 = arith.constant 0 : i32
    %c0_i32_0 = arith.constant 0 : i32
    %c0_i32_1 = arith.constant 0 : i32
    return %arg0, %c0_i32, %c0_i32_0 : i32, i32, i32
  }
}

</mosaic_0001>

<bundles_post_ra>
// kernel: feature_extractor_forward.1
= control target key start
LH: loop header
LB: loop body
LE: loop exit
PB: predicated region body
PF: predicated region fallthrough
CT: control target
= control target key end

     0   :  { %s3174_s21 = smov 0   ;;  %s4168_s0 = inlined_call_operand.vmem [shape: f32[8,4,256], index: 0, kind: input, shape index: {}]   ;;  %s4169_s1 = inlined_call_operand.vmem [shape: f32[8,80], index: 1, kind: input, shape index: {}]   ;;  %s4170_s2 = inlined_call_operand.vmem [shape: f32[16,80], index: 2, kind: input, shape index: {}]   ;;  %s4171_s3 = inlined_call_operand.vmem [shape: f32[9,256], index: 3, kind: input, shape index: {}]   ;;  %s4172_s4 = inlined_call_operand.vmem [shape: f32[8,8,256], index: 4, kind: output, shape index: {0}]   ;;  %s4173_s5 = inlined_call_operand.vmem [shape: f32[8,8,256], index: 5, kind: output, shape index: {1}]   ;;  %s4174_s6 = inlined_call_operand.vmem [shape: f32[8,16,256], index: 6, kind: output, shape index: {2}]  }
   0x1 LB: > { %s2964_s22 = sadd.s32 4294967295, %s3127_s21   ;;  %p2968_p0 = scmp.ge.s32.totalorder %s3127_s21, 1  ;;  %s3127_s21 = sphi %s3174_s21, %s17_s21  }
   0x2   : > { %p219_p1 = scmp.lt.s32.totalorder %s3127_s21, 3 }
   0x4   : > { %p220_p2 = pnand %p2968_p0, %p219_p1 }
   0x5   : > { %s2969_s23 = sshll.u32 (!%p220_p2), %s2964_s22, 2  ;;  %s3130_s28 = smov (!%p220_p2), 112  }
   0x6   : > { %223 = sbr.rel (%p220_p2) target bundleno = 810 (0x32a), region = 36  ;;  %p264_p3 = scmp.lt.s32.totalorder (!%p220_p2), %s2969_s23, 7 }
   0x7   : > { %s3131_s29 = smov (!%p220_p2), 111   ;;  %s3133_s30 = smov (!%p220_p2), 1  }
   0x8   : > { %s3134_s7 = smov (!%p220_p2), 113   ;;  %s3135_s8 = smov (!%p220_p2), 127  }
   0x9   : > { %s3136_s9 = smov (!%p220_p2), 15   ;;  %s3137_s10 = smov (!%p220_p2), 16  }
   0xa   : > { %s3138_s11 = smov (!%p220_p2), 17  }
   0xb   : > { %v3129_v0 = vmov 0.0   ;;  %s4176_s23 = smov (!%p264_p3, %s2969_s23), 7  ;;  %v293_v3 = vlaneseq  ;;  %v3132_v9 = vmov 1.0   ;;  %v2988_v24 = vld [vmem:[%s4171_s3 + $0x10] ss:$8 sm:$0x3] }
   0xc   : > { %291 = vst [vmem:[#allocation2] sm:$0xff] %v3129_v0  ;;  %292 = vst [vmem:[#allocation2 + $0x8] sm:$0xff] %v3129_v0  ;;  %618 = vmatprep.mubr.f32.mxu0 %v3129_v0  ;;  %923 = vmatprep.mubr.f32.mxu1 %v3129_v0  ;;  %s3079_s24 = sshll.u32 %s4176_s23, 3  ;;  %v2987_v29 = vld [vmem:[%s4171_s3 + $0x7] ss:$8 sm:$0x3] }
   0xd   : > { %s3192_s27 = scalar_lea.vmem %s4168_s0, %s3079_s24  ;;  %v3196_v5 = vshrl.u32 %v293_v3, 7  ;;  %vm479_vm1 = vcmask 916480   ;;  %vm506_vm2 = vcmask 908288   ;;  %v2986_v32 = vld [vmem:[%s4171_s3 + $0x6] ss:$8 sm:$0x3] }
   0xe   : > { %v302_v1 = vld [vmem:[%s3192_s27] sm:$0xff]  ;;  %v2999_v4 = vld [vmem:[%s3192_s27 + $0x8] sm:$0xff]  ;;  %v3025_v10 = vld [vmem:[%s3192_s27 + $0x10] sm:$0xff]  ;;  %vm452_vm3 = vcmask 924672   ;;  %vm425_vm4 = vcmask 1039360   ;;  %vm397_vm5 = vcmask 7168  }
   0xf   : > { %306 = vst [vmem:[#allocation2] sm:$0xf] %v302_v1  ;;  %v304_v2 = vcombine.high %v302_v1, %v302_v1  ;;  %v947_v6 = vcombine.high %v2999_v4, %v2999_v4  ;;  %vm295_vm0 = vcmp.eq.s32.totalorder %v3196_v5, 0  ;;  %v1577_v11 = vcombine.high %v3025_v10, %v3025_v10  ;;  %v3051_v14 = vld [vmem:[%s3192_s27 + $0x18] sm:$0xff]  ;;  %s3080_s24 = sshll.u32 %s4176_s23, 4 }
  0x10   : > { %3083 = vmatprep.subr.msk.mxu0 %vm295_vm0, %v3132_v9  ;;  %3085 = vmatprep.subr.msk.mxu1 %vm295_vm0, %v3132_v9  ;;  %v2207_v15 = vcombine.high %v3051_v14, %v3051_v14  ;;  %v3359_v27 = vsub.s32 0, %v3196_v5  ;;  %v3362_v28 = vsub.s32 1, %v3196_v5  ;;  %v2985_v41 = vld [vmem:[%s4171_s3 + $0x5] ss:$8 sm:$0x3]  ;;  %vm370_vm6 = vcmask 121856   ;;  %s3637_s27 = scalar_lea.vmem %s4172_s4, %s3080_s24  ;;  %s3642_s14 = scalar_lea.vmem %s4173_s5, %s3080_s24 }
  0x11   : > { %307 = vst [vmem:[#allocation2 + $0x8] sm:$0xf] %v304_v2  ;;  %3084 = vmatpush1.msk.msra.mxu0 %vm295_vm0, %v3132_v9  ;;  %3086 = vmatpush1.msk.msra.mxu1 %vm295_vm0, %v3132_v9  ;;  %v2984_v55 = vld [vmem:[%s4171_s3 + $0x3] ss:$8 sm:$0x3]  ;;  %vm343_vm7 = vcmask 130048  }
  0x12   : > { %v522_v30 = vrot.slane %v2988_v24, %v3362_v28  ;;  %v518_v31 = vrot.slane %v2988_v24, %v3359_v27  ;;  %v495_v35 = vrot.slane %v2987_v29, %v3362_v28  ;;  %v491_v36 = vrot.slane %v2987_v29, %v3359_v27  ;;  %v2983_v59 = vld [vmem:[%s4171_s3 + $0x2] ss:$8 sm:$0x3] }
  0x13   : > { %v468_v40 = vrot.slane %v2986_v32, %v3362_v28  ;;  %v464_v46 = vrot.slane %v2986_v32, %v3359_v27  ;;  %v441_v51 = vrot.slane %v2985_v41, %v3362_v28  ;;  %v437_v54 = vrot.slane %v2985_v41, %v3359_v27 }
  0x14   : > { %v412_v63 = vrot.slane %v2984_v55, %v3362_v28  ;;  %v408_v3 = vrot.slane %v2984_v55, %v3359_v27  ;;  %vm317_vm8 = vcmask 138240   ;;  %vm550_vm9 = vcmask 654336  }
  0x16   : > { %v3198_v7 = vld [vmem:[#allocation2] sm:$0xff] }
  0x17   : > { %475 = vrot.lane.b32.xlu1 %v3198_v7, %s3130_s28  ;;  %502 = vrot.lane.b32.xlu0 %v3198_v7, %s3131_s29  ;;  %949 = vst [vmem:[#allocation2] sm:$0xf] %v2999_v4  ;;  %v2982_v4 = vld [vmem:[%s4171_s3 + $0x1] ss:$8 sm:$0x3] }
  0x18   : > { %v3205_v8 = vld [vmem:[#allocation2 + $0x8] sm:$0xff]  ;;  %v358_v24 = vrot.slane %v2982_v4, %v3362_v28  ;;  %v354_v29 = vrot.slane %v2982_v4, %v3359_v27 }
  0x19   : > { %950 = vst [vmem:[#allocation2 + $0x8] sm:$0xf] %v947_v6 }
  0x1b   : > { %395 = vrot.lane.b32.xlu1 %v3198_v7, %s3133_s30  ;;  %448 = vrot.lane.b32.xlu0 %v3198_v7, %s3134_s7 }
  0x1e   : > { %v3224_v12 = vld [vmem:[#allocation2] sm:$0xff] }
  0x1f   : > { %421 = vrot.lane.b32.xlu0 %v3198_v7, %s3135_s8  ;;  %477 = vrot.lane.b32.xlu1 %v3205_v8, %s3130_s28  ;;  %1579 = vst [vmem:[#allocation2] sm:$0xf] %v3025_v10  ;;  %v385_v10 = vrot.slane %v2983_v59, %v3362_v28 }
  0x20   : > { %v3230_v13 = vld [vmem:[#allocation2 + $0x8] sm:$0xff] }
  0x21   : > { %1580 = vst [vmem:[#allocation2 + $0x8] sm:$0xf] %v1577_v11 }
  0x23   : > { %450 = vrot.lane.b32.xlu1 %v3205_v8, %s3134_s7  ;;  %504 = vrot.lane.b32.xlu0 %v3205_v8, %s3131_s29 }
  0x26   : > { %v3237_v16 = vld [vmem:[#allocation2] sm:$0xff] }
  0x27   : > { %423 = vrot.lane.b32.xlu1 %v3205_v8, %s3135_s8  ;;  %392 = vrot.lane.b32.xlu0 %v3205_v8, %s3133_s30  ;;  %2209 = vst [vmem:[#allocation2] sm:$0xf] %v3051_v14  ;;  %v381_v14 = vrot.slane %v2983_v59, %v3359_v27 }
  0x28   : > { %v3243_v17 = vld [vmem:[#allocation2 + $0x8] sm:$0xff] }
  0x29   : > { %2210 = vst [vmem:[#allocation2 + $0x8] sm:$0xf] %v2207_v15  ;;  %v322_v15 = vld [vmem:[%s4171_s3] ss:$8 sm:$0x3] }
  0x2a   : > { %v331_v32 = vrot.slane %v322_v15, %v3362_v28 }
  0x2b   : > { %368 = vrot.lane.b32.xlu1 %v3198_v7, %s3136_s9  ;;  %365 = vrot.lane.b32.xlu0 %v3205_v8, %s3136_s9 }
  0x2e   : > { %v3321_v18 = vld [vmem:[#allocation2] sm:$0xff] }
  0x2f   : > { %341 = vrot.lane.b32.xlu1 %v3198_v7, %s3137_s10  ;;  %338 = vrot.lane.b32.xlu0 %v3205_v8, %s3137_s10 }
  0x30   : > { %v3323_v19 = vld [vmem:[#allocation2 + $0x8] sm:$0xff] }
  0x33   : > { %315 = vrot.lane.b32.xlu1 %v3198_v7, %s3138_s11  ;;  %311 = vrot.lane.b32.xlu0 %v3205_v8, %s3138_s11 }
  0x37   : > { %1132 = vrot.lane.b32.xlu0 %v3224_v12, %s3131_s29  ;;  %1134 = vrot.lane.b32.xlu1 %v3230_v13, %s3131_s29 }
  0x3b   : > { %1107 = vrot.lane.b32.xlu0 %v3224_v12, %s3130_s28  ;;  %1109 = vrot.lane.b32.xlu1 %v3230_v13, %s3130_s28 }
  0x3f   : > { %1082 = vrot.lane.b32.xlu0 %v3224_v12, %s3134_s7  ;;  %1084 = vrot.lane.b32.xlu1 %v3230_v13, %s3134_s7 }
  0x43   : > { %1057 = vrot.lane.b32.xlu0 %v3224_v12, %s3135_s8  ;;  %1059 = vrot.lane.b32.xlu1 %v3230_v13, %s3135_s8 }
  0x47   : > { %1030 = vrot.lane.b32.xlu0 %v3230_v13, %s3133_s30  ;;  %1033 = vrot.lane.b32.xlu1 %v3224_v12, %s3133_s30 }
  0x4b   : > { %1005 = vrot.lane.b32.xlu0 %v3230_v13, %s3136_s9  ;;  %1008 = vrot.lane.b32.xlu1 %v3224_v12, %s3136_s9 }
  0x4f   : > { %980 = vrot.lane.b32.xlu0 %v3230_v13, %s3137_s10  ;;  %983 = vrot.lane.b32.xlu1 %v3224_v12, %s3137_s10 }
  0x53   : > { %954 = vrot.lane.b32.xlu0 %v3230_v13, %s3138_s11  ;;  %958 = vrot.lane.b32.xlu1 %v3224_v12, %s3138_s11 }
  0x57   : > { %1762 = vrot.lane.b32.xlu0 %v3237_v16, %s3131_s29  ;;  %1764 = vrot.lane.b32.xlu1 %v3243_v17, %s3131_s29 }
  0x5b   : > { %1737 = vrot.lane.b32.xlu0 %v3237_v16, %s3130_s28  ;;  %1739 = vrot.lane.b32.xlu1 %v3243_v17, %s3130_s28 }
  0x5f   : > { %1712 = vrot.lane.b32.xlu0 %v3237_v16, %s3134_s7  ;;  %1714 = vrot.lane.b32.xlu1 %v3243_v17, %s3134_s7 }
  0x63   : > { %1687 = vrot.lane.b32.xlu0 %v3237_v16, %s3135_s8  ;;  %1689 = vrot.lane.b32.xlu1 %v3243_v17, %s3135_s8 }
  0x67   : > { %1660 = vrot.lane.b32.xlu0 %v3243_v17, %s3133_s30  ;;  %1663 = vrot.lane.b32.xlu1 %v3237_v16, %s3133_s30 }
  0x6b   : > { %1635 = vrot.lane.b32.xlu0 %v3243_v17, %s3136_s9  ;;  %1638 = vrot.lane.b32.xlu1 %v3237_v16, %s3136_s9 }
  0x6f   : > { %1610 = vrot.lane.b32.xlu0 %v3243_v17, %s3137_s10  ;;  %1613 = vrot.lane.b32.xlu1 %v3237_v16, %s3137_s10 }
  0x73   : > { %1584 = vrot.lane.b32.xlu0 %v3243_v17, %s3138_s11  ;;  %1588 = vrot.lane.b32.xlu1 %v3237_v16, %s3138_s11 }
  0x77   : > { %2392 = vrot.lane.b32.xlu0 %v3321_v18, %s3131_s29  ;;  %2394 = vrot.lane.b32.xlu1 %v3323_v19, %s3131_s29 }
  0x7b   : > { %2367 = vrot.lane.b32.xlu0 %v3321_v18, %s3130_s28  ;;  %2369 = vrot.lane.b32.xlu1 %v3323_v19, %s3130_s28 }
  0x7f   : > { %2342 = vrot.lane.b32.xlu0 %v3321_v18, %s3134_s7  ;;  %2344 = vrot.lane.b32.xlu1 %v3323_v19, %s3134_s7 }
  0x83   : > { %2317 = vrot.lane.b32.xlu0 %v3321_v18, %s3135_s8  ;;  %2319 = vrot.lane.b32.xlu1 %v3323_v19, %s3135_s8 }
  0x87   : > { %2290 = vrot.lane.b32.xlu0 %v3323_v19, %s3133_s30  ;;  %2293 = vrot.lane.b32.xlu1 %v3321_v18, %s3133_s30 }
  0x89   : > { %v476_v20 = vpop.permute.xlu1 %475  ;;  %v503_v21 = vpop.permute.xlu0 %502 }
  0x8b   : > { %2265 = vrot.lane.b32.xlu0 %v3323_v19, %s3136_s9  ;;  %2268 = vrot.lane.b32.xlu1 %v3321_v18, %s3136_s9 }
  0x8d   : > { %v3349_v22 = vpop.permute.xlu1 %395  ;;  %v449_v23 = vpop.permute.xlu0 %448 }
  0x8f   : > { %2240 = vrot.lane.b32.xlu0 %v3323_v19, %s3137_s10  ;;  %2243 = vrot.lane.b32.xlu1 %v3321_v18, %s3137_s10 }
  0x91   : > { %v422_v25 = vpop.permute.xlu0 %421  ;;  %v478_v26 = vpop.permute.xlu1 %477 }
  0x92   : > { %v484_v37 = vsel %vm479_vm1, %v478_v26, %v476_v20  ;;  %v480_v42 = vsel %vm479_vm1, %v476_v20, %v478_v26 }
  0x93   : > { %2214 = vrot.lane.b32.xlu0 %v3323_v19, %s3138_s11  ;;  %2218 = vrot.lane.b32.xlu1 %v3321_v18, %s3138_s11  ;;  %v499_v50 = vmul.f32 %v495_v35, %v484_v37  ;;  %v498_v53 = vmul.f32 %v491_v36, %v480_v42 }
  0x95   : > { %v451_v33 = vpop.permute.xlu1 %450  ;;  %v505_v34 = vpop.permute.xlu0 %504 }
  0x96   : > { %v507_v38 = vsel %vm506_vm2, %v503_v21, %v505_v34  ;;  %v511_v39 = vsel %vm506_vm2, %v505_v34, %v503_v21  ;;  %v457_v45 = vsel %vm452_vm3, %v451_v33, %v449_v23  ;;  %v453_v47 = vsel %vm452_vm3, %v449_v23, %v451_v33  ;;  %v3006_v34 = vld [vmem:[%s4171_s3 + $0x10] ss:$8 sm:$0x3] }
  0x97   : > { %v526_v43 = vmul.f32 %v522_v30, %v511_v39  ;;  %v525_v44 = vmul.f32 %v518_v31, %v507_v38  ;;  %v472_v57 = vmul.f32 %v468_v40, %v457_v45  ;;  %v471_v58 = vmul.f32 %v464_v46, %v453_v47  ;;  %v3436_v45 = vld [vmem:[%s4169_s1] sm:$0xff] }
  0x98   : > { %v1146_v41 = vrot.slane %v3006_v34, %v3359_v27 }
  0x99   : > { %v424_v48 = vpop.permute.xlu1 %423  ;;  %568 = vmatprep.subr.mxu0 %v526_v43  ;;  %v393_v49 = vpop.permute.xlu0 %392  ;;  %v1150_v43 = vrot.slane %v3006_v34, %v3362_v28 }
  0x9a   : > { %v430_v52 = vsel %vm425_vm4, %v424_v48, %v422_v25  ;;  %569 = vmatpush1.msra.mxu0 %v525_v44  ;;  %v426_v56 = vsel %vm425_vm4, %v422_v25, %v424_v48  ;;  %v398_v1 = vsel %vm397_vm5, %v3349_v22, %v393_v49  ;;  %v401_v6 = vsel %vm397_vm5, %v393_v49, %v3349_v22  ;;  %v3005_v44 = vld [vmem:[%s4171_s3 + $0x7] ss:$8 sm:$0x3] }
  0x9b   : > { %570 = vmatprep.subr.mxu0 %v499_v50  ;;  %v445_v62 = vmul.f32 %v441_v51, %v430_v52  ;;  %v444_v2 = vmul.f32 %v437_v54, %v426_v56  ;;  %v416_v22 = vmul.f32 %v412_v63, %v398_v1  ;;  %v415_v26 = vmul.f32 %v408_v3, %v401_v6  ;;  %v3004_v54 = vld [vmem:[%s4171_s3 + $0x6] ss:$8 sm:$0x3]  ;;  %v3003_v63 = vld [vmem:[%s4171_s3 + $0x5] ss:$8 sm:$0x3] }
  0x9c   : > { %571 = vmatpush1.msra.mxu0 %v498_v53  ;;  %v1121_v50 = vrot.slane %v3005_v44, %v3359_v27  ;;  %v1125_v53 = vrot.slane %v3005_v44, %v3362_v28 }
  0x9d   : > { %v369_v60 = vpop.permute.xlu1 %368  ;;  %572 = vmatprep.subr.mxu0 %v472_v57  ;;  %v366_v61 = vpop.permute.xlu0 %365 }
  0x9e   : > { %573 = vmatpush1.msra.mxu0 %v471_v58  ;;  %v371_v11 = vsel %vm370_vm6, %v369_v60, %v366_v61  ;;  %v374_v20 = vsel %vm370_vm6, %v366_v61, %v369_v60  ;;  %v1096_v61 = vrot.slane %v3004_v54, %v3359_v27 }
  0x9f   : > { %574 = vmatprep.subr.mxu0 %v445_v62  ;;  %v389_v31 = vmul.f32 %v385_v10, %v371_v11  ;;  %v388_v33 = vmul.f32 %v381_v14, %v374_v20  ;;  %v1100_v62 = vrot.slane %v3004_v54, %v3362_v28  ;;  %v1071_v11 = vrot.slane %v3003_v63, %v3359_v27  ;;  %v3032_v54 = vld [vmem:[%s4171_s3 + $0x10] ss:$8 sm:$0x3] }
  0xa0   : > { %575 = vmatpush1.msra.mxu0 %v444_v2  ;;  %v1075_v14 = vrot.slane %v3003_v63, %v3362_v28  ;;  %v3031_v63 = vld [vmem:[%s4171_s3 + $0x7] ss:$8 sm:$0x3] }
  0xa1   : > { %v342_v21 = vpop.permute.xlu1 %341  ;;  %576 = vmatprep.subr.mxu0 %v3205_v8  ;;  %v339_v23 = vpop.permute.xlu0 %338  ;;  %v327_v8 = vrot.slane %v322_v15, %v3359_v27  ;;  %v3002_v15 = vld [vmem:[%s4171_s3 + $0x3] ss:$8 sm:$0x3] }
  0xa2   : > { %v344_v25 = vsel %vm343_vm7, %v342_v21, %v339_v23  ;;  %577 = vmatpush1.msra.mxu0 %v3198_v7  ;;  %v347_v30 = vsel %vm343_vm7, %v339_v23, %v342_v21 }
  0xa3   : > { %578 = vmatprep.subr.mxu0 %v416_v22  ;;  %v362_v36 = vmul.f32 %v358_v24, %v344_v25  ;;  %v361_v39 = vmul.f32 %v354_v29, %v347_v30  ;;  %v1048_v29 = vrot.slane %v3002_v15, %v3362_v28  ;;  %v3001_v30 = vld [vmem:[%s4171_s3 + $0x2] ss:$8 sm:$0x3] }
  0xa4   : > { %579 = vmatpush1.msra.mxu0 %v415_v26  ;;  %v1044_v26 = vrot.slane %v3002_v15, %v3359_v27  ;;  %v3030_v15 = vld [vmem:[%s4171_s3 + $0x6] ss:$8 sm:$0x3] }
  0xa5   : > { %v316_v35 = vpop.permute.xlu1 %315  ;;  %580 = vmatprep.subr.mxu0 %v389_v31  ;;  %v312_v7 = vpop.permute.xlu0 %311 }
  0xa6   : > { %v318_v37 = vsel %vm317_vm8, %v316_v35, %v312_v7  ;;  %v321_v38 = vsel %vm317_vm8, %v312_v7, %v316_v35  ;;  %581 = vmatpush1.msra.mxu0 %v388_v33  ;;  %v1019_v7 = vrot.slane %v3001_v30, %v3359_v27 }
  0xa7   : > { %582 = vmatprep.subr.mxu0 %v362_v36  ;;  %v335_v40 = vmul.f32 %v331_v32, %v318_v37  ;;  %v334_v42 = vmul.f32 %v327_v8, %v321_v38  ;;  %v1023_v36 = vrot.slane %v3001_v30, %v3362_v28  ;;  %v3000_v37 = vld [vmem:[%s4171_s3 + $0x1] ss:$8 sm:$0x3]  ;;  %v3029_v30 = vld [vmem:[%s4171_s3 + $0x5] ss:$8 sm:$0x3] }
  0xa8   : > { %583 = vmatpush1.msra.mxu0 %v361_v39  ;;  %v998_v44 = vrot.slane %v3000_v37, %v3362_v28 }
  0xa9   : > { %584 = vmatprep.subr.mxu0 %v335_v40  ;;  %v1133_v46 = vpop.permute.xlu0 %1132  ;;  %v1135_v47 = vpop.permute.xlu1 %1134 }
  0xaa   : > { %v1136_v48 = vsel %vm506_vm2, %v1133_v46, %v1135_v47  ;;  %v1140_v49 = vsel %vm506_vm2, %v1135_v47, %v1133_v46  ;;  %585 = vmatpush1.msra.mxu0 %v334_v42 }
  0xab   : > { %v1153_v51 = vmul.f32 %v1146_v41, %v1136_v48  ;;  %2989 = vmatmul.mubr.msk.f32.vlgmr.msra.gmra.mxu0 %vm550_vm9, %v3436_v45  ;;  %3087 = vmatprep.subr.msk.mxu0 %vm295_vm0, %v3132_v9  ;;  %v1154_v52 = vmul.f32 %v1150_v43, %v1140_v49  ;;  %v994_v43 = vrot.slane %v3000_v37, %v3359_v27  ;;  %v3028_v37 = vld [vmem:[%s4171_s3 + $0x3] ss:$8 sm:$0x3] }
  0xac   : > { %3088 = vmatpush1.msk.msra.mxu0 %vm295_vm0, %v3132_v9  ;;  %1245 = vmatprep.mubr.f32.mxu0 %v3129_v0 }
  0xad   : > { %v1108_v55 = vpop.permute.xlu0 %1107  ;;  %1195 = vmatprep.subr.mxu0 %v1154_v52  ;;  %v1110_v56 = vpop.permute.xlu1 %1109 }
  0xae   : > { %v1111_v57 = vsel %vm479_vm1, %v1108_v55, %v1110_v56  ;;  %v1115_v58 = vsel %vm479_vm1, %v1110_v56, %v1108_v55  ;;  %1196 = vmatpush1.msra.mxu0 %v1153_v51 }
  0xaf   : > { %v1128_v59 = vmul.f32 %v1121_v50, %v1111_v57  ;;  %v1129_v60 = vmul.f32 %v1125_v53, %v1115_v58 }
  0xb1   : > { %v1083_v1 = vpop.permute.xlu0 %1082  ;;  %1197 = vmatprep.subr.mxu0 %v1129_v60  ;;  %v1085_v2 = vpop.permute.xlu1 %1084 }
  0xb2   : > { %v1086_v3 = vsel %vm452_vm3, %v1083_v1, %v1085_v2  ;;  %v1090_v4 = vsel %vm452_vm3, %v1085_v2, %v1083_v1  ;;  %1198 = vmatpush1.msra.mxu0 %v1128_v59 }
  0xb3   : > { %v1103_v6 = vmul.f32 %v1096_v61, %v1086_v3  ;;  %v1104_v10 = vmul.f32 %v1100_v62, %v1090_v4  ;;  %v1776_v61 = vrot.slane %v3032_v54, %v3359_v27  ;;  %v1780_v62 = vrot.slane %v3032_v54, %v3362_v28  ;;  %v3026_v54 = vld [vmem:[%s4171_s3 + $0x1] ss:$8 sm:$0x3] }
  0xb5   : > { %v1058_v20 = vpop.permute.xlu0 %1057  ;;  %1199 = vmatprep.subr.mxu0 %v1104_v10  ;;  %v1060_v21 = vpop.permute.xlu1 %1059 }
  0xb6   : > { %v1061_v23 = vsel %vm425_vm4, %v1058_v20, %v1060_v21  ;;  %v1065_v22 = vsel %vm425_vm4, %v1060_v21, %v1058_v20  ;;  %1200 = vmatpush1.msra.mxu0 %v1103_v6  ;;  %v1751_v6 = vrot.slane %v3031_v63, %v3359_v27 }
  0xb7   : > { %v1078_v24 = vmul.f32 %v1071_v11, %v1061_v23  ;;  %v1079_v25 = vmul.f32 %v1075_v14, %v1065_v22  ;;  %v1755_v14 = vrot.slane %v3031_v63, %v3362_v28 }
  0xb9   : > { %v1031_v31 = vpop.permute.xlu0 %1030  ;;  %1201 = vmatprep.subr.mxu0 %v1079_v25  ;;  %v1034_v32 = vpop.permute.xlu1 %1033 }
  0xba   : > { %v1035_v8 = vsel %vm397_vm5, %v1034_v32, %v1031_v31  ;;  %v1038_v33 = vsel %vm397_vm5, %v1031_v31, %v1034_v32  ;;  %1202 = vmatpush1.msra.mxu0 %v1078_v24 }
  0xbb   : > { %v1051_v34 = vmul.f32 %v1044_v26, %v1038_v33  ;;  %1203 = vmatprep.subr.mxu0 %v3230_v13  ;;  %v1052_v35 = vmul.f32 %v1048_v29, %v1035_v8  ;;  %v1726_v26 = vrot.slane %v3030_v15, %v3359_v27  ;;  %v1730_v29 = vrot.slane %v3030_v15, %v3362_v28 }
  0xbc   : > { %1204 = vmatpush1.msra.mxu0 %v3224_v12  ;;  %v964_v12 = vld [vmem:[%s4171_s3] ss:$8 sm:$0x3] }
  0xbd   : > { %v1006_v38 = vpop.permute.xlu0 %1005  ;;  %1205 = vmatprep.subr.mxu0 %v1052_v35  ;;  %v1009_v39 = vpop.permute.xlu1 %1008  ;;  %v969_v52 = vrot.slane %v964_v12, %v3359_v27  ;;  %v973_v53 = vrot.slane %v964_v12, %v3362_v28  ;;  %v3027_v12 = vld [vmem:[%s4171_s3 + $0x2] ss:$8 sm:$0x3] }
  0xbe   : > { %v1010_v40 = vsel %vm370_vm6, %v1009_v39, %v1006_v38  ;;  %v1013_v41 = vsel %vm370_vm6, %v1006_v38, %v1009_v39  ;;  %1206 = vmatpush1.msra.mxu0 %v1051_v34 }
  0xbf   : > { %v1026_v13 = vmul.f32 %v1019_v7, %v1013_v41  ;;  %v1027_v42 = vmul.f32 %v1023_v36, %v1010_v40  ;;  %v1701_v7 = vrot.slane %v3029_v30, %v3359_v27  ;;  %v1705_v36 = vrot.slane %v3029_v30, %v3362_v28 }
  0xc1   : > { %v981_v46 = vpop.permute.xlu0 %980  ;;  %1207 = vmatprep.subr.mxu0 %v1027_v42  ;;  %v984_v47 = vpop.permute.xlu1 %983 }
  0xc2   : > { %v985_v48 = vsel %vm343_vm7, %v984_v47, %v981_v46  ;;  %v988_v49 = vsel %vm343_vm7, %v981_v46, %v984_v47  ;;  %1208 = vmatpush1.msra.mxu0 %v1026_v13 }
  0xc3   : > { %v1001_v50 = vmul.f32 %v994_v43, %v988_v49  ;;  %v1002_v51 = vmul.f32 %v998_v44, %v985_v48  ;;  %v1674_v43 = vrot.slane %v3028_v37, %v3359_v27  ;;  %v1678_v44 = vrot.slane %v3028_v37, %v3362_v28 }
  0xc5   : > { %v955_v55 = vpop.permute.xlu0 %954  ;;  %1209 = vmatprep.subr.mxu0 %v1002_v51  ;;  %v959_v56 = vpop.permute.xlu1 %958 }
  0xc6   : > { %v960_v57 = vsel %vm317_vm8, %v959_v56, %v955_v55  ;;  %v963_v58 = vsel %vm317_vm8, %v955_v55, %v959_v56  ;;  %1210 = vmatpush1.msra.mxu0 %v1001_v50 }
  0xc7   : > { %v976_v59 = vmul.f32 %v969_v52, %v963_v58  ;;  %v977_v60 = vmul.f32 %v973_v53, %v960_v57  ;;  %v1649_v52 = vrot.slane %v3027_v12, %v3359_v27  ;;  %v1653_v53 = vrot.slane %v3027_v12, %v3362_v28 }
  0xc9   : > { %v1763_v1 = vpop.permute.xlu0 %1762  ;;  %1211 = vmatprep.subr.mxu0 %v977_v60  ;;  %v1765_v2 = vpop.permute.xlu1 %1764  ;;  %v1624_v60 = vrot.slane %v3026_v54, %v3359_v27 }
  0xca   : > { %v1766_v3 = vsel %vm506_vm2, %v1763_v1, %v1765_v2  ;;  %v1770_v4 = vsel %vm506_vm2, %v1765_v2, %v1763_v1  ;;  %1212 = vmatpush1.msra.mxu0 %v976_v59 }
  0xcb   : > { %v1783_v10 = vmul.f32 %v1776_v61, %v1766_v3  ;;  %v1784_v11 = vmul.f32 %v1780_v62, %v1770_v4  ;;  %3007 = vmatmul.mubr.msk.f32.vlgmr.msra.gmra.mxu0 %vm550_vm9, %v3436_v45  ;;  %3091 = vmatprep.subr.msk.mxu0 %vm295_vm0, %v3132_v9  ;;  %v1628_v61 = vrot.slane %v3026_v54, %v3362_v28 }
  0xcc   : > { %3092 = vmatpush1.msk.msra.mxu0 %vm295_vm0, %v3132_v9  ;;  %1875 = vmatprep.mubr.f32.mxu0 %v3129_v0 }
  0xcd   : > { %v1738_v20 = vpop.permute.xlu0 %1737  ;;  %1825 = vmatprep.subr.mxu0 %v1784_v11  ;;  %v1740_v21 = vpop.permute.xlu1 %1739  ;;  %v3058_v11 = vld [vmem:[%s4171_s3 + $0x10] ss:$8 sm:$0x3] }
  0xce   : > { %v1741_v23 = vsel %vm479_vm1, %v1738_v20, %v1740_v21  ;;  %v1745_v22 = vsel %vm479_vm1, %v1740_v21, %v1738_v20  ;;  %1826 = vmatpush1.msra.mxu0 %v1783_v10 }
  0xcf   : > { %v1758_v24 = vmul.f32 %v1751_v6, %v1741_v23  ;;  %v1759_v25 = vmul.f32 %v1755_v14, %v1745_v22 }
  0xd1   : > { %v1713_v31 = vpop.permute.xlu0 %1712  ;;  %1827 = vmatprep.subr.mxu0 %v1759_v25  ;;  %v1715_v32 = vpop.permute.xlu1 %1714  ;;  %v2410_v25 = vrot.slane %v3058_v11, %v3362_v28 }
  0xd2   : > { %v1716_v8 = vsel %vm452_vm3, %v1713_v31, %v1715_v32  ;;  %v1720_v33 = vsel %vm452_vm3, %v1715_v32, %v1713_v31  ;;  %1828 = vmatpush1.msra.mxu0 %v1758_v24  ;;  %v2406_v24 = vrot.slane %v3058_v11, %v3359_v27 }
  0xd3   : > { %v1733_v34 = vmul.f32 %v1726_v26, %v1716_v8  ;;  %v1734_v35 = vmul.f32 %v1730_v29, %v1720_v33  ;;  %v3057_v26 = vld [vmem:[%s4171_s3 + $0x7] ss:$8 sm:$0x3] }
  0xd4   : > { %v2381_v8 = vrot.slane %v3057_v26, %v3359_v27 }
  0xd5   : > { %v1688_v38 = vpop.permute.xlu0 %1687  ;;  %1829 = vmatprep.subr.mxu0 %v1734_v35  ;;  %v1690_v39 = vpop.permute.xlu1 %1689  ;;  %v2385_v35 = vrot.slane %v3057_v26, %v3362_v28 }
  0xd6   : > { %v1691_v40 = vsel %vm425_vm4, %v1688_v38, %v1690_v39  ;;  %v1695_v41 = vsel %vm425_vm4, %v1690_v39, %v1688_v38  ;;  %1830 = vmatpush1.msra.mxu0 %v1733_v34 }
  0xd7   : > { %v1708_v13 = vmul.f32 %v1701_v7, %v1691_v40  ;;  %v1709_v42 = vmul.f32 %v1705_v36, %v1695_v41  ;;  %v3056_v7 = vld [vmem:[%s4171_s3 + $0x6] ss:$8 sm:$0x3] }
  0xd9   : > { %v1661_v46 = vpop.permute.xlu0 %1660  ;;  %1831 = vmatprep.subr.mxu0 %v1709_v42  ;;  %v1664_v47 = vpop.permute.xlu1 %1663  ;;  %v2360_v42 = vrot.slane %v3056_v7, %v3362_v28 }
  0xda   : > { %v1665_v48 = vsel %vm397_vm5, %v1664_v47, %v1661_v46  ;;  %v1668_v49 = vsel %vm397_vm5, %v1661_v46, %v1664_v47  ;;  %1832 = vmatpush1.msra.mxu0 %v1708_v13  ;;  %v2356_v13 = vrot.slane %v3056_v7, %v3359_v27 }
  0xdb   : > { %v1681_v50 = vmul.f32 %v1674_v43, %v1668_v49  ;;  %v1682_v51 = vmul.f32 %v1678_v44, %v1665_v48  ;;  %1833 = vmatprep.subr.mxu0 %v3243_v17  ;;  %v3055_v43 = vld [vmem:[%s4171_s3 + $0x5] ss:$8 sm:$0x3] }
  0xdc   : > { %1834 = vmatpush1.msra.mxu0 %v3237_v16  ;;  %v1594_v16 = vld [vmem:[%s4171_s3] ss:$8 sm:$0x3] }
  0xdd   : > { %v1636_v55 = vpop.permute.xlu0 %1635  ;;  %1835 = vmatprep.subr.mxu0 %v1682_v51  ;;  %v1639_v56 = vpop.permute.xlu1 %1638  ;;  %v1599_v6 = vrot.slane %v1594_v16, %v3359_v27  ;;  %v1603_v10 = vrot.slane %v1594_v16, %v3362_v28  ;;  %v2335_v51 = vrot.slane %v3055_v43, %v3362_v28 }
  0xde   : > { %v1640_v57 = vsel %vm370_vm6, %v1639_v56, %v1636_v55  ;;  %v1643_v58 = vsel %vm370_vm6, %v1636_v55, %v1639_v56  ;;  %1836 = vmatpush1.msra.mxu0 %v1681_v50  ;;  %v2331_v50 = vrot.slane %v3055_v43, %v3359_v27 }
  0xdf   : > { %v1656_v59 = vmul.f32 %v1649_v52, %v1643_v58  ;;  %v1657_v17 = vmul.f32 %v1653_v53, %v1640_v57  ;;  %v3054_v52 = vld [vmem:[%s4171_s3 + $0x3] ss:$8 sm:$0x3] }
  0xe1   : > { %v1611_v62 = vpop.permute.xlu0 %1610  ;;  %1837 = vmatprep.subr.mxu0 %v1657_v17  ;;  %v1614_v63 = vpop.permute.xlu1 %1613  ;;  %v2308_v17 = vrot.slane %v3054_v52, %v3362_v28 }
  0xe2   : > { %v1615_v1 = vsel %vm343_vm7, %v1614_v63, %v1611_v62  ;;  %v1618_v2 = vsel %vm343_vm7, %v1611_v62, %v1614_v63  ;;  %1838 = vmatpush1.msra.mxu0 %v1656_v59  ;;  %v2304_v59 = vrot.slane %v3054_v52, %v3359_v27 }
  0xe3   : > { %v1631_v3 = vmul.f32 %v1624_v60, %v1618_v2  ;;  %v1632_v4 = vmul.f32 %v1628_v61, %v1615_v1  ;;  %v3053_v60 = vld [vmem:[%s4171_s3 + $0x2] ss:$8 sm:$0x3] }
  0xe5   : > { %v1585_v14 = vpop.permute.xlu0 %1584  ;;  %1839 = vmatprep.subr.mxu0 %v1632_v4  ;;  %v1589_v15 = vpop.permute.xlu1 %1588  ;;  %v2283_v4 = vrot.slane %v3053_v60, %v3362_v28 }
  0xe6   : > { %v1590_v20 = vsel %vm317_vm8, %v1589_v15, %v1585_v14  ;;  %v1593_v21 = vsel %vm317_vm8, %v1585_v14, %v1589_v15  ;;  %1840 = vmatpush1.msra.mxu0 %v1631_v3  ;;  %v2279_v3 = vrot.slane %v3053_v60, %v3359_v27 }
  0xe7   : > { %v1606_v23 = vmul.f32 %v1599_v6, %v1593_v21  ;;  %v1607_v22 = vmul.f32 %v1603_v10, %v1590_v20  ;;  %v3052_v6 = vld [vmem:[%s4171_s3 + $0x1] ss:$8 sm:$0x3] }
  0xe8   : > { %v2254_v21 = vrot.slane %v3052_v6, %v3359_v27 }
  0xe9   : > { %v2393_v29 = vpop.permute.xlu0 %2392  ;;  %1841 = vmatprep.subr.mxu0 %v1607_v22  ;;  %v2395_v30 = vpop.permute.xlu1 %2394 }
  0xea   : > { %v2396_v31 = vsel %vm506_vm2, %v2393_v29, %v2395_v30  ;;  %v2400_v32 = vsel %vm506_vm2, %v2395_v30, %v2393_v29  ;;  %1842 = vmatpush1.msra.mxu0 %v1606_v23  ;;  %v2258_v23 = vrot.slane %v3052_v6, %v3362_v28 }
  0xeb   : > { %v2413_v33 = vmul.f32 %v2406_v24, %v2396_v31  ;;  %v2414_v34 = vmul.f32 %v2410_v25, %v2400_v32  ;;  %3033 = vmatmul.mubr.msk.f32.vlgmr.msra.gmra.mxu0 %vm550_vm9, %v3436_v45  ;;  %3095 = vmatprep.subr.msk.mxu0 %vm295_vm0, %v3132_v9 }
  0xec   : > { %3096 = vmatpush1.msk.msra.mxu0 %vm295_vm0, %v3132_v9  ;;  %2505 = vmatprep.mubr.f32.mxu0 %v3129_v0 }
  0xed   : > { %v2368_v36 = vpop.permute.xlu0 %2367  ;;  %2455 = vmatprep.subr.mxu0 %v2414_v34  ;;  %v2370_v37 = vpop.permute.xlu1 %2369 }
  0xee   : > { %v2371_v38 = vsel %vm479_vm1, %v2368_v36, %v2370_v37  ;;  %v2375_v39 = vsel %vm479_vm1, %v2370_v37, %v2368_v36  ;;  %2456 = vmatpush1.msra.mxu0 %v2413_v33 }
  0xef   : > { %v2388_v40 = vmul.f32 %v2381_v8, %v2371_v38  ;;  %v2389_v41 = vmul.f32 %v2385_v35, %v2375_v39 }
  0xf1   : > { %v2343_v44 = vpop.permute.xlu0 %2342  ;;  %2457 = vmatprep.subr.mxu0 %v2389_v41  ;;  %v2345_v12 = vpop.permute.xlu1 %2344 }
  0xf2   : > { %v2346_v46 = vsel %vm452_vm3, %v2343_v44, %v2345_v12  ;;  %v2350_v47 = vsel %vm452_vm3, %v2345_v12, %v2343_v44  ;;  %2458 = vmatpush1.msra.mxu0 %v2388_v40 }
  0xf3   : > { %v2363_v48 = vmul.f32 %v2356_v13, %v2346_v46  ;;  %v2364_v49 = vmul.f32 %v2360_v42, %v2350_v47 }
  0xf5   : > { %v2318_v53 = vpop.permute.xlu0 %2317  ;;  %2459 = vmatprep.subr.mxu0 %v2364_v49  ;;  %v2320_v54 = vpop.permute.xlu1 %2319 }
  0xf6   : > { %v2321_v55 = vsel %vm425_vm4, %v2318_v53, %v2320_v54  ;;  %v2325_v56 = vsel %vm425_vm4, %v2320_v54, %v2318_v53  ;;  %2460 = vmatpush1.msra.mxu0 %v2363_v48 }
  0xf7   : > { %v2338_v57 = vmul.f32 %v2331_v50, %v2321_v55  ;;  %v2339_v58 = vmul.f32 %v2335_v51, %v2325_v56 }
  0xf9   : > { %v2291_v61 = vpop.permute.xlu0 %2290  ;;  %2461 = vmatprep.subr.mxu0 %v2339_v58  ;;  %v2294_v16 = vpop.permute.xlu1 %2293 }
  0xfa   : > { %v2295_v62 = vsel %vm397_vm5, %v2294_v16, %v2291_v61  ;;  %v2298_v63 = vsel %vm397_vm5, %v2291_v61, %v2294_v16  ;;  %2462 = vmatpush1.msra.mxu0 %v2338_v57  ;;  %v2996_v57 = vld [vmem:[%s4171_s3 + $0x10] ss:$8 sm:$0x3]  ;;  %v2995_v61 = vld [vmem:[%s4171_s3 + $0x7] ss:$8 sm:$0x3] }
  0xfb   : > { %v2311_v1 = vmul.f32 %v2304_v59, %v2298_v63  ;;  %v2312_v2 = vmul.f32 %v2308_v17, %v2295_v62  ;;  %2463 = vmatprep.subr.mxu0 %v3323_v19  ;;  %v820_v17 = vrot.slane %v2996_v57, %v3359_v27  ;;  %v824_v60 = vrot.slane %v2996_v57, %v3362_v28 }
  0xfc   : > { %2464 = vmatpush1.msra.mxu0 %v3321_v18  ;;  %v2224_v18 = vld [vmem:[%s4171_s3] ss:$8 sm:$0x3]  ;;  %v799_v6 = vrot.slane %v2995_v61, %v3362_v28 }
  0xfd   : > { %v2266_v10 = vpop.permute.xlu0 %2265  ;;  %2465 = vmatprep.subr.mxu0 %v2312_v2  ;;  %v2269_v11 = vpop.permute.xlu1 %2268  ;;  %v2229_v31 = vrot.slane %v2224_v18, %v3359_v27  ;;  %v2233_v32 = vrot.slane %v2224_v18, %v3362_v28 }
  0xfe   : > { %v2270_v14 = vsel %vm370_vm6, %v2269_v11, %v2266_v10  ;;  %v2273_v15 = vsel %vm370_vm6, %v2266_v10, %v2269_v11  ;;  %2466 = vmatpush1.msra.mxu0 %v2311_v1  ;;  %v2994_v10 = vld [vmem:[%s4171_s3 + $0x6] ss:$8 sm:$0x3] }
  0xff   : > { %v2286_v20 = vmul.f32 %v2279_v3, %v2273_v15  ;;  %v2287_v19 = vmul.f32 %v2283_v4, %v2270_v14  ;;  %v795_v4 = vrot.slane %v2995_v61, %v3359_v27  ;;  %v774_v18 = vrot.slane %v2994_v10, %v3362_v28 }
 0x101   : > { %v2241_v22 = vpop.permute.xlu0 %2240  ;;  %2467 = vmatprep.subr.mxu0 %v2287_v19  ;;  %v2244_v24 = vpop.permute.xlu1 %2243 }
 0x102   : > { %v2245_v25 = vsel %vm343_vm7, %v2244_v24, %v2241_v22  ;;  %v2248_v26 = vsel %vm343_vm7, %v2241_v22, %v2244_v24  ;;  %2468 = vmatpush1.msra.mxu0 %v2286_v20  ;;  %v2993_v22 = vld [vmem:[%s4171_s3 + $0x5] ss:$8 sm:$0x3] }
 0x103   : > { %v2261_v29 = vmul.f32 %v2254_v21, %v2248_v26  ;;  %v2262_v30 = vmul.f32 %v2258_v23, %v2245_v25  ;;  %v770_v23 = vrot.slane %v2994_v10, %v3359_v27 }
 0x105   : > { %v2215_v8 = vpop.permute.xlu0 %2214  ;;  %2469 = vmatprep.subr.mxu0 %v2262_v30  ;;  %v2219_v33 = vpop.permute.xlu1 %2218 }
 0x106   : > { %v2220_v34 = vsel %vm317_vm8, %v2219_v33, %v2215_v8  ;;  %v2223_v35 = vsel %vm317_vm8, %v2215_v8, %v2219_v33  ;;  %2470 = vmatpush1.msra.mxu0 %v2261_v29  ;;  %v749_v8 = vrot.slane %v2993_v22, %v3362_v28  ;;  %v2992_v33 = vld [vmem:[%s4171_s3 + $0x3] ss:$8 sm:$0x3] }
 0x107   : > { %v2236_v7 = vmul.f32 %v2229_v31, %v2223_v35  ;;  %v2237_v36 = vmul.f32 %v2233_v32, %v2220_v34  ;;  %v745_v32 = vrot.slane %v2993_v22, %v3359_v27  ;;  %v3910_v22 = vld [vmem:[%s4170_s2 + $0x8] sm:$0xff] }
 0x109   : > { %2471 = vmatprep.subr.mxu0 %v2237_v36 }
 0x10a   : > { %2472 = vmatpush1.msra.mxu0 %v2236_v7  ;;  %v2991_v7 = vld [vmem:[%s4171_s3 + $0x2] ss:$8 sm:$0x3] }
 0x10b   : > { %3059 = vmatmul.mubr.msk.f32.vlgmr.msra.gmra.mxu0 %vm550_vm9, %v3436_v45  ;;  %v693_v57 = vrot.slane %v2991_v7, %v3359_v27 }
 0x16b   : > { %v620_v37 = vpop.f32.mrf.mxu0 }
 0x16c   : > { %v3644_v38 = vmax.f32 %v620_v37, 0.0  ;;  %936 = vst [vmem:[%s3637_s27] sm:$0xff] %v620_v37 }
 0x16d   : > { %v622_v45 = vpop.f32.mrf.mxu0 }
 0x16e   : > { %938 = vst [vmem:[%s3642_s14] sm:$0xff] %v3644_v38  ;;  %v3649_v39 = vmax.f32 %v622_v45, 0.0  ;;  %937 = vst [vmem:[%s3637_s27 + $0x8] sm:$0xff] %v622_v45  ;;  %806 = vrot.lane.b32.xlu0 %v3644_v38, %s3131_s29  ;;  %707 = vrot.lane.b32.xlu1 %v3644_v38, %s3133_s30  ;;  %v722_v45 = vrot.slane %v2992_v33, %v3362_v28 }
 0x170   : > { %939 = vst [vmem:[%s3642_s14 + $0x8] sm:$0xff] %v3649_v39 }
 0x172   : > { %781 = vrot.lane.b32.xlu0 %v3644_v38, %s3130_s28  ;;  %682 = vrot.lane.b32.xlu1 %v3644_v38, %s3136_s9 }
 0x176   : > { %756 = vrot.lane.b32.xlu0 %v3644_v38, %s3134_s7  ;;  %657 = vrot.lane.b32.xlu1 %v3644_v38, %s3137_s10 }
 0x17a   : > { %731 = vrot.lane.b32.xlu0 %v3644_v38, %s3135_s8  ;;  %632 = vrot.lane.b32.xlu1 %v3644_v38, %s3138_s11 }
 0x17e   : > { %704 = vrot.lane.b32.xlu0 %v3649_v39, %s3133_s30  ;;  %808 = vrot.lane.b32.xlu1 %v3649_v39, %s3131_s29 }
 0x182   : > { %679 = vrot.lane.b32.xlu0 %v3649_v39, %s3136_s9  ;;  %783 = vrot.lane.b32.xlu1 %v3649_v39, %s3130_s28 }
 0x186   : > { %654 = vrot.lane.b32.xlu0 %v3649_v39, %s3137_s10  ;;  %758 = vrot.lane.b32.xlu1 %v3649_v39, %s3134_s7 }
 0x18a   : > { %628 = vrot.lane.b32.xlu0 %v3649_v39, %s3138_s11  ;;  %733 = vrot.lane.b32.xlu1 %v3649_v39, %s3135_s8 }
 0x18b   : > { %v1247_v40 = vpop.f32.mrf.mxu0 }
 0x18c   : > { %v3686_v41 = vmax.f32 %v1247_v40, 0.0  ;;  %3017 = vst [vmem:[%s3637_s27 + $0x10] sm:$0xff] %v1247_v40 }
 0x18d   : > { %v1249_v13 = vpop.f32.mrf.mxu0 }
 0x18e   : > { %3019 = vst [vmem:[%s3642_s14 + $0x10] sm:$0xff] %v3686_v41  ;;  %v3691_v42 = vmax.f32 %v1249_v13, 0.0  ;;  %3018 = vst [vmem:[%s3637_s27 + $0x18] sm:$0xff] %v1249_v13  ;;  %1433 = vrot.lane.b32.xlu0 %v3686_v41, %s3131_s29  ;;  %1334 = vrot.lane.b32.xlu1 %v3686_v41, %s3133_s30 }
 0x190   : > { %3020 = vst [vmem:[%s3642_s14 + $0x18] sm:$0xff] %v3691_v42 }
 0x192   : > { %1408 = vrot.lane.b32.xlu0 %v3686_v41, %s3130_s28  ;;  %1309 = vrot.lane.b32.xlu1 %v3686_v41, %s3136_s9 }
 0x196   : > { %1383 = vrot.lane.b32.xlu0 %v3686_v41, %s3134_s7  ;;  %1284 = vrot.lane.b32.xlu1 %v3686_v41, %s3137_s10 }
 0x19a   : > { %1358 = vrot.lane.b32.xlu0 %v3686_v41, %s3135_s8  ;;  %1259 = vrot.lane.b32.xlu1 %v3686_v41, %s3138_s11 }
 0x19e   : > { %1331 = vrot.lane.b32.xlu0 %v3691_v42, %s3133_s30  ;;  %1435 = vrot.lane.b32.xlu1 %v3691_v42, %s3131_s29 }
 0x1a2   : > { %1306 = vrot.lane.b32.xlu0 %v3691_v42, %s3136_s9  ;;  %1410 = vrot.lane.b32.xlu1 %v3691_v42, %s3130_s28 }
 0x1a6   : > { %1281 = vrot.lane.b32.xlu0 %v3691_v42, %s3137_s10  ;;  %1385 = vrot.lane.b32.xlu1 %v3691_v42, %s3134_s7 }
 0x1aa   : > { %1255 = vrot.lane.b32.xlu0 %v3691_v42, %s3138_s11  ;;  %1360 = vrot.lane.b32.xlu1 %v3691_v42, %s3135_s8 }
 0x1ab   : > { %v1877_v43 = vpop.f32.mrf.mxu0 }
 0x1ac   : > { %v3728_v44 = vmax.f32 %v1877_v43, 0.0  ;;  %3043 = vst [vmem:[%s3637_s27 + $0x20] sm:$0xff] %v1877_v43  ;;  %v718_v43 = vrot.slane %v2992_v33, %v3359_v27 }
 0x1ad   : > { %v1879_v12 = vpop.f32.mrf.mxu0 }
 0x1ae   : > { %3045 = vst [vmem:[%s3642_s14 + $0x20] sm:$0xff] %v3728_v44  ;;  %v3733_v46 = vmax.f32 %v1879_v12, 0.0  ;;  %3044 = vst [vmem:[%s3637_s27 + $0x28] sm:$0xff] %v1879_v12  ;;  %2063 = vrot.lane.b32.xlu0 %v3728_v44, %s3131_s29  ;;  %1964 = vrot.lane.b32.xlu1 %v3728_v44, %s3133_s30 }
 0x1b0   : > { %3046 = vst [vmem:[%s3642_s14 + $0x28] sm:$0xff] %v3733_v46 }
 0x1b2   : > { %2038 = vrot.lane.b32.xlu0 %v3728_v44, %s3130_s28  ;;  %1939 = vrot.lane.b32.xlu1 %v3728_v44, %s3136_s9 }
 0x1b6   : > { %2013 = vrot.lane.b32.xlu0 %v3728_v44, %s3134_s7  ;;  %1914 = vrot.lane.b32.xlu1 %v3728_v44, %s3137_s10 }
 0x1ba   : > { %1988 = vrot.lane.b32.xlu0 %v3728_v44, %s3135_s8  ;;  %1889 = vrot.lane.b32.xlu1 %v3728_v44, %s3138_s11 }
 0x1be   : > { %1961 = vrot.lane.b32.xlu0 %v3733_v46, %s3133_s30  ;;  %2065 = vrot.lane.b32.xlu1 %v3733_v46, %s3131_s29 }
 0x1c2   : > { %1936 = vrot.lane.b32.xlu0 %v3733_v46, %s3136_s9  ;;  %2040 = vrot.lane.b32.xlu1 %v3733_v46, %s3130_s28 }
 0x1c6   : > { %1911 = vrot.lane.b32.xlu0 %v3733_v46, %s3137_s10  ;;  %2015 = vrot.lane.b32.xlu1 %v3733_v46, %s3134_s7 }
 0x1ca   : > { %1885 = vrot.lane.b32.xlu0 %v3733_v46, %s3138_s11  ;;  %1990 = vrot.lane.b32.xlu1 %v3733_v46, %s3135_s8 }
 0x1cb   : > { %v2507_v47 = vpop.f32.mrf.mxu0 }
 0x1cc   : > { %v3770_v48 = vmax.f32 %v2507_v47, 0.0  ;;  %3069 = vst [vmem:[%s3637_s27 + $0x30] sm:$0xff] %v2507_v47  ;;  %v2990_v47 = vld [vmem:[%s4171_s3 + $0x1] ss:$8 sm:$0x3] }
 0x1cd   : > { %v2509_v49 = vpop.f32.mrf.mxu0  ;;  %v672_v61 = vrot.slane %v2990_v47, %v3362_v28 }
 0x1ce   : > { %3071 = vst [vmem:[%s3642_s14 + $0x30] sm:$0xff] %v3770_v48  ;;  %v3775_v50 = vmax.f32 %v2509_v49, 0.0  ;;  %3070 = vst [vmem:[%s3637_s27 + $0x38] sm:$0xff] %v2509_v49  ;;  %2594 = vrot.lane.b32.xlu1 %v3770_v48, %s3133_s30  ;;  %2693 = vrot.lane.b32.xlu0 %v3770_v48, %s3131_s29 }
 0x1d0   : > { %3072 = vst [vmem:[%s3642_s14 + $0x38] sm:$0xff] %v3775_v50 }
 0x1d2   : > { %2668 = vrot.lane.b32.xlu0 %v3770_v48, %s3130_s28  ;;  %2695 = vrot.lane.b32.xlu1 %v3775_v50, %s3131_s29 }
 0x1d6   : > { %2643 = vrot.lane.b32.xlu0 %v3770_v48, %s3134_s7  ;;  %2670 = vrot.lane.b32.xlu1 %v3775_v50, %s3130_s28 }
 0x1da   : > { %2618 = vrot.lane.b32.xlu0 %v3770_v48, %s3135_s8  ;;  %2645 = vrot.lane.b32.xlu1 %v3775_v50, %s3134_s7 }
 0x1de   : > { %2591 = vrot.lane.b32.xlu0 %v3775_v50, %s3133_s30  ;;  %2620 = vrot.lane.b32.xlu1 %v3775_v50, %s3135_s8  ;;  %s3082_s30 = sshll.u32 %s4176_s23, 5 }
 0x1e0   : > { %v807_v51 = vpop.permute.xlu0 %806  ;;  %v708_v52 = vpop.permute.xlu1 %707 }
 0x1e2   : > { %2566 = vrot.lane.b32.xlu0 %v3775_v50, %s3136_s9  ;;  %2569 = vrot.lane.b32.xlu1 %v3770_v48, %s3136_s9  ;;  %s4147_s9 = scalar_lea.vmem %s4174_s6, %s3082_s30 }
 0x1e4   : > { %v782_v53 = vpop.permute.xlu0 %781  ;;  %v3804_v54 = vpop.permute.xlu1 %682 }
 0x1e6   : > { %2541 = vrot.lane.b32.xlu0 %v3775_v50, %s3137_s10  ;;  %2544 = vrot.lane.b32.xlu1 %v3770_v48, %s3137_s10 }
 0x1e8   : > { %v757_v55 = vpop.permute.xlu0 %756  ;;  %v3810_v56 = vpop.permute.xlu1 %657 }
 0x1ea   : > { %2515 = vrot.lane.b32.xlu0 %v3775_v50, %s3138_s11  ;;  %2519 = vrot.lane.b32.xlu1 %v3770_v48, %s3138_s11 }
 0x1ec   : > { %v732_v58 = vpop.permute.xlu0 %731  ;;  %v3819_v59 = vpop.permute.xlu1 %632 }
 0x1f0   : > { %v705_v16 = vpop.permute.xlu0 %704  ;;  %v809_v62 = vpop.permute.xlu1 %808 }
 0x1f1   : > { %v810_v63 = vsel %vm506_vm2, %v807_v51, %v809_v62  ;;  %v814_v1 = vsel %vm506_vm2, %v809_v62, %v807_v51  ;;  %v709_v12 = vsel %vm397_vm5, %v708_v52, %v705_v16  ;;  %v712_v49 = vsel %vm397_vm5, %v705_v16, %v708_v52 }
 0x1f2   : > { %v827_v2 = vmul.f32 %v820_v17, %v810_v63  ;;  %v828_v3 = vmul.f32 %v824_v60, %v814_v1  ;;  %v697_v51 = vrot.slane %v2991_v7, %v3362_v28  ;;  %v638_v17 = vld [vmem:[%s4171_s3] ss:$8 sm:$0x3]  ;;  %v726_v60 = vmul.f32 %v722_v45, %v709_v12  ;;  %v3012_v7 = vld [vmem:[%s4171_s3 + $0x6] ss:$8 sm:$0x3] }
 0x1f3   : > { %v725_v16 = vmul.f32 %v718_v43, %v712_v49  ;;  %v668_v62 = vrot.slane %v2990_v47, %v3359_v27  ;;  %v1397_v12 = vrot.slane %v3012_v7, %v3359_v27  ;;  %v1401_v47 = vrot.slane %v3012_v7, %v3362_v28  ;;  %v3011_v49 = vld [vmem:[%s4171_s3 + $0x5] ss:$8 sm:$0x3] }
 0x1f4   : > { %v680_v11 = vpop.permute.xlu0 %679  ;;  %873 = vmatprep.subr.mxu1 %v828_v3  ;;  %v784_v14 = vpop.permute.xlu1 %783  ;;  %v647_v3 = vrot.slane %v638_v17, %v3362_v28 }
 0x1f5   : > { %v785_v15 = vsel %vm479_vm1, %v782_v53, %v784_v14  ;;  %v789_v20 = vsel %vm479_vm1, %v784_v14, %v782_v53  ;;  %874 = vmatpush1.msra.mxu1 %v827_v2  ;;  %v687_v52 = vsel %vm370_vm6, %v680_v11, %v3804_v54 }
 0x1f6   : > { %v802_v19 = vmul.f32 %v795_v4, %v785_v15  ;;  %v803_v21 = vmul.f32 %v799_v6, %v789_v20  ;;  %v700_v6 = vmul.f32 %v693_v57, %v687_v52  ;;  %v1372_v52 = vrot.slane %v3011_v49, %v3359_v27 }
 0x1f8   : > { %v655_v24 = vpop.permute.xlu0 %654  ;;  %875 = vmatprep.subr.mxu1 %v803_v21  ;;  %v759_v25 = vpop.permute.xlu1 %758  ;;  %v3891_v21 = vld [vmem:[%s4170_s2] sm:$0xff] }
 0x1f9   : > { %v760_v26 = vsel %vm452_vm3, %v757_v55, %v759_v25  ;;  %v764_v29 = vsel %vm452_vm3, %v759_v25, %v757_v55  ;;  %876 = vmatpush1.msra.mxu1 %v802_v19  ;;  %v659_v63 = vsel %vm343_vm7, %v3810_v56, %v655_v24  ;;  %v662_v2 = vsel %vm343_vm7, %v655_v24, %v3810_v56 }
 0x1fa   : > { %v777_v30 = vmul.f32 %v770_v23, %v760_v26  ;;  %v778_v31 = vmul.f32 %v774_v18, %v764_v29  ;;  %v675_v14 = vmul.f32 %v668_v62, %v662_v2  ;;  %v3013_v26 = vld [vmem:[%s4171_s3 + $0x7] ss:$8 sm:$0x3] }
 0x1fc   : > { %v629_v34 = vpop.permute.xlu0 %628  ;;  %877 = vmatprep.subr.mxu1 %v778_v31  ;;  %v734_v35 = vpop.permute.xlu1 %733 }
 0x1fd   : > { %v735_v36 = vsel %vm425_vm4, %v732_v58, %v734_v35  ;;  %v739_v37 = vsel %vm425_vm4, %v734_v35, %v732_v58  ;;  %878 = vmatpush1.msra.mxu1 %v777_v30  ;;  %v684_v58 = vsel %vm370_vm6, %v3804_v54, %v680_v11  ;;  %v634_v10 = vsel %vm317_vm8, %v3819_v59, %v629_v34 }
 0x1fe   : > { %v752_v40 = vmul.f32 %v745_v32, %v735_v36  ;;  %v753_v13 = vmul.f32 %v749_v8, %v739_v37  ;;  %v701_v1 = vmul.f32 %v697_v51, %v684_v58  ;;  %v676_v11 = vmul.f32 %v672_v61, %v659_v63 }
 0x1ff   : > { %v651_v56 = vmul.f32 %v647_v3, %v634_v10  ;;  %v1426_v35 = vrot.slane %v3013_v26, %v3362_v28  ;;  %v1376_v61 = vrot.slane %v3011_v49, %v3362_v28 }
 0x200   : > { %v1434_v53 = vpop.permute.xlu0 %1433  ;;  %879 = vmatprep.subr.mxu1 %v753_v13  ;;  %v3860_v55 = vpop.permute.xlu1 %1334 }
 0x201   : > { %880 = vmatpush1.msra.mxu1 %v752_v40 }
 0x202   : > { %881 = vmatprep.subr.mxu1 %v3649_v39  ;;  %v643_v39 = vrot.slane %v638_v17, %v3359_v27 }
 0x203   : > { %882 = vmatpush1.msra.mxu1 %v3644_v38  ;;  %v637_v38 = vsel %vm317_vm8, %v629_v34, %v3819_v59  ;;  %v3014_v59 = vld [vmem:[%s4171_s3 + $0x10] ss:$8 sm:$0x3]  ;;  %v1422_v34 = vrot.slane %v3013_v26, %v3359_v27 }
 0x204   : > { %v1409_v4 = vpop.permute.xlu0 %1408  ;;  %883 = vmatprep.subr.mxu1 %v726_v60  ;;  %v3879_v54 = vpop.permute.xlu1 %1309  ;;  %v650_v19 = vmul.f32 %v643_v39, %v637_v38  ;;  %v1447_v24 = vrot.slane %v3014_v59, %v3359_v27  ;;  %v1451_v25 = vrot.slane %v3014_v59, %v3362_v28  ;;  %v3008_v38 = vld [vmem:[%s4171_s3 + $0x1] ss:$8 sm:$0x3] }
 0x205   : > { %884 = vmatpush1.msra.mxu1 %v725_v16  ;;  %v3010_v16 = vld [vmem:[%s4171_s3 + $0x3] ss:$8 sm:$0x3]  ;;  %v1299_v26 = vrot.slane %v3008_v38, %v3362_v28 }
 0x206   : > { %885 = vmatprep.subr.mxu1 %v701_v1  ;;  %v3009_v1 = vld [vmem:[%s4171_s3 + $0x2] ss:$8 sm:$0x3]  ;;  %v1345_v10 = vrot.slane %v3010_v16, %v3359_v27 }
 0x207   : > { %886 = vmatpush1.msra.mxu1 %v700_v6  ;;  %v1320_v59 = vrot.slane %v3009_v1, %v3359_v27 }
 0x208   : > { %v1384_v15 = vpop.permute.xlu0 %1383  ;;  %887 = vmatprep.subr.mxu1 %v676_v11  ;;  %v3886_v20 = vpop.permute.xlu1 %1284 }
 0x209   : > { %888 = vmatpush1.msra.mxu1 %v675_v14 }
 0x20a   : > { %889 = vmatprep.subr.mxu1 %v651_v56  ;;  %v1324_v56 = vrot.slane %v3009_v1, %v3362_v28 }
 0x20b   : > { %890 = vmatpush1.msra.mxu1 %v650_v19 }
 0x20c   : > { %v1359_v23 = vpop.permute.xlu0 %1358  ;;  %v3896_v18 = vpop.permute.xlu1 %1259  ;;  %3089 = vmatprep.subr.msk.mxu1 %vm295_vm0, %v3132_v9  ;;  %2997 = vmatmul.mubr.msk.f32.vlgmr.msra.gmra.mxu1 %vm550_vm9, %v3891_v21 }
 0x20d   : > { %3090 = vmatpush1.msk.msra.mxu1 %vm295_vm0, %v3132_v9  ;;  %929 = vmatprep.mubr.f32.mxu1 %v3129_v0 }
 0x210   : > { %v1332_v29 = vpop.permute.xlu0 %1331  ;;  %v1436_v30 = vpop.permute.xlu1 %1435  ;;  %2998 = vmatmul.mubr.msk.f32.gmra.mxu1 %vm550_vm9, %v3910_v22 }
 0x211   : > { %v1437_v31 = vsel %vm506_vm2, %v1434_v53, %v1436_v30  ;;  %v1441_v32 = vsel %vm506_vm2, %v1436_v30, %v1434_v53  ;;  %1550 = vmatprep.mubr.f32.mxu1 %v3129_v0  ;;  %v1336_v11 = vsel %vm397_vm5, %v3860_v55, %v1332_v29  ;;  %v1339_v14 = vsel %vm397_vm5, %v1332_v29, %v3860_v55 }
 0x212   : > { %v1454_v8 = vmul.f32 %v1447_v24, %v1437_v31  ;;  %v1455_v33 = vmul.f32 %v1451_v25, %v1441_v32  ;;  %v1265_v24 = vld [vmem:[%s4171_s3] ss:$8 sm:$0x3]  ;;  %v1352_v29 = vmul.f32 %v1345_v10, %v1339_v14  ;;  %v1295_v30 = vrot.slane %v3008_v38, %v3359_v27 }
 0x214   : > { %v1307_v36 = vpop.permute.xlu0 %1306  ;;  %1500 = vmatprep.subr.mxu1 %v1455_v33  ;;  %v1411_v37 = vpop.permute.xlu1 %1410  ;;  %v1274_v33 = vrot.slane %v1265_v24, %v3362_v28 }
 0x215   : > { %v1412_v45 = vsel %vm479_vm1, %v1409_v4, %v1411_v37  ;;  %v1416_v40 = vsel %vm479_vm1, %v1411_v37, %v1409_v4  ;;  %1501 = vmatpush1.msra.mxu1 %v1454_v8  ;;  %v1349_v4 = vrot.slane %v3010_v16, %v3362_v28  ;;  %v1314_v55 = vsel %vm370_vm6, %v1307_v36, %v3879_v54 }
 0x216   : > { %v1429_v13 = vmul.f32 %v1422_v34, %v1412_v45  ;;  %v1430_v43 = vmul.f32 %v1426_v35, %v1416_v40  ;;  %v1327_v35 = vmul.f32 %v1320_v59, %v1314_v55  ;;  %v3036_v55 = vld [vmem:[%s4171_s3 + $0x3] ss:$8 sm:$0x3] }
 0x217   : > { %v1353_v25 = vmul.f32 %v1349_v4, %v1336_v11  ;;  %v3037_v11 = vld [vmem:[%s4171_s3 + $0x5] ss:$8 sm:$0x3] }
 0x218   : > { %v1282_v51 = vpop.permute.xlu0 %1281  ;;  %1502 = vmatprep.subr.mxu1 %v1430_v43  ;;  %v1386_v53 = vpop.permute.xlu1 %1385  ;;  %v3040_v43 = vld [vmem:[%s4171_s3 + $0x10] ss:$8 sm:$0x3] }
 0x219   : > { %v1387_v57 = vsel %vm452_vm3, %v1384_v15, %v1386_v53  ;;  %v1391_v58 = vsel %vm452_vm3, %v1386_v53, %v1384_v15  ;;  %1503 = vmatpush1.msra.mxu1 %v1429_v13  ;;  %v1286_v31 = vsel %vm343_vm7, %v3886_v20, %v1282_v51  ;;  %v1289_v8 = vsel %vm343_vm7, %v1282_v51, %v3886_v20  ;;  %v3039_v51 = vld [vmem:[%s4171_s3 + $0x7] ss:$8 sm:$0x3] }
 0x21a   : > { %v1404_v17 = vmul.f32 %v1397_v12, %v1387_v57  ;;  %v1405_v60 = vmul.f32 %v1401_v47, %v1391_v58  ;;  %v1302_v37 = vmul.f32 %v1295_v30, %v1289_v8  ;;  %v2081_v49 = vrot.slane %v3040_v43, %v3362_v28  ;;  %v3035_v30 = vld [vmem:[%s4171_s3 + $0x2] ss:$8 sm:$0x3] }
 0x21b   : > { %v2056_v16 = vrot.slane %v3039_v51, %v3362_v28  ;;  %v1979_v8 = vrot.slane %v3036_v55, %v3362_v28 }
 0x21c   : > { %v1256_v62 = vpop.permute.xlu0 %1255  ;;  %1504 = vmatprep.subr.mxu1 %v1405_v60  ;;  %v1361_v63 = vpop.permute.xlu1 %1360 }
 0x21d   : > { %v1362_v2 = vsel %vm425_vm4, %v1359_v23, %v1361_v63  ;;  %v1366_v3 = vsel %vm425_vm4, %v1361_v63, %v1359_v23  ;;  %1505 = vmatpush1.msra.mxu1 %v1404_v17  ;;  %v1311_v23 = vsel %vm370_vm6, %v3879_v54, %v1307_v36  ;;  %v1261_v7 = vsel %vm317_vm8, %v3896_v18, %v1256_v62 }
 0x21e   : > { %v1379_v6 = vmul.f32 %v1372_v52, %v1362_v2  ;;  %v1380_v39 = vmul.f32 %v1376_v61, %v1366_v3  ;;  %v1328_v32 = vmul.f32 %v1324_v56, %v1311_v23  ;;  %v1303_v36 = vmul.f32 %v1299_v26, %v1286_v31 }
 0x21f   : > { %v1278_v20 = vmul.f32 %v1274_v33, %v1261_v7  ;;  %v2052_v61 = vrot.slane %v3039_v51, %v3359_v27  ;;  %v3034_v7 = vld [vmem:[%s4171_s3 + $0x1] ss:$8 sm:$0x3] }
 0x220   : > { %v2064_v15 = vpop.permute.xlu0 %2063  ;;  %1506 = vmatprep.subr.mxu1 %v1380_v39  ;;  %v3956_v19 = vpop.permute.xlu1 %1964  ;;  %v1925_v51 = vrot.slane %v3034_v7, %v3359_v27 }
 0x221   : > { %1507 = vmatpush1.msra.mxu1 %v1379_v6 }
 0x222   : > { %1508 = vmatprep.subr.mxu1 %v3691_v42  ;;  %v1270_v42 = vrot.slane %v1265_v24, %v3359_v27  ;;  %v2002_v24 = vrot.slane %v3037_v11, %v3359_v27 }
 0x223   : > { %1509 = vmatpush1.msra.mxu1 %v3686_v41  ;;  %v1264_v41 = vsel %vm317_vm8, %v1256_v62, %v3896_v18  ;;  %v2077_v18 = vrot.slane %v3040_v43, %v3359_v27  ;;  %v3038_v62 = vld [vmem:[%s4171_s3 + $0x6] ss:$8 sm:$0x3]  ;;  %v1895_v43 = vld [vmem:[%s4171_s3] ss:$8 sm:$0x3] }
 0x224   : > { %v2039_v34 = vpop.permute.xlu0 %2038  ;;  %1510 = vmatprep.subr.mxu1 %v1353_v25  ;;  %v3975_v54 = vpop.permute.xlu1 %1939  ;;  %v1277_v13 = vmul.f32 %v1270_v42, %v1264_v41  ;;  %v2027_v39 = vrot.slane %v3038_v62, %v3359_v27  ;;  %v2031_v10 = vrot.slane %v3038_v62, %v3362_v28  ;;  %v2006_v25 = vrot.slane %v3037_v11, %v3362_v28 }
 0x225   : > { %1511 = vmatpush1.msra.mxu1 %v1352_v29  ;;  %v1954_v41 = vrot.slane %v3035_v30, %v3362_v28 }
 0x226   : > { %1512 = vmatprep.subr.mxu1 %v1328_v32 }
 0x227   : > { %1513 = vmatpush1.msra.mxu1 %v1327_v35  ;;  %v1975_v35 = vrot.slane %v3036_v55, %v3359_v27 }
 0x228   : > { %v2014_v45 = vpop.permute.xlu0 %2013  ;;  %1514 = vmatprep.subr.mxu1 %v1303_v36  ;;  %v3982_v40 = vpop.permute.xlu1 %1914 }
 0x229   : > { %1515 = vmatpush1.msra.mxu1 %v1302_v37 }
 0x22a   : > { %1516 = vmatprep.subr.mxu1 %v1278_v20 }
 0x22b   : > { %1517 = vmatpush1.msra.mxu1 %v1277_v13 }
 0x22c   : > { %v1989_v12 = vpop.permute.xlu0 %1988  ;;  %v3987_v47 = vpop.permute.xlu1 %1889  ;;  %3093 = vmatprep.subr.msk.mxu1 %vm295_vm0, %v3132_v9  ;;  %3015 = vmatmul.mubr.msk.f32.vlgmr.msra.gmra.mxu1 %vm550_vm9, %v3891_v21 }
 0x22d   : > { %3094 = vmatpush1.msk.msra.mxu1 %vm295_vm0, %v3132_v9  ;;  %1556 = vmatprep.mubr.f32.mxu1 %v3129_v0 }
 0x230   : > { %v1962_v53 = vpop.permute.xlu0 %1961  ;;  %v2066_v57 = vpop.permute.xlu1 %2065  ;;  %3016 = vmatmul.mubr.msk.f32.gmra.mxu1 %vm550_vm9, %v3910_v22 }
 0x231   : > { %v2067_v58 = vsel %vm506_vm2, %v2064_v15, %v2066_v57  ;;  %v2071_v17 = vsel %vm506_vm2, %v2066_v57, %v2064_v15  ;;  %2180 = vmatprep.mubr.f32.mxu1 %v3129_v0  ;;  %v1966_v42 = vsel %vm397_vm5, %v3956_v19, %v1962_v53  ;;  %v1969_v36 = vsel %vm397_vm5, %v1962_v53, %v3956_v19 }
 0x232   : > { %v2084_v60 = vmul.f32 %v2077_v18, %v2067_v58  ;;  %v2085_v52 = vmul.f32 %v2081_v49, %v2071_v17  ;;  %v1929_v18 = vrot.slane %v3034_v7, %v3362_v28  ;;  %v1982_v49 = vmul.f32 %v1975_v35, %v1969_v36  ;;  %v3062_v35 = vld [vmem:[%s4171_s3 + $0x3] ss:$8 sm:$0x3] }
 0x233   : > { %v1904_v17 = vrot.slane %v1895_v43, %v3362_v28 }
 0x234   : > { %v1937_v63 = vpop.permute.xlu0 %1936  ;;  %2130 = vmatprep.subr.mxu1 %v2085_v52  ;;  %v2041_v1 = vpop.permute.xlu1 %2040 }
 0x235   : > { %v2042_v2 = vsel %vm479_vm1, %v2039_v34, %v2041_v1  ;;  %v2046_v3 = vsel %vm479_vm1, %v2041_v1, %v2039_v34  ;;  %2131 = vmatpush1.msra.mxu1 %v2084_v60  ;;  %v1941_v13 = vsel %vm370_vm6, %v3975_v54, %v1937_v63  ;;  %v1944_v19 = vsel %vm370_vm6, %v1937_v63, %v3975_v54  ;;  %v3065_v63 = vld [vmem:[%s4171_s3 + $0x7] ss:$8 sm:$0x3] }
 0x236   : > { %v2059_v4 = vmul.f32 %v2052_v61, %v2042_v2  ;;  %v2060_v6 = vmul.f32 %v2056_v16, %v2046_v3  ;;  %v1958_v57 = vmul.f32 %v1954_v41, %v1941_v13  ;;  %v3066_v16 = vld [vmem:[%s4171_s3 + $0x10] ss:$8 sm:$0x3] }
 0x237   : > { %v2711_v2 = vrot.slane %v3066_v16, %v3362_v28 }
 0x238   : > { %v1912_v38 = vpop.permute.xlu0 %1911  ;;  %2132 = vmatprep.subr.mxu1 %v2060_v6  ;;  %v2016_v14 = vpop.permute.xlu1 %2015 }
 0x239   : > { %v2017_v56 = vsel %vm452_vm3, %v2014_v45, %v2016_v14  ;;  %v2021_v15 = vsel %vm452_vm3, %v2016_v14, %v2014_v45  ;;  %2133 = vmatpush1.msra.mxu1 %v2059_v4  ;;  %v1950_v45 = vrot.slane %v3035_v30, %v3359_v27  ;;  %v1916_v53 = vsel %vm343_vm7, %v3982_v40, %v1912_v38 }
 0x23a   : > { %v2034_v59 = vmul.f32 %v2027_v39, %v2017_v56  ;;  %v2035_v23 = vmul.f32 %v2031_v10, %v2021_v15  ;;  %v1919_v58 = vsel %vm343_vm7, %v1912_v38, %v3982_v40  ;;  %v2707_v39 = vrot.slane %v3066_v16, %v3359_v27  ;;  %v3063_v15 = vld [vmem:[%s4171_s3 + $0x5] ss:$8 sm:$0x3] }
 0x23b   : > { %v1957_v52 = vmul.f32 %v1950_v45, %v1944_v19  ;;  %v1932_v62 = vmul.f32 %v1925_v51, %v1919_v58  ;;  %v2686_v38 = vrot.slane %v3065_v63, %v3362_v28  ;;  %v2682_v14 = vrot.slane %v3065_v63, %v3359_v27 }
 0x23c   : > { %v1886_v26 = vpop.permute.xlu0 %1885  ;;  %2134 = vmatprep.subr.mxu1 %v2035_v23  ;;  %v1991_v29 = vpop.permute.xlu1 %1990  ;;  %v2609_v45 = vrot.slane %v3062_v35, %v3362_v28 }
 0x23d   : > { %v1992_v31 = vsel %vm425_vm4, %v1989_v12, %v1991_v29  ;;  %v1996_v32 = vsel %vm425_vm4, %v1991_v29, %v1989_v12  ;;  %2135 = vmatpush1.msra.mxu1 %v2034_v59  ;;  %v1983_v12 = vmul.f32 %v1979_v8, %v1966_v42  ;;  %v1891_v61 = vsel %vm317_vm8, %v3987_v47, %v1886_v26 }
 0x23e   : > { %v2009_v33 = vmul.f32 %v2002_v24, %v1992_v31  ;;  %v2010_v34 = vmul.f32 %v2006_v25, %v1996_v32  ;;  %v1894_v40 = vsel %vm317_vm8, %v1886_v26, %v3987_v47  ;;  %v1908_v1 = vmul.f32 %v1904_v17, %v1891_v61  ;;  %v3064_v47 = vld [vmem:[%s4171_s3 + $0x6] ss:$8 sm:$0x3]  ;;  %v2525_v61 = vld [vmem:[%s4171_s3] ss:$8 sm:$0x3] }
 0x23f   : > { %v2661_v25 = vrot.slane %v3064_v47, %v3362_v28  ;;  %v2657_v29 = vrot.slane %v3064_v47, %v3359_v27  ;;  %v2632_v8 = vrot.slane %v3063_v15, %v3359_v27 }
 0x240   : > { %v2694_v37 = vpop.permute.xlu0 %2693  ;;  %2136 = vmatprep.subr.mxu1 %v2010_v34  ;;  %v4042_v20 = vpop.permute.xlu1 %2594 }
 0x241   : > { %2137 = vmatpush1.msra.mxu1 %v2009_v33  ;;  %v2636_v33 = vrot.slane %v3063_v15, %v3362_v28 }
 0x242   : > { %2138 = vmatprep.subr.mxu1 %v3733_v46  ;;  %v1900_v46 = vrot.slane %v1895_v43, %v3359_v27 }
 0x243   : > { %2139 = vmatpush1.msra.mxu1 %v3728_v44  ;;  %v1933_v44 = vmul.f32 %v1929_v18, %v1916_v53  ;;  %v3060_v18 = vld [vmem:[%s4171_s3 + $0x1] ss:$8 sm:$0x3] }
 0x244   : > { %v2669_v60 = vpop.permute.xlu0 %2668  ;;  %2140 = vmatprep.subr.mxu1 %v1983_v12  ;;  %v2696_v54 = vpop.permute.xlu1 %2695  ;;  %v1907_v6 = vmul.f32 %v1900_v46, %v1894_v40  ;;  %v2605_v12 = vrot.slane %v3062_v35, %v3359_v27  ;;  %v2559_v46 = vrot.slane %v3060_v18, %v3362_v28 }
 0x245   : > { %2141 = vmatpush1.msra.mxu1 %v1982_v49  ;;  %v2701_v10 = vsel %vm506_vm2, %v2696_v54, %v2694_v37  ;;  %v2697_v11 = vsel %vm506_vm2, %v2694_v37, %v2696_v54  ;;  %v3061_v37 = vld [vmem:[%s4171_s3 + $0x2] ss:$8 sm:$0x3] }
 0x246   : > { %2142 = vmatprep.subr.mxu1 %v1958_v57  ;;  %v2715_v59 = vmul.f32 %v2711_v2, %v2701_v10  ;;  %v2714_v26 = vmul.f32 %v2707_v39, %v2697_v11  ;;  %v2584_v53 = vrot.slane %v3061_v37, %v3362_v28  ;;  %v2580_v58 = vrot.slane %v3061_v37, %v3359_v27 }
 0x247   : > { %2143 = vmatpush1.msra.mxu1 %v1957_v52  ;;  %v2555_v52 = vrot.slane %v3060_v18, %v3359_v27 }
 0x248   : > { %v2644_v3 = vpop.permute.xlu0 %2643  ;;  %2144 = vmatprep.subr.mxu1 %v1933_v44  ;;  %v2671_v4 = vpop.permute.xlu1 %2670 }
 0x249   : > { %2145 = vmatpush1.msra.mxu1 %v1932_v62  ;;  %v2676_v56 = vsel %vm479_vm1, %v2671_v4, %v2669_v60  ;;  %v2672_v23 = vsel %vm479_vm1, %v2669_v60, %v2671_v4 }
 0x24a   : > { %2146 = vmatprep.subr.mxu1 %v1908_v1  ;;  %v2690_v31 = vmul.f32 %v2686_v38, %v2676_v56  ;;  %v2689_v34 = vmul.f32 %v2682_v14, %v2672_v23 }
 0x24b   : > { %2147 = vmatpush1.msra.mxu1 %v1907_v6 }
 0x24c   : > { %v2619_v24 = vpop.permute.xlu0 %2618  ;;  %3097 = vmatprep.subr.msk.mxu1 %vm295_vm0, %v3132_v9  ;;  %v2646_v55 = vpop.permute.xlu1 %2645  ;;  %3041 = vmatmul.mubr.msk.f32.vlgmr.msra.gmra.mxu1 %vm550_vm9, %v3891_v21 }
 0x24d   : > { %v2651_v30 = vsel %vm452_vm3, %v2646_v55, %v2644_v3  ;;  %3098 = vmatpush1.msk.msra.mxu1 %vm295_vm0, %v3132_v9  ;;  %2186 = vmatprep.mubr.f32.mxu1 %v3129_v0  ;;  %v2647_v32 = vsel %vm452_vm3, %v2644_v3, %v2646_v55  ;;  %v2530_v3 = vrot.slane %v2525_v61, %v3359_v27 }
 0x24e   : > { %2760 = vmatprep.subr.mxu1 %v2715_v59  ;;  %v2665_v42 = vmul.f32 %v2661_v25, %v2651_v30  ;;  %v2664_v9 = vmul.f32 %v2657_v29, %v2647_v32 }
 0x24f   : > { %2761 = vmatpush1.msra.mxu1 %v2714_v26 }
 0x250   : > { %v2592_v7 = vpop.permute.xlu0 %2591  ;;  %2762 = vmatprep.subr.mxu1 %v2690_v31  ;;  %v2621_v5 = vpop.permute.xlu1 %2620  ;;  %3042 = vmatmul.mubr.msk.f32.gmra.mxu1 %vm550_vm9, %v3910_v22 }
 0x251   : > { %v2622_v36 = vsel %vm425_vm4, %v2619_v24, %v2621_v5  ;;  %v2626_v41 = vsel %vm425_vm4, %v2621_v5, %v2619_v24  ;;  %2763 = vmatpush1.msra.mxu1 %v2689_v34  ;;  %v2596_v19 = vsel %vm397_vm5, %v4042_v20, %v2592_v7  ;;  %2810 = vmatprep.mubr.f32.mxu1 %v3129_v0 }
 0x252   : > { %v2639_v13 = vmul.f32 %v2632_v8, %v2622_v36  ;;  %v2640_v43 = vmul.f32 %v2636_v33, %v2626_v41  ;;  %2764 = vmatprep.subr.mxu1 %v2665_v42  ;;  %v2599_v49 = vsel %vm397_vm5, %v2592_v7, %v4042_v20  ;;  %v2613_v60 = vmul.f32 %v2609_v45, %v2596_v19 }
 0x253   : > { %2765 = vmatpush1.msra.mxu1 %v2664_v9  ;;  %v2612_v20 = vmul.f32 %v2605_v12, %v2599_v49 }
 0x254   : > { %v2567_v51 = vpop.permute.xlu0 %2566  ;;  %2766 = vmatprep.subr.mxu1 %v2640_v43  ;;  %v2570_v57 = vpop.permute.xlu1 %2569 }
 0x255   : > { %v2571_v17 = vsel %vm370_vm6, %v2570_v57, %v2567_v51  ;;  %2767 = vmatpush1.msra.mxu1 %v2639_v13  ;;  %v2574_v54 = vsel %vm370_vm6, %v2567_v51, %v2570_v57 }
 0x256   : > { %2768 = vmatprep.subr.mxu1 %v3775_v50  ;;  %v2588_v16 = vmul.f32 %v2584_v53, %v2571_v17  ;;  %v2587_v62 = vmul.f32 %v2580_v58, %v2574_v54 }
 0x257   : > { %2769 = vmatpush1.msra.mxu1 %v3770_v48  ;;  %v2534_v48 = vrot.slane %v2525_v61, %v3362_v28 }
 0x258   : > { %v2542_v44 = vpop.permute.xlu0 %2541  ;;  %2770 = vmatprep.subr.mxu1 %v2613_v60  ;;  %v2545_v40 = vpop.permute.xlu1 %2544 }
 0x259   : > { %v2546_v63 = vsel %vm343_vm7, %v2545_v40, %v2542_v44  ;;  %v2549_v50 = vsel %vm343_vm7, %v2542_v44, %v2545_v40  ;;  %2771 = vmatpush1.msra.mxu1 %v2612_v20 }
 0x25a   : > { %v2562_v1 = vmul.f32 %v2555_v52, %v2549_v50  ;;  %v2563_v2 = vmul.f32 %v2559_v46, %v2546_v63  ;;  %2772 = vmatprep.subr.mxu1 %v2588_v16 }
 0x25b   : > { %2773 = vmatpush1.msra.mxu1 %v2587_v62 }
 0x25c   : > { %v2516_v4 = vpop.permute.xlu0 %2515  ;;  %2774 = vmatprep.subr.mxu1 %v2563_v2  ;;  %v2520_v6 = vpop.permute.xlu1 %2519 }
 0x25d   : > { %v2521_v39 = vsel %vm317_vm8, %v2520_v6, %v2516_v4  ;;  %v2524_v10 = vsel %vm317_vm8, %v2516_v4, %v2520_v6  ;;  %2775 = vmatpush1.msra.mxu1 %v2562_v1 }
 0x25e   : > { %v2537_v47 = vmul.f32 %v2530_v3, %v2524_v10  ;;  %v2538_v11 = vmul.f32 %v2534_v48, %v2521_v39 }
 0x260   : > { %2776 = vmatprep.subr.mxu1 %v2538_v11 }
 0x261   : > { %2777 = vmatpush1.msra.mxu1 %v2537_v47 }
 0x262   : > { %3067 = vmatmul.mubr.msk.f32.vlgmr.msra.gmra.mxu1 %vm550_vm9, %v3891_v21 }
 0x263   : > { %2816 = vmatprep.mubr.f32.mxu1 %v3129_v0 }
 0x266   : > { %3068 = vmatmul.mubr.msk.f32.gmra.mxu1 %vm550_vm9, %v3910_v22 }
 0x2cc   : > { %v925_v27 = vpop.f32.mrf.mxu1 }
 0x2cd   : > { %940 = vst [vmem:[%s4147_s9] sm:$0xff] %v925_v27 }
 0x2ce   : > { %v927_v0 = vpop.f32.mrf.mxu1 }
 0x2cf   : > { %941 = vst [vmem:[%s4147_s9 + $0x8] sm:$0xff] %v927_v0 }
 0x2d0   : > { %v931_v28 = vpop.f32.mrf.mxu1 }
 0x2d1   : > { %942 = vst [vmem:[%s4147_s9 + $0x10] sm:$0xff] %v931_v28 }
 0x2d2   : > { %v933_v21 = vpop.f32.mrf.mxu1 }
 0x2d3   : > { %943 = vst [vmem:[%s4147_s9 + $0x18] sm:$0xff] %v933_v21 }
 0x2ec   : > { %v1552_v22 = vpop.f32.mrf.mxu1 }
 0x2ed   : > { %3021 = vst [vmem:[%s4147_s9 + $0x20] sm:$0xff] %v1552_v22 }
 0x2ee   : > { %v1554_v38 = vpop.f32.mrf.mxu1 }
 0x2ef   : > { %3022 = vst [vmem:[%s4147_s9 + $0x28] sm:$0xff] %v1554_v38 }
 0x2f0   : > { %v1558_v14 = vpop.f32.mrf.mxu1 }
 0x2f1   : > { %3023 = vst [vmem:[%s4147_s9 + $0x30] sm:$0xff] %v1558_v14 }
 0x2f2   : > { %v1560_v56 = vpop.f32.mrf.mxu1 }
 0x2f3   : > { %3024 = vst [vmem:[%s4147_s9 + $0x38] sm:$0xff] %v1560_v56 }
 0x30c   : > { %v2182_v15 = vpop.f32.mrf.mxu1 }
 0x30d   : > { %3047 = vst [vmem:[%s4147_s9 + $0x40] sm:$0xff] %v2182_v15 }
 0x30e   : > { %v2184_v59 = vpop.f32.mrf.mxu1 }
 0x30f   : > { %3048 = vst [vmem:[%s4147_s9 + $0x48] sm:$0xff] %v2184_v59 }
 0x310   : > { %v2188_v23 = vpop.f32.mrf.mxu1 }
 0x311   : > { %3049 = vst [vmem:[%s4147_s9 + $0x50] sm:$0xff] %v2188_v23 }
 0x312   : > { %v2190_v24 = vpop.f32.mrf.mxu1 }
 0x313   : > { %3050 = vst [vmem:[%s4147_s9 + $0x58] sm:$0xff] %v2190_v24 }
 0x322   : > { %v2812_v25 = vpop.f32.mrf.mxu1 }
 0x323   : > { %3073 = vst [vmem:[%s4147_s9 + $0x60] sm:$0xff] %v2812_v25 }
 0x324   : > { %v2814_v55 = vpop.f32.mrf.mxu1 }
 0x325   : > { %3074 = vst [vmem:[%s4147_s9 + $0x68] sm:$0xff] %v2814_v55 }
 0x326   : > { %v2818_v26 = vpop.f32.mrf.mxu1 }
 0x327   : > { %3075 = vst [vmem:[%s4147_s9 + $0x70] sm:$0xff] %v2818_v26 }
 0x328   : > { %v2820_v29 = vpop.f32.mrf.mxu1 }
 0x329   : > { %3076 = vst [vmem:[%s4147_s9 + $0x78] sm:$0xff] %v2820_v29 }
 0x32a PF: > { %s17_s21 = sadd.s32 1, %s3127_s21  }
 0x32b   : > { %p14_p4 = scmp.ge.s32.totalorder %s17_s21, 4  }
 0x32d   :  { %16 = sbr.rel (!%p14_p4) target bundleno = 1 (0x1), region = 109 }

</bundles_post_ra>
